<compile_context>
chip_gen: v7x
topology: tpu7x:2x2x1
jax: 0.10.0
libtpu: 0.0.40
codegen_flags: <defaults>
</compile_context>

<pallas_src>
import functools

import jax
import jax.numpy as jnp
from jax.experimental import pallas as pl
from jax.experimental.pallas import tpu as pltpu


TILE_M = 256   # batch rows per grid step (multiple of 256 for the v6e/v7x MXU)
LANE = 128     # lane-dense padding target for the output dim


def mlp_kernel(x_ref, w1_ref, b1_ref, w2_ref, b2_ref, w3_ref, b3_ref, o_ref):
    # Layer 1: (TILE_M,1280) @ (1280,512) + (1,512) -> ReLU   (bf16 MXU, f32 acc)
    x = x_ref[...].astype(jnp.bfloat16)
    h1 = jnp.dot(x, w1_ref[...], preferred_element_type=jnp.float32)
    h1 = jnp.maximum(h1 + b1_ref[...], 0.0)
    # Layer 2: (TILE_M,512) @ (512,256) + (1,256) -> ReLU
    h2 = jnp.dot(h1.astype(jnp.bfloat16), w2_ref[...],
                 preferred_element_type=jnp.float32)
    h2 = jnp.maximum(h2 + b2_ref[...], 0.0)
    # Layer 3 (lane-padded): (TILE_M,256) @ (256,128) + (1,128)
    out = jnp.dot(h2.astype(jnp.bfloat16), w3_ref[...],
                  preferred_element_type=jnp.float32)
    o_ref[...] = (out + b3_ref[...]).astype(o_ref.dtype)


@functools.partial(jax.jit, static_argnames=("tile_m",))
def mlp_forward(x, params, *, tile_m=TILE_M):
    w1, b1, w2, b2, w3, b3 = params
    B, in_dim = x.shape
    h1_dim = w1.shape[1]
    h2_dim = w2.shape[1]
    out_dim = w3.shape[1]

    # Stream weights as bf16 (biases stay f32).
    w1b = w1.astype(jnp.bfloat16)
    w2b = w2.astype(jnp.bfloat16)
    w3b = w3.astype(jnp.bfloat16)

    # Pad the output dim to a lane-dense multiple of 128 (zeros; sliced off below).
    n_pad = ((out_dim + LANE - 1) // LANE) * LANE
    w3p = jnp.pad(w3b, ((0, 0), (0, n_pad - out_dim)))
    b3p = jnp.pad(b3, ((0, 0), (0, n_pad - out_dim)))

    # Pad the batch to a multiple of tile_m (zero rows; sliced off below).
    b_pad = ((B + tile_m - 1) // tile_m) * tile_m
    xp = jnp.pad(x, ((0, b_pad - B), (0, 0)))

    out_padded = pl.pallas_call(
        mlp_kernel,
        out_shape=jax.ShapeDtypeStruct((b_pad, n_pad), jnp.float32),
        grid=(b_pad // tile_m,),
        in_specs=[
            pl.BlockSpec((tile_m, in_dim), lambda i: (i, 0)),    # x tile (pipelined)
            pl.BlockSpec((in_dim, h1_dim), lambda i: (0, 0)),    # w1 (VMEM-resident)
            pl.BlockSpec((1, h1_dim), lambda i: (0, 0)),         # b1
            pl.BlockSpec((h1_dim, h2_dim), lambda i: (0, 0)),    # w2
            pl.BlockSpec((1, h2_dim), lambda i: (0, 0)),         # b2
            pl.BlockSpec((h2_dim, n_pad), lambda i: (0, 0)),     # w3 (lane-padded)
            pl.BlockSpec((1, n_pad), lambda i: (0, 0)),          # b3 (lane-padded)
        ],
        out_specs=pl.BlockSpec((tile_m, n_pad), lambda i: (i, 0)),
        compiler_params=pltpu.CompilerParams(
            dimension_semantics=("parallel",)),
    )(xp, w1b, b1, w2b, b2, w3p, b3p)

    return out_padded[:B, :out_dim]


def init_params(key, input_dim=1280, hidden_dim=512, output_dim=25):
    """Deterministic init mimicking nn.Linear's default U(-1/sqrt(fan_in), 1/sqrt(fan_in)).

    Weights are stored (in_dim, out_dim), i.e. the transpose of PyTorch's (out, in),
    so the kernel computes x @ W + b.
    """
    dims = [(input_dim, hidden_dim), (hidden_dim, hidden_dim // 2),
            (hidden_dim // 2, output_dim)]
    params = []
    for (fan_in, fan_out) in dims:
        key, kw, kb = jax.random.split(key, 3)
        bound = 1.0 / jnp.sqrt(fan_in)
        w = jax.random.uniform(kw, (fan_in, fan_out), jnp.float32, -bound, bound)
        b = jax.random.uniform(kb, (1, fan_out), jnp.float32, -bound, bound)
        params.extend([w, b])
    return tuple(params)


def mlp_reference(x, params):
    """f32 reference using the same bf16-rounded weights the kernel streams."""
    w1, b1, w2, b2, w3, b3 = params
    w1 = w1.astype(jnp.bfloat16).astype(jnp.float32)
    w2 = w2.astype(jnp.bfloat16).astype(jnp.float32)
    w3 = w3.astype(jnp.bfloat16).astype(jnp.float32)
    h1 = jnp.maximum(x @ w1 + b1, 0.0)
    h2 = jnp.maximum(h1 @ w2 + b2, 0.0)
    return h2 @ w3 + b3


if __name__ == "__main__":
    key = jax.random.PRNGKey(0)
    key, kx = jax.random.split(key)

    # B=300 exercises batch padding (-> 512) and a 2-step grid.
    B, INPUT_DIM, HIDDEN_DIM, OUTPUT_DIM = 300, 1280, 512, 25
    x = jax.random.normal(kx, (B, INPUT_DIM), dtype=jnp.float32)
    params = init_params(key, INPUT_DIM, HIDDEN_DIM, OUTPUT_DIM)

    out = mlp_forward(x, params)
    out = jax.block_until_ready(out)

    ref = mlp_reference(x, params)
    assert out.shape == (B, OUTPUT_DIM), out.shape
    max_err = float(jnp.max(jnp.abs(out - ref)))
    assert jnp.allclose(out, ref, atol=2e-2, rtol=2e-2), f"mismatch, max|err|={max_err}"

    print("KERNEL_OK")
</pallas_src>

<mosaic_0001>
module attributes {stable_mosaic.version = 11 : i64} {
  func.func @mlp_kernel(%arg0: i32, %arg1: memref<256x1280xf32, #tpu.memory_space<vmem>>, %arg2: memref<1280x512xbf16, #tpu.memory_space<vmem>>, %arg3: memref<1x512xf32, #tpu.memory_space<vmem>>, %arg4: memref<512x256xbf16, #tpu.memory_space<vmem>>, %arg5: memref<1x256xf32, #tpu.memory_space<vmem>>, %arg6: memref<256x128xbf16, #tpu.memory_space<vmem>>, %arg7: memref<1x128xf32, #tpu.memory_space<vmem>>, %arg8: memref<256x128xf32, #tpu.memory_space<vmem>>) attributes {dimension_semantics = [#tpu.dimension_semantics<parallel>], iteration_bounds = array<i64: 2>, scalar_prefetch = 0 : i64, scratch_operands = 0 : i64, tpu.core_type = #tpu.core_type<tc>, window_params = [{transform_indices = @transform_0, window_bounds = array<i64: 256, 1280>}, {pipeline_mode = #tpu.pipeline_mode<synchronous>, transform_indices = @transform_1, window_bounds = array<i64: 1280, 512>}, {pipeline_mode = #tpu.pipeline_mode<synchronous>, transform_indices = @transform_2, window_bounds = array<i64: 1, 512>}, {pipeline_mode = #tpu.pipeline_mode<synchronous>, transform_indices = @transform_3, window_bounds = array<i64: 512, 256>}, {pipeline_mode = #tpu.pipeline_mode<synchronous>, transform_indices = @transform_4, window_bounds = array<i64: 1, 256>}, {pipeline_mode = #tpu.pipeline_mode<synchronous>, transform_indices = @transform_5, window_bounds = array<i64: 256, 128>}, {pipeline_mode = #tpu.pipeline_mode<synchronous>, transform_indices = @transform_6, window_bounds = array<i64: 1, 128>}, {transform_indices = @transform_7, window_bounds = array<i64: 256, 128>}]} {
    %c0 = arith.constant 0 : index
    %c0_0 = arith.constant 0 : index
    %0 = vector.load %arg1[%c0, %c0_0] : memref<256x1280xf32, #tpu.memory_space<vmem>>, vector<256x1280xf32>
    %1 = arith.truncf %0 : vector<256x1280xf32> to vector<256x1280xbf16>
    %c0_1 = arith.constant 0 : index
    %c0_2 = arith.constant 0 : index
    %2 = vector.load %arg2[%c0_1, %c0_2] : memref<1280x512xbf16, #tpu.memory_space<vmem>>, vector<1280x512xbf16>
    %cst = arith.constant dense<0.000000e+00> : vector<256x512xf32>
    %3 = tpu.matmul %1, %2, %cst {dimension_numbers = #tpu.dot_dimension_numbers<[1], [0], [0], [1], [0, 0, 1, 1], [], []>} : vector<256x1280xbf16>, vector<1280x512xbf16>, vector<256x512xf32> -> vector<256x512xf32>
    %c0_3 = arith.constant 0 : index
    %c0_4 = arith.constant 0 : index
    %4 = vector.load %arg3[%c0_3, %c0_4] : memref<1x512xf32, #tpu.memory_space<vmem>>, vector<1x512xf32>
    %5 = vector.broadcast %4 : vector<1x512xf32> to vector<256x512xf32>
    %6 = arith.addf %3, %5 : vector<256x512xf32>
    %cst_5 = arith.constant 0.000000e+00 : f32
    %7 = vector.broadcast %cst_5 : f32 to vector<256x512xf32>
    %8 = arith.maximumf %6, %7 : vector<256x512xf32>
    %9 = arith.truncf %8 : vector<256x512xf32> to vector<256x512xbf16>
    %c0_6 = arith.constant 0 : index
    %c0_7 = arith.constant 0 : index
    %10 = vector.load %arg4[%c0_6, %c0_7] : memref<512x256xbf16, #tpu.memory_space<vmem>>, vector<512x256xbf16>
    %cst_8 = arith.constant dense<0.000000e+00> : vector<256x256xf32>
    %11 = tpu.matmul %9, %10, %cst_8 {dimension_numbers = #tpu.dot_dimension_numbers<[1], [0], [0], [1], [0, 0, 1, 1], [], []>} : vector<256x512xbf16>, vector<512x256xbf16>, vector<256x256xf32> -> vector<256x256xf32>
    %c0_9 = arith.constant 0 : index
    %c0_10 = arith.constant 0 : index
    %12 = vector.load %arg5[%c0_9, %c0_10] : memref<1x256xf32, #tpu.memory_space<vmem>>, vector<1x256xf32>
    %13 = vector.broadcast %12 : vector<1x256xf32> to vector<256x256xf32>
    %14 = arith.addf %11, %13 : vector<256x256xf32>
    %cst_11 = arith.constant 0.000000e+00 : f32
    %15 = vector.broadcast %cst_11 : f32 to vector<256x256xf32>
    %16 = arith.maximumf %14, %15 : vector<256x256xf32>
    %17 = arith.truncf %16 : vector<256x256xf32> to vector<256x256xbf16>
    %c0_12 = arith.constant 0 : index
    %c0_13 = arith.constant 0 : index
    %18 = vector.load %arg6[%c0_12, %c0_13] : memref<256x128xbf16, #tpu.memory_space<vmem>>, vector<256x128xbf16>
    %cst_14 = arith.constant dense<0.000000e+00> : vector<256x128xf32>
    %19 = tpu.matmul %17, %18, %cst_14 {dimension_numbers = #tpu.dot_dimension_numbers<[1], [0], [0], [1], [0, 0, 1, 1], [], []>} : vector<256x256xbf16>, vector<256x128xbf16>, vector<256x128xf32> -> vector<256x128xf32>
    %c0_15 = arith.constant 0 : index
    %c0_16 = arith.constant 0 : index
    %20 = vector.load %arg7[%c0_15, %c0_16] : memref<1x128xf32, #tpu.memory_space<vmem>>, vector<1x128xf32>
    %21 = vector.broadcast %20 : vector<1x128xf32> to vector<256x128xf32>
    %22 = arith.addf %19, %21 : vector<256x128xf32>
    %c0_17 = arith.constant 0 : index
    %c0_18 = arith.constant 0 : index
    %23 = vector.load %arg8[%c0_17, %c0_18] : memref<256x128xf32, #tpu.memory_space<vmem>>, vector<256x128xf32>
    tpu.vector_store %arg8[%c0_17, %c0_18], %22 {strides = array<i32>} : memref<256x128xf32, #tpu.memory_space<vmem>>, vector<256x128xf32>,
    return
  }
  func.func @transform_0(%arg0: i32) -> (i32, i32) {
    %c0_i32 = arith.constant 0 : i32
    %c0_i32_0 = arith.constant 0 : i32
    return %arg0, %c0_i32 : i32, i32
  }
  func.func @transform_1(%arg0: i32) -> (i32, i32) {
    %c0_i32 = arith.constant 0 : i32
    %c0_i32_0 = arith.constant 0 : i32
    %c0_i32_1 = arith.constant 0 : i32
    return %c0_i32, %c0_i32_0 : i32, i32
  }
  func.func @transform_2(%arg0: i32) -> (i32, i32) {
    %c0_i32 = arith.constant 0 : i32
    %c0_i32_0 = arith.constant 0 : i32
    %c0_i32_1 = arith.constant 0 : i32
    return %c0_i32, %c0_i32_0 : i32, i32
  }
  func.func @transform_3(%arg0: i32) -> (i32, i32) {
    %c0_i32 = arith.constant 0 : i32
    %c0_i32_0 = arith.constant 0 : i32
    %c0_i32_1 = arith.constant 0 : i32
    return %c0_i32, %c0_i32_0 : i32, i32
  }
  func.func @transform_4(%arg0: i32) -> (i32, i32) {
    %c0_i32 = arith.constant 0 : i32
    %c0_i32_0 = arith.constant 0 : i32
    %c0_i32_1 = arith.constant 0 : i32
    return %c0_i32, %c0_i32_0 : i32, i32
  }
  func.func @transform_5(%arg0: i32) -> (i32, i32) {
    %c0_i32 = arith.constant 0 : i32
    %c0_i32_0 = arith.constant 0 : i32
    %c0_i32_1 = arith.constant 0 : i32
    return %c0_i32, %c0_i32_0 : i32, i32
  }
  func.func @transform_6(%arg0: i32) -> (i32, i32) {
    %c0_i32 = arith.constant 0 : i32
    %c0_i32_0 = arith.constant 0 : i32
    %c0_i32_1 = arith.constant 0 : i32
    return %c0_i32, %c0_i32_0 : i32, i32
  }
  func.func @transform_7(%arg0: i32) -> (i32, i32) {
    %c0_i32 = arith.constant 0 : i32
    %c0_i32_0 = arith.constant 0 : i32
    return %arg0, %c0_i32 : i32, i32
  }
}

</mosaic_0001>

<bundles_post_ra>
// kernel: mlp_forward.1
= control target key start
LH: loop header
LB: loop body
LE: loop exit
PB: predicated region body
PF: predicated region fallthrough
CT: control target
= control target key end

     0   :  { %s8065_s24 = smov 0   ;;  %s10645_s0 = inlined_call_operand.vmem [shape: f32[512,1280], index: 0, kind: input, shape index: {}]   ;;  %s10646_s1 = inlined_call_operand.vmem [shape: bf16[1280,512], index: 1, kind: input, shape index: {}]   ;;  %s10647_s2 = inlined_call_operand.vmem [shape: f32[1,512], index: 2, kind: input, shape index: {}]   ;;  %s10648_s3 = inlined_call_operand.vmem [shape: bf16[512,256], index: 3, kind: input, shape index: {}]   ;;  %s10649_s4 = inlined_call_operand.vmem [shape: f32[1,256], index: 4, kind: input, shape index: {}]   ;;  %s10650_s5 = inlined_call_operand.vmem [shape: bf16[256,128], index: 5, kind: input, shape index: {}]   ;;  %s10651_s6 = inlined_call_operand.vmem [shape: f32[1,128], index: 6, kind: input, shape index: {}]   ;;  %s10652_s7 = inlined_call_operand.vmem [shape: f32[512,128], index: 7, kind: output, shape index: {}]  }
   0x1 LB: > { %s6092_s25 = sadd.s32 4294967295, %s8023_s24   ;;  %p6096_p0 = scmp.ge.s32.totalorder %s8023_s24, 1  ;;  %s8023_s24 = sphi %s8065_s24, %s17_s24  }
   0x2   : > { %p239_p1 = scmp.lt.s32.totalorder %s8023_s24, 3 }
   0x4   : > { %p240_p2 = pnand %p6096_p0, %p239_p1 }
   0x6   : > { %243 = sbr.rel (%p240_p2) target bundleno = 1438 (0x59e), region = 48 }
   0xd   : > { %v7425_v0 = vld [vmem:[%s10646_s1 + $0x4] ss:$16 sps:$4 sm:$0xff]   ;;  %v7427_v1 = vld [vmem:[%s10646_s1] ss:$16 sps:$4 sm:$0xff]   ;;  %s6097_s11 = sshll.u32 %s6092_s25, 5 }
   0xe   : > { %2708 = vmatprep.subr.bf16.mxu0 %v7425_v0  ;;  %6616 = vmatprep.subr.bf16.mxu1 %v7425_v0  ;;  %v7428_v2 = vld [vmem:[%s10646_s1 + $0x24] ss:$16 sps:$4 sm:$0xff]   ;;  %v7430_v3 = vld [vmem:[%s10646_s1 + $0x20] ss:$16 sps:$4 sm:$0xff]   ;;  %p273_p3 = scmp.lt.s32.totalorder %s6097_s11, 63 }
   0xf   : > { %2709 = vmatpush1.bf16.msra.mxu0 %v7427_v1  ;;  %6632 = vmatpush1.bf16.msra.mxu1 %v7427_v1  ;;  %v7431_v4 = vld [vmem:[%s10646_s1 + $0x44] ss:$16 sps:$4 sm:$0xff]   ;;  %v7433_v5 = vld [vmem:[%s10646_s1 + $0x40] ss:$16 sps:$4 sm:$0xff]   ;;  %v7478_v43 = vld [vmem:[%s10646_s1 + $0xc] ss:$16 sps:$4 sm:$0xff]  }
  0x10   : > { %2710 = vmatprep.subr.bf16.mxu0 %v7428_v2  ;;  %6617 = vmatprep.subr.bf16.mxu1 %v7428_v2  ;;  %v7434_v6 = vld [vmem:[%s10646_s1 + $0x64] ss:$16 sps:$4 sm:$0xff]   ;;  %s10680_s11 = smov (!%p273_p3, %s6097_s11), 63  ;;  %v7436_v7 = vld [vmem:[%s10646_s1 + $0x60] ss:$16 sps:$4 sm:$0xff]  }
  0x11   : > { %v7437_v8 = vld [vmem:[%s10646_s1 + $0x84] ss:$16 sps:$4 sm:$0xff]   ;;  %s7416_s22 = smul.u32 80, %s10680_s11  ;;  %v7439_v9 = vld [vmem:[%s10646_s1 + $0x80] ss:$16 sps:$4 sm:$0xff]   ;;  %s6100_s27 = sshll.u32 %s10680_s11, 3 }
  0x12   : > { %v7440_v10 = vld [vmem:[%s10646_s1 + $0xa4] ss:$16 sps:$4 sm:$0xff]   ;;  %v7442_v11 = vld [vmem:[%s10646_s1 + $0xa0] ss:$16 sps:$4 sm:$0xff]   ;;  %v7476_v51 = vld [vmem:[%s10646_s1 + $0x8] ss:$16 sps:$4 sm:$0xff]   ;;  %s10576_s10 = scalar_lea.vmem %s10652_s7, %s6100_s27 }
  0x13   : > { %2711 = vmatpush1.bf16.msra.mxu0 %v7430_v3  ;;  %6633 = vmatpush1.bf16.msra.mxu1 %v7430_v3  ;;  %s8112_s30 = scalar_lea.vmem %s10645_s0, %s7416_s22  ;;  %v7443_v12 = vld [vmem:[%s10646_s1 + $0xc4] ss:$16 sps:$4 sm:$0xff]   ;;  %v7445_v18 = vld [vmem:[%s10646_s1 + $0xc0] ss:$16 sps:$4 sm:$0xff]   ;;  %v7484_v53 = vld [vmem:[%s10646_s1 + $0x2c] ss:$16 sps:$4 sm:$0xff]  }
  0x14   : > { %2712 = vmatprep.subr.bf16.mxu0 %v7431_v4  ;;  %6618 = vmatprep.subr.bf16.mxu1 %v7431_v4  ;;  %v287_v13 = vld [vmem:[%s8112_s30 + $0x8] sm:$0xff]  ;;  %v297_v14 = vld [vmem:[%s8112_s30 + $0x58] sm:$0xff]  ;;  %v7446_v20 = vld [vmem:[%s10646_s1 + $0xe4] ss:$16 sps:$4 sm:$0xff]  }
  0x15   : > { %v8122_v15 = vpack.c.bf16 %v297_v14, %v287_v13  ;;  %v447_v16 = vld [vmem:[%s8112_s30 + $0x508] sm:$0xff]  ;;  %v457_v17 = vld [vmem:[%s8112_s30 + $0x558] sm:$0xff]  ;;  %v7448_v21 = vld [vmem:[%s10646_s1 + $0xe0] ss:$16 sps:$4 sm:$0xff]  }
  0x16   : > { %v8129_v19 = vpack.c.bf16 %v457_v17, %v447_v16  ;;  %v7449_v22 = vld [vmem:[%s10646_s1 + $0x104] ss:$16 sps:$4 sm:$0xff]   ;;  %v7451_v23 = vld [vmem:[%s10646_s1 + $0x100] ss:$16 sps:$4 sm:$0xff]   ;;  %v307_v44 = vld [vmem:[%s8112_s30 + $0xa8] sm:$0xff] }
  0x17   : > { %2713 = vmatpush1.bf16.msra.mxu0 %v7433_v5  ;;  %6634 = vmatpush1.bf16.msra.mxu1 %v7433_v5  ;;  %v7452_v24 = vld [vmem:[%s10646_s1 + $0x124] ss:$16 sps:$4 sm:$0xff]   ;;  %v7454_v25 = vld [vmem:[%s10646_s1 + $0x120] ss:$16 sps:$4 sm:$0xff]   ;;  %v317_v47 = vld [vmem:[%s8112_s30 + $0xf8] sm:$0xff] }
  0x18   : > { %2714 = vmatprep.subr.bf16.mxu0 %v7434_v6  ;;  %6619 = vmatprep.subr.bf16.mxu1 %v7434_v6  ;;  %v7455_v26 = vld [vmem:[%s10646_s1 + $0x144] ss:$16 sps:$4 sm:$0xff]   ;;  %v7457_v27 = vld [vmem:[%s10646_s1 + $0x140] ss:$16 sps:$4 sm:$0xff]   ;;  %v467_v48 = vld [vmem:[%s8112_s30 + $0x5a8] sm:$0xff]  ;;  %v8223_v56 = vpack.c.bf16 %v317_v47, %v307_v44 }
  0x19   : > { %2740 = vmatprep.mubr.bf16.mxu0 %v8122_v15  ;;  %2820 = vmatprep.mubr.bf16.mxu1 %v8129_v19  ;;  %v7458_v28 = vld [vmem:[%s10646_s1 + $0x164] ss:$16 sps:$4 sm:$0xff]   ;;  %v7460_v29 = vld [vmem:[%s10646_s1 + $0x160] ss:$16 sps:$4 sm:$0xff]   ;;  %v477_v49 = vld [vmem:[%s8112_s30 + $0x5f8] sm:$0xff] }
  0x1a   : > { %v7461_v30 = vld [vmem:[%s10646_s1 + $0x184] ss:$16 sps:$4 sm:$0xff]   ;;  %v7463_v31 = vld [vmem:[%s10646_s1 + $0x180] ss:$16 sps:$4 sm:$0xff]   ;;  %v7482_v55 = vld [vmem:[%s10646_s1 + $0x28] ss:$16 sps:$4 sm:$0xff]   ;;  %v8225_v57 = vpack.c.bf16 %v477_v49, %v467_v48 }
  0x1b   : > { %2715 = vmatpush1.bf16.msra.mxu0 %v7436_v7  ;;  %6635 = vmatpush1.bf16.msra.mxu1 %v7436_v7  ;;  %v7464_v32 = vld [vmem:[%s10646_s1 + $0x1a4] ss:$16 sps:$4 sm:$0xff]   ;;  %v7466_v33 = vld [vmem:[%s10646_s1 + $0x1a0] ss:$16 sps:$4 sm:$0xff]   ;;  %v7490_v63 = vld [vmem:[%s10646_s1 + $0x4c] ss:$16 sps:$4 sm:$0xff]  }
  0x1c   : > { %2716 = vmatprep.subr.bf16.mxu0 %v7437_v8  ;;  %6620 = vmatprep.subr.bf16.mxu1 %v7437_v8  ;;  %v7467_v34 = vld [vmem:[%s10646_s1 + $0x1c4] ss:$16 sps:$4 sm:$0xff]   ;;  %v7469_v35 = vld [vmem:[%s10646_s1 + $0x1c0] ss:$16 sps:$4 sm:$0xff]   ;;  %v327_v0 = vld [vmem:[%s8112_s30 + $0x148] sm:$0xff] }
  0x1d   : > { %v7470_v36 = vld [vmem:[%s10646_s1 + $0x1e4] ss:$16 sps:$4 sm:$0xff]   ;;  %v7472_v37 = vld [vmem:[%s10646_s1 + $0x1e0] ss:$16 sps:$4 sm:$0xff]   ;;  %v337_v3 = vld [vmem:[%s8112_s30 + $0x198] sm:$0xff] }
  0x1e   : > { %v286_v38 = vld [vmem:[%s8112_s30] sm:$0xff]  ;;  %v296_v39 = vld [vmem:[%s8112_s30 + $0x50] sm:$0xff]  ;;  %v487_v4 = vld [vmem:[%s8112_s30 + $0x648] sm:$0xff] }
  0x1f   : > { %2717 = vmatpush1.bf16.msra.mxu0 %v7439_v9  ;;  %6636 = vmatpush1.bf16.msra.mxu1 %v7439_v9  ;;  %v446_v40 = vld [vmem:[%s8112_s30 + $0x500] sm:$0xff]  ;;  %v456_v41 = vld [vmem:[%s8112_s30 + $0x550] sm:$0xff]  ;;  %v8198_v45 = vpack.c.bf16 %v296_v39, %v286_v38  ;;  %v497_v5 = vld [vmem:[%s8112_s30 + $0x698] sm:$0xff] }
  0x20   : > { %2718 = vmatprep.subr.bf16.mxu0 %v7440_v10  ;;  %6621 = vmatprep.subr.bf16.mxu1 %v7440_v10  ;;  %v7475_v42 = vld [vmem:[%s10646_s1 + $0x204] ss:$16 sps:$4 sm:$0xff]   ;;  %v8200_v46 = vpack.c.bf16 %v456_v41, %v446_v40  ;;  %v7473_v50 = vld [vmem:[%s10646_s1 + $0x200] ss:$16 sps:$4 sm:$0xff]   ;;  %v7488_v7 = vld [vmem:[%s10646_s1 + $0x48] ss:$16 sps:$4 sm:$0xff]   ;;  %v8269_v13 = vpack.c.bf16 %v497_v5, %v487_v4 }
  0x21   : > { %v7481_v52 = vld [vmem:[%s10646_s1 + $0x224] ss:$16 sps:$4 sm:$0xff]   ;;  %v7479_v54 = vld [vmem:[%s10646_s1 + $0x220] ss:$16 sps:$4 sm:$0xff]   ;;  %v7496_v9 = vld [vmem:[%s10646_s1 + $0x6c] ss:$16 sps:$4 sm:$0xff]  }
  0x22   : > { %v306_v58 = vld [vmem:[%s8112_s30 + $0xa0] sm:$0xff]  ;;  %v316_v59 = vld [vmem:[%s8112_s30 + $0xf0] sm:$0xff]  ;;  %v7514_v41 = vld [vmem:[%s10646_s1 + $0xcc] ss:$16 sps:$4 sm:$0xff]  }
  0x23   : > { %2719 = vmatpush1.bf16.msra.mxu0 %v7442_v11  ;;  %6637 = vmatpush1.bf16.msra.mxu1 %v7442_v11  ;;  %v466_v60 = vld [vmem:[%s8112_s30 + $0x5a0] sm:$0xff]  ;;  %v476_v61 = vld [vmem:[%s8112_s30 + $0x5f0] sm:$0xff]  ;;  %v8242_v1 = vpack.c.bf16 %v316_v59, %v306_v58  ;;  %v7494_v11 = vld [vmem:[%s10646_s1 + $0x68] ss:$16 sps:$4 sm:$0xff]  }
  0x24   : > { %2720 = vmatprep.subr.bf16.mxu0 %v7443_v12  ;;  %6622 = vmatprep.subr.bf16.mxu1 %v7443_v12  ;;  %v7487_v62 = vld [vmem:[%s10646_s1 + $0x244] ss:$16 sps:$4 sm:$0xff]   ;;  %v8244_v2 = vpack.c.bf16 %v476_v61, %v466_v60  ;;  %v7485_v6 = vld [vmem:[%s10646_s1 + $0x240] ss:$16 sps:$4 sm:$0xff]   ;;  %v8267_v12 = vpack.c.bf16 %v337_v3, %v327_v0  ;;  %v377_v44 = vld [vmem:[%s8112_s30 + $0x2d8] sm:$0xff] }
  0x25   : > { %v7493_v8 = vld [vmem:[%s10646_s1 + $0x264] ss:$16 sps:$4 sm:$0xff]   ;;  %v7491_v10 = vld [vmem:[%s10646_s1 + $0x260] ss:$16 sps:$4 sm:$0xff]   ;;  %v527_v49 = vld [vmem:[%s8112_s30 + $0x788] sm:$0xff] }
  0x26   : > { %v326_v14 = vld [vmem:[%s8112_s30 + $0x140] sm:$0xff]  ;;  %v336_v16 = vld [vmem:[%s8112_s30 + $0x190] sm:$0xff]  ;;  %v7526_v3 = vld [vmem:[%s10646_s1 + $0x10c] ss:$16 sps:$4 sm:$0xff]  }
  0x27   : > { %2721 = vmatpush1.bf16.msra.mxu0 %v7445_v18  ;;  %6638 = vmatpush1.bf16.msra.mxu1 %v7445_v18  ;;  %v486_v17 = vld [vmem:[%s8112_s30 + $0x640] sm:$0xff]  ;;  %v496_v18 = vld [vmem:[%s8112_s30 + $0x690] sm:$0xff]  ;;  %v387_v5 = vld [vmem:[%s8112_s30 + $0x328] sm:$0xff] }
  0x28   : > { %2722 = vmatprep.subr.bf16.mxu0 %v7446_v20  ;;  %6623 = vmatprep.subr.bf16.mxu1 %v7446_v20  ;;  %v7499_v20 = vld [vmem:[%s10646_s1 + $0x284] ss:$16 sps:$4 sm:$0xff]   ;;  %v7521_v4 = vld [vmem:[%s10646_s1 + $0x300] ss:$16 sps:$4 sm:$0xff]  }
  0x29   : > { %v506_v38 = vld [vmem:[%s8112_s30 + $0x6e0] sm:$0xff]  ;;  %v516_v39 = vld [vmem:[%s8112_s30 + $0x730] sm:$0xff] }
  0x2a   : > { %v7511_v40 = vld [vmem:[%s10646_s1 + $0x2c4] ss:$16 sps:$4 sm:$0xff]   ;;  %v8336_v48 = vpack.c.bf16 %v516_v39, %v506_v38  ;;  %v577_v38 = vld [vmem:[%s8112_s30 + $0x918] sm:$0xff] }
  0x2b   : > { %2723 = vmatpush1.bf16.msra.mxu0 %v7448_v21  ;;  %6639 = vmatpush1.bf16.msra.mxu1 %v7448_v21  ;;  %v7502_v21 = vld [vmem:[%s10646_s1 + $0x8c] ss:$16 sps:$4 sm:$0xff]   ;;  %v366_v60 = vld [vmem:[%s8112_s30 + $0x280] sm:$0xff]  ;;  %v376_v61 = vld [vmem:[%s8112_s30 + $0x2d0] sm:$0xff] }
  0x2c   : > { %2724 = vmatprep.subr.bf16.mxu0 %v7449_v22  ;;  %6624 = vmatprep.subr.bf16.mxu1 %v7449_v22  ;;  %v347_v22 = vld [vmem:[%s8112_s30 + $0x1e8] sm:$0xff]  ;;  %v7523_v0 = vld [vmem:[%s10646_s1 + $0x304] ss:$16 sps:$4 sm:$0xff]  }
  0x2d   : > { %v7536_v39 = vld [vmem:[%s10646_s1 + $0x148] ss:$16 sps:$4 sm:$0xff]  }
  0x2f   : > { %2725 = vmatpush1.bf16.msra.mxu0 %v7451_v23  ;;  %6640 = vmatpush1.bf16.msra.mxu1 %v7451_v23  ;;  %v8286_v23 = vpack.c.bf16 %v336_v16, %v326_v14  ;;  %v7529_v14 = vld [vmem:[%s10646_s1 + $0x324] ss:$16 sps:$4 sm:$0xff]   ;;  %v7532_v16 = vld [vmem:[%s10646_s1 + $0x12c] ss:$16 sps:$4 sm:$0xff]  }
  0x30   : > { %2726 = vmatprep.subr.bf16.mxu0 %v7452_v24  ;;  %6625 = vmatprep.subr.bf16.mxu1 %v7452_v24  ;;  %v8288_v24 = vpack.c.bf16 %v496_v18, %v486_v17  ;;  %v7527_v17 = vld [vmem:[%s10646_s1 + $0x320] ss:$16 sps:$4 sm:$0xff]   ;;  %v7530_v18 = vld [vmem:[%s10646_s1 + $0x128] ss:$16 sps:$4 sm:$0xff]  }
  0x33   : > { %2727 = vmatpush1.bf16.msra.mxu0 %v7454_v25  ;;  %6641 = vmatpush1.bf16.msra.mxu1 %v7454_v25  ;;  %v357_v25 = vld [vmem:[%s8112_s30 + $0x238] sm:$0xff] }
  0x34   : > { %2728 = vmatprep.subr.bf16.mxu0 %v7455_v26  ;;  %6626 = vmatprep.subr.bf16.mxu1 %v7455_v26  ;;  %v507_v26 = vld [vmem:[%s8112_s30 + $0x6e8] sm:$0xff] }
  0x37   : > { %2729 = vmatpush1.bf16.msra.mxu0 %v7457_v27  ;;  %6642 = vmatpush1.bf16.msra.mxu1 %v7457_v27  ;;  %v517_v27 = vld [vmem:[%s8112_s30 + $0x738] sm:$0xff] }
  0x38   : > { %2730 = vmatprep.subr.bf16.mxu0 %v7458_v28  ;;  %6627 = vmatprep.subr.bf16.mxu1 %v7458_v28  ;;  %v7497_v28 = vld [vmem:[%s10646_s1 + $0x280] ss:$16 sps:$4 sm:$0xff]  }
  0x3b   : > { %2731 = vmatpush1.bf16.msra.mxu0 %v7460_v29  ;;  %6643 = vmatpush1.bf16.msra.mxu1 %v7460_v29  ;;  %v7500_v29 = vld [vmem:[%s10646_s1 + $0x88] ss:$16 sps:$4 sm:$0xff]  }
  0x3c   : > { %2732 = vmatprep.subr.bf16.mxu0 %v7461_v30  ;;  %6628 = vmatprep.subr.bf16.mxu1 %v7461_v30  ;;  %v7505_v30 = vld [vmem:[%s10646_s1 + $0x2a4] ss:$16 sps:$4 sm:$0xff]  }
  0x3f   : > { %2733 = vmatpush1.bf16.msra.mxu0 %v7463_v31  ;;  %6644 = vmatpush1.bf16.msra.mxu1 %v7463_v31  ;;  %v7508_v31 = vld [vmem:[%s10646_s1 + $0xac] ss:$16 sps:$4 sm:$0xff]  }
  0x40   : > { %2734 = vmatprep.subr.bf16.mxu0 %v7464_v32  ;;  %6629 = vmatprep.subr.bf16.mxu1 %v7464_v32  ;;  %v7503_v32 = vld [vmem:[%s10646_s1 + $0x2a0] ss:$16 sps:$4 sm:$0xff]  }
  0x43   : > { %2735 = vmatpush1.bf16.msra.mxu0 %v7466_v33  ;;  %6645 = vmatpush1.bf16.msra.mxu1 %v7466_v33  ;;  %v7506_v33 = vld [vmem:[%s10646_s1 + $0xa8] ss:$16 sps:$4 sm:$0xff]  }
  0x44   : > { %2736 = vmatprep.subr.bf16.mxu0 %v7467_v34  ;;  %6630 = vmatprep.subr.bf16.mxu1 %v7467_v34  ;;  %v8311_v34 = vpack.c.bf16 %v357_v25, %v347_v22  ;;  %v386_v22 = vld [vmem:[%s8112_s30 + $0x320] sm:$0xff]  ;;  %v396_v25 = vld [vmem:[%s8112_s30 + $0x370] sm:$0xff] }
  0x47   : > { %2737 = vmatpush1.bf16.msra.mxu0 %v7469_v35  ;;  %6646 = vmatpush1.bf16.msra.mxu1 %v7469_v35  ;;  %v8313_v35 = vpack.c.bf16 %v517_v27, %v507_v26  ;;  %v546_v26 = vld [vmem:[%s8112_s30 + $0x820] sm:$0xff]  ;;  %v556_v27 = vld [vmem:[%s8112_s30 + $0x870] sm:$0xff] }
  0x48   : > { %2738 = vmatprep.subr.bf16.mxu0 %v7470_v36  ;;  %6631 = vmatprep.subr.bf16.mxu1 %v7470_v36  ;;  %v346_v36 = vld [vmem:[%s8112_s30 + $0x1e0] sm:$0xff] }
  0x4b   : > { %2739 = vmatpush1.bf16.msra.mxu0 %v7472_v37  ;;  %6647 = vmatpush1.bf16.msra.mxu1 %v7472_v37  ;;  %v356_v37 = vld [vmem:[%s8112_s30 + $0x230] sm:$0xff] }
  0x4c   : > { %2901 = vmatprep.subr.bf16.mxu0 %v7475_v42  ;;  %3673 = vmatprep.subr.bf16.mxu1 %v7478_v43  ;;  %v7509_v42 = vld [vmem:[%s10646_s1 + $0x2c0] ss:$16 sps:$4 sm:$0xff]   ;;  %v367_v43 = vld [vmem:[%s8112_s30 + $0x288] sm:$0xff]  ;;  %v8334_v47 = vpack.c.bf16 %v356_v37, %v346_v36  ;;  %v8424_v36 = vpack.c.bf16 %v556_v27, %v546_v26  ;;  %v7559_v26 = vld [vmem:[%s10646_s1 + $0x3c4] ss:$16 sps:$4 sm:$0xff]  }
  0x4d   : > { %v8355_v58 = vpack.c.bf16 %v377_v44, %v367_v43  ;;  %v567_v37 = vld [vmem:[%s8112_s30 + $0x8c8] sm:$0xff] }
  0x4e   : > { %2741 = vmatmul.mubr.bf16.vlgmr.msra.gmra.mrb[0].mxu0 %v8198_v45  ;;  %2821 = vmatmul.mubr.bf16.vlgmr.msra.gmra.mrb[0].mxu1 %v8200_v46  ;;  %v7542_v43 = vld [vmem:[%s10646_s1 + $0x168] ss:$16 sps:$4 sm:$0xff]   ;;  %v7562_v27 = vld [vmem:[%s10646_s1 + $0x1cc] ss:$16 sps:$4 sm:$0xff]  }
  0x4f   : > { %2902 = vmatpush1.bf16.msra.mxu0 %v7473_v50  ;;  %3674 = vmatpush1.bf16.msra.mxu1 %v7476_v51  ;;  %v537_v50 = vld [vmem:[%s8112_s30 + $0x7d8] sm:$0xff] }
  0x50   : > { %2903 = vmatprep.subr.bf16.mxu0 %v7481_v52  ;;  %3675 = vmatprep.subr.bf16.mxu1 %v7484_v53  ;;  %v7512_v51 = vld [vmem:[%s10646_s1 + $0xc8] ss:$16 sps:$4 sm:$0xff]   ;;  %v7517_v52 = vld [vmem:[%s10646_s1 + $0x2e4] ss:$16 sps:$4 sm:$0xff]   ;;  %v7520_v53 = vld [vmem:[%s10646_s1 + $0xec] ss:$16 sps:$4 sm:$0xff]   ;;  %v8357_v59 = vpack.c.bf16 %v537_v50, %v527_v49  ;;  %v8445_v49 = vpack.c.bf16 %v577_v38, %v567_v37 }
  0x51   : > { %2750 = vmatprep.mubr.bf16.mxu0 %v8223_v56  ;;  %2830 = vmatprep.mubr.bf16.mxu1 %v8225_v57  ;;  %v406_v50 = vld [vmem:[%s8112_s30 + $0x3c0] sm:$0xff]  ;;  %v7560_v37 = vld [vmem:[%s10646_s1 + $0x1c8] ss:$16 sps:$4 sm:$0xff]  }
  0x52   : > { %v7565_v38 = vld [vmem:[%s10646_s1 + $0x3e4] ss:$16 sps:$4 sm:$0xff]  }
  0x53   : > { %2904 = vmatpush1.bf16.msra.mxu0 %v7479_v54  ;;  %3676 = vmatpush1.bf16.msra.mxu1 %v7482_v55  ;;  %v7515_v54 = vld [vmem:[%s10646_s1 + $0x2e0] ss:$16 sps:$4 sm:$0xff]   ;;  %v7518_v55 = vld [vmem:[%s10646_s1 + $0xe8] ss:$16 sps:$4 sm:$0xff]  }
  0x54   : > { %2905 = vmatprep.subr.bf16.mxu0 %v7487_v62  ;;  %3677 = vmatprep.subr.bf16.mxu1 %v7490_v63  ;;  %v526_v62 = vld [vmem:[%s8112_s30 + $0x780] sm:$0xff]  ;;  %v536_v63 = vld [vmem:[%s8112_s30 + $0x7d0] sm:$0xff] }
  0x56   : > { %2751 = vmatmul.mubr.bf16.gmra.mrb[4].mxu0 %v8242_v1  ;;  %2831 = vmatmul.mubr.bf16.gmra.mrb[4].mxu1 %v8244_v2 }
  0x57   : > { %2906 = vmatpush1.bf16.msra.mxu0 %v7485_v6  ;;  %3678 = vmatpush1.bf16.msra.mxu1 %v7488_v7  ;;  %v397_v6 = vld [vmem:[%s8112_s30 + $0x378] sm:$0xff]  ;;  %v8378_v7 = vpack.c.bf16 %v376_v61, %v366_v60  ;;  %v7545_v60 = vld [vmem:[%s10646_s1 + $0x380] ss:$16 sps:$4 sm:$0xff]   ;;  %v427_v61 = vld [vmem:[%s8112_s30 + $0x468] sm:$0xff] }
  0x58   : > { %2907 = vmatprep.subr.bf16.mxu0 %v7493_v8  ;;  %3679 = vmatprep.subr.bf16.mxu1 %v7496_v9  ;;  %v8380_v8 = vpack.c.bf16 %v536_v63, %v526_v62  ;;  %v547_v9 = vld [vmem:[%s8112_s30 + $0x828] sm:$0xff]  ;;  %v437_v62 = vld [vmem:[%s8112_s30 + $0x4b8] sm:$0xff] }
  0x59   : > { %2760 = vmatprep.mubr.bf16.mxu0 %v8267_v12  ;;  %2840 = vmatprep.mubr.bf16.mxu1 %v8269_v13 }
  0x5b   : > { %2908 = vmatpush1.bf16.msra.mxu0 %v7491_v10  ;;  %3680 = vmatpush1.bf16.msra.mxu1 %v7494_v11  ;;  %v557_v10 = vld [vmem:[%s8112_s30 + $0x878] sm:$0xff] }
  0x5c   : > { %2909 = vmatprep.subr.bf16.mxu0 %v7499_v20  ;;  %3681 = vmatprep.subr.bf16.mxu1 %v7502_v21  ;;  %v7524_v11 = vld [vmem:[%s10646_s1 + $0x108] ss:$16 sps:$4 sm:$0xff]   ;;  %v8399_v20 = vpack.c.bf16 %v397_v6, %v387_v5  ;;  %v8401_v21 = vpack.c.bf16 %v557_v10, %v547_v9  ;;  %v7553_v6 = vld [vmem:[%s10646_s1 + $0x3a4] ss:$16 sps:$4 sm:$0xff]   ;;  %v7556_v9 = vld [vmem:[%s10646_s1 + $0x1ac] ss:$16 sps:$4 sm:$0xff]  }
  0x5d   : > { %v7548_v5 = vld [vmem:[%s10646_s1 + $0x188] ss:$16 sps:$4 sm:$0xff]   ;;  %v7551_v10 = vld [vmem:[%s10646_s1 + $0x3a0] ss:$16 sps:$4 sm:$0xff]  }
  0x5e   : > { %2761 = vmatmul.mubr.bf16.gmra.mrb[8].mxu0 %v8286_v23  ;;  %2841 = vmatmul.mubr.bf16.gmra.mrb[8].mxu1 %v8288_v24 }
  0x5f   : > { %2910 = vmatpush1.bf16.msra.mxu0 %v7497_v28  ;;  %3682 = vmatpush1.bf16.msra.mxu1 %v7500_v29  ;;  %v7535_v28 = vld [vmem:[%s10646_s1 + $0x344] ss:$16 sps:$4 sm:$0xff]   ;;  %v7538_v29 = vld [vmem:[%s10646_s1 + $0x14c] ss:$16 sps:$4 sm:$0xff]  }
  0x60   : > { %2911 = vmatprep.subr.bf16.mxu0 %v7505_v30  ;;  %3683 = vmatprep.subr.bf16.mxu1 %v7508_v31  ;;  %v7533_v30 = vld [vmem:[%s10646_s1 + $0x340] ss:$16 sps:$4 sm:$0xff]   ;;  %v407_v31 = vld [vmem:[%s8112_s30 + $0x3c8] sm:$0xff] }
  0x61   : > { %2770 = vmatprep.mubr.bf16.mxu0 %v8311_v34  ;;  %2850 = vmatprep.mubr.bf16.mxu1 %v8313_v35 }
  0x63   : > { %2912 = vmatpush1.bf16.msra.mxu0 %v7503_v32  ;;  %3684 = vmatpush1.bf16.msra.mxu1 %v7506_v33  ;;  %v417_v32 = vld [vmem:[%s8112_s30 + $0x418] sm:$0xff]  ;;  %v8422_v33 = vpack.c.bf16 %v396_v25, %v386_v22  ;;  %v586_v22 = vld [vmem:[%s8112_s30 + $0x960] sm:$0xff]  ;;  %v596_v25 = vld [vmem:[%s8112_s30 + $0x9b0] sm:$0xff] }
  0x64   : > { %2913 = vmatprep.subr.bf16.mxu0 %v7511_v40  ;;  %3685 = vmatprep.subr.bf16.mxu1 %v7514_v41  ;;  %v7541_v40 = vld [vmem:[%s10646_s1 + $0x364] ss:$16 sps:$4 sm:$0xff]   ;;  %v7544_v41 = vld [vmem:[%s10646_s1 + $0x16c] ss:$16 sps:$4 sm:$0xff]   ;;  %v8443_v44 = vpack.c.bf16 %v417_v32, %v407_v31 }
  0x65   : > { %v289_v31 = vld [vmem:[%s8112_s30 + $0x18] sm:$0xff]  ;;  %v299_v32 = vld [vmem:[%s8112_s30 + $0x68] sm:$0xff] }
  0x66   : > { %2771 = vmatmul.mubr.bf16.gmra.mrb[12].mxu0 %v8334_v47  ;;  %2851 = vmatmul.mubr.bf16.gmra.mrb[12].mxu1 %v8336_v48 }
  0x67   : > { %2914 = vmatpush1.bf16.msra.mxu0 %v7509_v42  ;;  %3686 = vmatpush1.bf16.msra.mxu1 %v7512_v51  ;;  %v7539_v42 = vld [vmem:[%s10646_s1 + $0x360] ss:$16 sps:$4 sm:$0xff]  }
  0x68   : > { %2915 = vmatprep.subr.bf16.mxu0 %v7517_v52  ;;  %3687 = vmatprep.subr.bf16.mxu1 %v7520_v53  ;;  %v416_v51 = vld [vmem:[%s8112_s30 + $0x410] sm:$0xff]  ;;  %v566_v52 = vld [vmem:[%s8112_s30 + $0x8c0] sm:$0xff] }
  0x69   : > { %2780 = vmatprep.mubr.bf16.mxu0 %v8355_v58  ;;  %2860 = vmatprep.mubr.bf16.mxu1 %v8357_v59  ;;  %v576_v53 = vld [vmem:[%s8112_s30 + $0x910] sm:$0xff]  ;;  %v8466_v63 = vpack.c.bf16 %v416_v51, %v406_v50  ;;  %v298_v50 = vld [vmem:[%s8112_s30 + $0x60] sm:$0xff] }
  0x6a   : > { %v7571_v51 = vld [vmem:[%s10646_s1 + $0x404] ss:$16 sps:$4 sm:$0xff]  }
  0x6b   : > { %2916 = vmatpush1.bf16.msra.mxu0 %v7515_v54  ;;  %3688 = vmatpush1.bf16.msra.mxu1 %v7518_v55  ;;  %v7547_v54 = vld [vmem:[%s10646_s1 + $0x384] ss:$16 sps:$4 sm:$0xff]   ;;  %v7550_v55 = vld [vmem:[%s10646_s1 + $0x18c] ss:$16 sps:$4 sm:$0xff]  }
  0x6c   : > { %2917 = vmatprep.subr.bf16.mxu0 %v7523_v0  ;;  %3689 = vmatprep.subr.bf16.mxu1 %v7526_v3  ;;  %v8468_v0 = vpack.c.bf16 %v576_v53, %v566_v52  ;;  %v587_v3 = vld [vmem:[%s8112_s30 + $0x968] sm:$0xff]  ;;  %v309_v53 = vld [vmem:[%s8112_s30 + $0xb8] sm:$0xff] }
  0x6d   : > { %v7574_v52 = vld [vmem:[%s10646_s1 + $0x20c] ss:$16 sps:$4 sm:$0xff]  }
  0x6e   : > { %2781 = vmatmul.mubr.bf16.gmra.mrb[16].mxu0 %v8378_v7  ;;  %2861 = vmatmul.mubr.bf16.gmra.mrb[16].mxu1 %v8380_v8 }
  0x6f   : > { %2918 = vmatpush1.bf16.msra.mxu0 %v7521_v4  ;;  %3690 = vmatpush1.bf16.msra.mxu1 %v7524_v11  ;;  %v597_v4 = vld [vmem:[%s8112_s30 + $0x9b8] sm:$0xff] }
  0x70   : > { %2919 = vmatprep.subr.bf16.mxu0 %v7529_v14  ;;  %3691 = vmatprep.subr.bf16.mxu1 %v7532_v16  ;;  %v7554_v11 = vld [vmem:[%s10646_s1 + $0x1a8] ss:$16 sps:$4 sm:$0xff]   ;;  %v8487_v14 = vpack.c.bf16 %v437_v62, %v427_v61  ;;  %v8489_v16 = vpack.c.bf16 %v597_v4, %v587_v3  ;;  %v318_v3 = vld [vmem:[%s8112_s30 + $0x100] sm:$0xff] }
  0x71   : > { %2790 = vmatprep.mubr.bf16.mxu0 %v8399_v20  ;;  %2870 = vmatprep.mubr.bf16.mxu1 %v8401_v21  ;;  %v7572_v61 = vld [vmem:[%s10646_s1 + $0x208] ss:$16 sps:$4 sm:$0xff]   ;;  %v7575_v4 = vld [vmem:[%s10646_s1 + $0x420] ss:$16 sps:$4 sm:$0xff]  }
  0x73   : > { %2920 = vmatpush1.bf16.msra.mxu0 %v7527_v17  ;;  %3692 = vmatpush1.bf16.msra.mxu1 %v7530_v18  ;;  %v426_v17 = vld [vmem:[%s8112_s30 + $0x460] sm:$0xff]  ;;  %v436_v18 = vld [vmem:[%s8112_s30 + $0x4b0] sm:$0xff] }
  0x74   : > { %2921 = vmatprep.subr.bf16.mxu0 %v7535_v28  ;;  %3693 = vmatprep.subr.bf16.mxu1 %v7538_v29  ;;  %v7557_v28 = vld [vmem:[%s10646_s1 + $0x3c0] ss:$16 sps:$4 sm:$0xff]   ;;  %v8508_v29 = vpack.c.bf16 %v436_v18, %v426_v17  ;;  %v7583_v17 = vld [vmem:[%s10646_s1 + $0x444] ss:$16 sps:$4 sm:$0xff]  }
  0x76   : > { %2791 = vmatmul.mubr.bf16.gmra.mrb[20].mxu0 %v8422_v33  ;;  %2871 = vmatmul.mubr.bf16.gmra.mrb[20].mxu1 %v8424_v36 }
  0x77   : > { %2922 = vmatpush1.bf16.msra.mxu0 %v7533_v30  ;;  %3694 = vmatpush1.bf16.msra.mxu1 %v7536_v39  ;;  %v8510_v30 = vpack.c.bf16 %v596_v25, %v586_v22  ;;  %v7568_v39 = vld [vmem:[%s10646_s1 + $0x1ec] ss:$16 sps:$4 sm:$0xff]   ;;  %v7581_v25 = vld [vmem:[%s10646_s1 + $0x440] ss:$16 sps:$4 sm:$0xff]  }
  0x78   : > { %2923 = vmatprep.subr.bf16.mxu0 %v7541_v40  ;;  %3695 = vmatprep.subr.bf16.mxu1 %v7544_v41  ;;  %v7563_v40 = vld [vmem:[%s10646_s1 + $0x3e0] ss:$16 sps:$4 sm:$0xff]   ;;  %v8526_v41 = vpack.c.bf16 %v299_v32, %v289_v31  ;;  %v349_v32 = vld [vmem:[%s8112_s30 + $0x1f8] sm:$0xff] }
  0x79   : > { %2800 = vmatprep.mubr.bf16.mxu0 %v8443_v44  ;;  %2880 = vmatprep.mubr.bf16.mxu1 %v8445_v49  ;;  %v338_v31 = vld [vmem:[%s8112_s30 + $0x1a0] sm:$0xff] }
  0x7b   : > { %2924 = vmatpush1.bf16.msra.mxu0 %v7539_v42  ;;  %3696 = vmatpush1.bf16.msra.mxu1 %v7542_v43  ;;  %v7566_v42 = vld [vmem:[%s10646_s1 + $0x1e8] ss:$16 sps:$4 sm:$0xff]   ;;  %v288_v43 = vld [vmem:[%s8112_s30 + $0x10] sm:$0xff] }
  0x7c   : > { %2925 = vmatprep.subr.bf16.mxu0 %v7547_v54  ;;  %3697 = vmatprep.subr.bf16.mxu1 %v7550_v55  ;;  %v319_v54 = vld [vmem:[%s8112_s30 + $0x108] sm:$0xff]  ;;  %v8545_v55 = vpack.c.bf16 %v298_v50, %v288_v43  ;;  %v7593_v43 = vld [vmem:[%s10646_s1 + $0x480] ss:$16 sps:$4 sm:$0xff]  }
  0x7d   : > { %v8553_v62 = vpack.c.bf16 %v319_v54, %v309_v53  ;;  %v7596_v50 = vld [vmem:[%s10646_s1 + $0x288] ss:$16 sps:$4 sm:$0xff]   ;;  %v7604_v53 = vld [vmem:[%s10646_s1 + $0x2ac] ss:$16 sps:$4 sm:$0xff]   ;;  %v358_v54 = vld [vmem:[%s8112_s30 + $0x240] sm:$0xff] }
  0x7e   : > { %2801 = vmatmul.mubr.bf16.gmra.mrb[24].mxu0 %v8466_v63  ;;  %2881 = vmatmul.mubr.bf16.gmra.mrb[24].mxu1 %v8468_v0 }
  0x7f   : > { %2926 = vmatpush1.bf16.msra.mxu0 %v7545_v60  ;;  %3698 = vmatpush1.bf16.msra.mxu1 %v7548_v5  ;;  %v7569_v60 = vld [vmem:[%s10646_s1 + $0x400] ss:$16 sps:$4 sm:$0xff]   ;;  %v7577_v5 = vld [vmem:[%s10646_s1 + $0x424] ss:$16 sps:$4 sm:$0xff]  }
  0x80   : > { %2927 = vmatprep.subr.bf16.mxu0 %v7553_v6  ;;  %3699 = vmatprep.subr.bf16.mxu1 %v7556_v9  ;;  %v7580_v6 = vld [vmem:[%s10646_s1 + $0x22c] ss:$16 sps:$4 sm:$0xff]   ;;  %v7578_v9 = vld [vmem:[%s10646_s1 + $0x228] ss:$16 sps:$4 sm:$0xff]  }
  0x81   : > { %2810 = vmatprep.mubr.bf16.mxu0 %v8487_v14  ;;  %2890 = vmatprep.mubr.bf16.mxu1 %v8489_v16 }
  0x83   : > { %2928 = vmatpush1.bf16.msra.mxu0 %v7551_v10  ;;  %3700 = vmatpush1.bf16.msra.mxu1 %v7554_v11  ;;  %v329_v10 = vld [vmem:[%s8112_s30 + $0x158] sm:$0xff]  ;;  %v339_v11 = vld [vmem:[%s8112_s30 + $0x1a8] sm:$0xff] }
  0x84   : > { %2929 = vmatprep.subr.bf16.mxu0 %v7559_v26  ;;  %3701 = vmatprep.subr.bf16.mxu1 %v7562_v27  ;;  %v8583_v22 = vpack.c.bf16 %v339_v11, %v329_v10  ;;  %v328_v26 = vld [vmem:[%s8112_s30 + $0x150] sm:$0xff] }
  0x85   : > { %v7589_v27 = vld [vmem:[%s10646_s1 + $0x464] ss:$16 sps:$4 sm:$0xff]  }
  0x86   : > { %2811 = vmatmul.mubr.bf16.gmra.mrb[28].mxu0 %v8508_v29  ;;  %2891 = vmatmul.mubr.bf16.gmra.mrb[28].mxu1 %v8510_v30  ;;  %v368_v10 = vld [vmem:[%s8112_s30 + $0x290] sm:$0xff] }
  0x87   : > { %2930 = vmatpush1.bf16.msra.mxu0 %v7557_v28  ;;  %3702 = vmatpush1.bf16.msra.mxu1 %v7560_v37  ;;  %v7592_v28 = vld [vmem:[%s10646_s1 + $0x26c] ss:$16 sps:$4 sm:$0xff]   ;;  %v7613_v11 = vld [vmem:[%s10646_s1 + $0x4e4] ss:$16 sps:$4 sm:$0xff]  }
  0x88   : > { %2931 = vmatprep.subr.bf16.mxu0 %v7565_v38  ;;  %3703 = vmatprep.subr.bf16.mxu1 %v7568_v39  ;;  %v359_v37 = vld [vmem:[%s8112_s30 + $0x248] sm:$0xff]  ;;  %v7587_v38 = vld [vmem:[%s10646_s1 + $0x460] ss:$16 sps:$4 sm:$0xff]  }
  0x89   : > { %2933 = vmatprep.mubr.bf16.mxu0 %v8526_v41  ;;  %3705 = vmatprep.mubr.bf16.mxu1 %v8122_v15  ;;  %v308_v15 = vld [vmem:[%s8112_s30 + $0xb0] sm:$0xff]  ;;  %v7590_v39 = vld [vmem:[%s10646_s1 + $0x268] ss:$16 sps:$4 sm:$0xff]  }
  0x8a   : > { %v8581_v18 = vpack.c.bf16 %v318_v3, %v308_v15  ;;  %v7599_v15 = vld [vmem:[%s10646_s1 + $0x4a0] ss:$16 sps:$4 sm:$0xff]   ;;  %v7602_v3 = vld [vmem:[%s10646_s1 + $0x2a8] ss:$16 sps:$4 sm:$0xff]  }
  0x8b   : > { %2932 = vmatpush1.bf16.msra.mxu0 %v7563_v40  ;;  %3704 = vmatpush1.bf16.msra.mxu1 %v7566_v42  ;;  %v8617_v40 = vpack.c.bf16 %v338_v31, %v328_v26  ;;  %v8619_v42 = vpack.c.bf16 %v359_v37, %v349_v32  ;;  %v7611_v26 = vld [vmem:[%s10646_s1 + $0x4e0] ss:$16 sps:$4 sm:$0xff]   ;;  %v7620_v37 = vld [vmem:[%s10646_s1 + $0x308] ss:$16 sps:$4 sm:$0xff]  }
  0x8c   : > { %3094 = vmatprep.subr.bf16.mxu0 %v7571_v51  ;;  %3866 = vmatprep.subr.bf16.mxu1 %v7574_v52  ;;  %v348_v51 = vld [vmem:[%s8112_s30 + $0x1f0] sm:$0xff] }
  0x8d   : > { %v7601_v52 = vld [vmem:[%s10646_s1 + $0x4a4] ss:$16 sps:$4 sm:$0xff]   ;;  %v7617_v32 = vld [vmem:[%s10646_s1 + $0x500] ss:$16 sps:$4 sm:$0xff]  }
  0x8e   : > { %2934 = vmatmul.mubr.bf16.vlgmr.msra.gmra.mrb[0].mxu0 %v8545_v55  ;;  %3706 = vmatmul.mubr.bf16.vlgmr.msra.gmra.mrb[32].mxu1 %v8198_v45  ;;  %v7586_v45 = vld [vmem:[%s10646_s1 + $0x24c] ss:$16 sps:$4 sm:$0xff]  }
  0x8f   : > { %3095 = vmatpush1.bf16.msra.mxu0 %v7569_v60  ;;  %3867 = vmatpush1.bf16.msra.mxu1 %v7572_v61  ;;  %v369_v60 = vld [vmem:[%s8112_s30 + $0x298] sm:$0xff]  ;;  %v379_v61 = vld [vmem:[%s8112_s30 + $0x2e8] sm:$0xff] }
  0x90   : > { %2943 = vmatprep.mubr.bf16.mxu0 %v8553_v62  ;;  %3715 = vmatprep.mubr.bf16.mxu1 %v8223_v56  ;;  %v7584_v56 = vld [vmem:[%s10646_s1 + $0x248] ss:$16 sps:$4 sm:$0xff]  }
  0x91   : > { %3096 = vmatprep.subr.bf16.mxu0 %v7577_v5  ;;  %3868 = vmatprep.subr.bf16.mxu1 %v7580_v6  ;;  %v8655_v5 = vpack.c.bf16 %v379_v61, %v369_v60  ;;  %v7605_v6 = vld [vmem:[%s10646_s1 + $0x4c0] ss:$16 sps:$4 sm:$0xff]   ;;  %v7632_v61 = vld [vmem:[%s10646_s1 + $0x348] ss:$16 sps:$4 sm:$0xff]  }
  0x92   : > { %v7629_v60 = vld [vmem:[%s10646_s1 + $0x540] ss:$16 sps:$4 sm:$0xff]  }
  0x93   : > { %3097 = vmatpush1.bf16.msra.mxu0 %v7575_v4  ;;  %3869 = vmatpush1.bf16.msra.mxu1 %v7578_v9  ;;  %v8653_v4 = vpack.c.bf16 %v358_v54, %v348_v51  ;;  %v7608_v9 = vld [vmem:[%s10646_s1 + $0x2c8] ss:$16 sps:$4 sm:$0xff]   ;;  %v7623_v51 = vld [vmem:[%s10646_s1 + $0x520] ss:$16 sps:$4 sm:$0xff]  }
  0x94   : > { %3098 = vmatprep.subr.bf16.mxu0 %v7583_v17  ;;  %3870 = vmatprep.subr.bf16.mxu1 %v7586_v45  ;;  %v7616_v17 = vld [vmem:[%s10646_s1 + $0x2ec] ss:$16 sps:$4 sm:$0xff]   ;;  %v378_v45 = vld [vmem:[%s8112_s30 + $0x2e0] sm:$0xff] }
  0x96   : > { %2944 = vmatmul.mubr.bf16.gmra.mrb[4].mxu0 %v8581_v18  ;;  %3716 = vmatmul.mubr.bf16.gmra.mrb[36].mxu1 %v8242_v1  ;;  %v7595_v1 = vld [vmem:[%s10646_s1 + $0x484] ss:$16 sps:$4 sm:$0xff]  }
  0x97   : > { %2953 = vmatprep.mubr.bf16.mxu0 %v8583_v22  ;;  %3725 = vmatprep.mubr.bf16.mxu1 %v8267_v12  ;;  %v7598_v12 = vld [vmem:[%s10646_s1 + $0x28c] ss:$16 sps:$4 sm:$0xff]  }
  0x98   : > { %3099 = vmatpush1.bf16.msra.mxu0 %v7581_v25  ;;  %3871 = vmatpush1.bf16.msra.mxu1 %v7584_v56  ;;  %v389_v25 = vld [vmem:[%s8112_s30 + $0x338] sm:$0xff]  ;;  %v399_v56 = vld [vmem:[%s8112_s30 + $0x388] sm:$0xff] }
  0x99   : > { %3100 = vmatprep.subr.bf16.mxu0 %v7589_v27  ;;  %3872 = vmatprep.subr.bf16.mxu1 %v7592_v28  ;;  %v7614_v27 = vld [vmem:[%s10646_s1 + $0x2e8] ss:$16 sps:$4 sm:$0xff]   ;;  %v8689_v28 = vpack.c.bf16 %v378_v45, %v368_v10  ;;  %v8691_v31 = vpack.c.bf16 %v399_v56, %v389_v25  ;;  %v7635_v10 = vld [vmem:[%s10646_s1 + $0x560] ss:$16 sps:$4 sm:$0xff]  }
  0x9a   : > { %v7641_v45 = vld [vmem:[%s10646_s1 + $0x580] ss:$16 sps:$4 sm:$0xff]   ;;  %v7644_v25 = vld [vmem:[%s10646_s1 + $0x388] ss:$16 sps:$4 sm:$0xff]  }
  0x9c   : > { %3101 = vmatpush1.bf16.msra.mxu0 %v7587_v38  ;;  %3873 = vmatpush1.bf16.msra.mxu1 %v7590_v39  ;;  %v388_v38 = vld [vmem:[%s8112_s30 + $0x330] sm:$0xff] }
  0x9d   : > { %3102 = vmatprep.subr.bf16.mxu0 %v7595_v1  ;;  %3874 = vmatprep.subr.bf16.mxu1 %v7598_v12  ;;  %v7625_v39 = vld [vmem:[%s10646_s1 + $0x524] ss:$16 sps:$4 sm:$0xff]   ;;  %v7628_v1 = vld [vmem:[%s10646_s1 + $0x32c] ss:$16 sps:$4 sm:$0xff]  }
  0x9e   : > { %2954 = vmatmul.mubr.bf16.gmra.mrb[8].mxu0 %v8617_v40  ;;  %3726 = vmatmul.mubr.bf16.gmra.mrb[40].mxu1 %v8286_v23  ;;  %v7607_v23 = vld [vmem:[%s10646_s1 + $0x4c4] ss:$16 sps:$4 sm:$0xff]  }
  0x9f   : > { %2963 = vmatprep.mubr.bf16.mxu0 %v8619_v42  ;;  %3735 = vmatprep.mubr.bf16.mxu1 %v8311_v34  ;;  %v7610_v34 = vld [vmem:[%s10646_s1 + $0x2cc] ss:$16 sps:$4 sm:$0xff]   ;;  %v398_v12 = vld [vmem:[%s8112_s30 + $0x380] sm:$0xff] }
  0xa0   : > { %3103 = vmatpush1.bf16.msra.mxu0 %v7593_v43  ;;  %3875 = vmatpush1.bf16.msra.mxu1 %v7596_v50  ;;  %v409_v43 = vld [vmem:[%s8112_s30 + $0x3d8] sm:$0xff]  ;;  %v419_v50 = vld [vmem:[%s8112_s30 + $0x428] sm:$0xff] }
  0xa1   : > { %3104 = vmatprep.subr.bf16.mxu0 %v7601_v52  ;;  %3876 = vmatprep.subr.bf16.mxu1 %v7604_v53  ;;  %v7626_v52 = vld [vmem:[%s10646_s1 + $0x328] ss:$16 sps:$4 sm:$0xff]   ;;  %v8725_v53 = vpack.c.bf16 %v398_v12, %v388_v38  ;;  %v8727_v54 = vpack.c.bf16 %v419_v50, %v409_v43  ;;  %v7647_v38 = vld [vmem:[%s10646_s1 + $0x5a0] ss:$16 sps:$4 sm:$0xff]  }
  0xa2   : > { %v7656_v43 = vld [vmem:[%s10646_s1 + $0x3c8] ss:$16 sps:$4 sm:$0xff]  }
  0xa4   : > { %3105 = vmatpush1.bf16.msra.mxu0 %v7599_v15  ;;  %3877 = vmatpush1.bf16.msra.mxu1 %v7602_v3  ;;  %v408_v15 = vld [vmem:[%s8112_s30 + $0x3d0] sm:$0xff] }
  0xa5   : > { %3106 = vmatprep.subr.bf16.mxu0 %v7607_v23  ;;  %3878 = vmatprep.subr.bf16.mxu1 %v7610_v34  ;;  %v7637_v3 = vld [vmem:[%s10646_s1 + $0x564] ss:$16 sps:$4 sm:$0xff]   ;;  %v7640_v23 = vld [vmem:[%s10646_s1 + $0x36c] ss:$16 sps:$4 sm:$0xff]  }
  0xa6   : > { %2964 = vmatmul.mubr.bf16.gmra.mrb[12].mxu0 %v8653_v4  ;;  %3736 = vmatmul.mubr.bf16.gmra.mrb[44].mxu1 %v8334_v47  ;;  %v7619_v47 = vld [vmem:[%s10646_s1 + $0x504] ss:$16 sps:$4 sm:$0xff]  }
  0xa7   : > { %2973 = vmatprep.mubr.bf16.mxu0 %v8655_v5  ;;  %3745 = vmatprep.mubr.bf16.mxu1 %v8355_v58  ;;  %v7622_v58 = vld [vmem:[%s10646_s1 + $0x30c] ss:$16 sps:$4 sm:$0xff]   ;;  %v418_v34 = vld [vmem:[%s8112_s30 + $0x420] sm:$0xff] }
  0xa8   : > { %3107 = vmatpush1.bf16.msra.mxu0 %v7605_v6  ;;  %3879 = vmatpush1.bf16.msra.mxu1 %v7608_v9  ;;  %v429_v6 = vld [vmem:[%s8112_s30 + $0x478] sm:$0xff]  ;;  %v439_v9 = vld [vmem:[%s8112_s30 + $0x4c8] sm:$0xff] }
  0xa9   : > { %3108 = vmatprep.subr.bf16.mxu0 %v7613_v11  ;;  %3880 = vmatprep.subr.bf16.mxu1 %v7616_v17  ;;  %v7638_v11 = vld [vmem:[%s10646_s1 + $0x368] ss:$16 sps:$4 sm:$0xff]   ;;  %v8761_v17 = vpack.c.bf16 %v418_v34, %v408_v15  ;;  %v8769_v56 = vpack.c.bf16 %v439_v9, %v429_v6  ;;  %v7659_v15 = vld [vmem:[%s10646_s1 + $0x5e0] ss:$16 sps:$4 sm:$0xff]  }
  0xaa   : > { %v478_v9 = vld [vmem:[%s8112_s30 + $0x600] sm:$0xff] }
  0xac   : > { %3109 = vmatpush1.bf16.msra.mxu0 %v7611_v26  ;;  %3881 = vmatpush1.bf16.msra.mxu1 %v7614_v27  ;;  %v7649_v26 = vld [vmem:[%s10646_s1 + $0x5a4] ss:$16 sps:$4 sm:$0xff]   ;;  %v7652_v27 = vld [vmem:[%s10646_s1 + $0x3ac] ss:$16 sps:$4 sm:$0xff]  }
  0xad   : > { %3110 = vmatprep.subr.bf16.mxu0 %v7619_v47  ;;  %3882 = vmatprep.subr.bf16.mxu1 %v7622_v58  ;;  %v428_v47 = vld [vmem:[%s8112_s30 + $0x470] sm:$0xff]  ;;  %v438_v58 = vld [vmem:[%s8112_s30 + $0x4c0] sm:$0xff] }
  0xae   : > { %2974 = vmatmul.mubr.bf16.gmra.mrb[16].mxu0 %v8689_v28  ;;  %3746 = vmatmul.mubr.bf16.gmra.mrb[48].mxu1 %v8378_v7  ;;  %v7631_v7 = vld [vmem:[%s10646_s1 + $0x544] ss:$16 sps:$4 sm:$0xff]   ;;  %v8797_v12 = vpack.c.bf16 %v438_v58, %v428_v47  ;;  %v539_v58 = vld [vmem:[%s8112_s30 + $0x7e8] sm:$0xff] }
  0xaf   : > { %2983 = vmatprep.mubr.bf16.mxu0 %v8691_v31  ;;  %3755 = vmatprep.mubr.bf16.mxu1 %v8399_v20  ;;  %v7634_v20 = vld [vmem:[%s10646_s1 + $0x34c] ss:$16 sps:$4 sm:$0xff]   ;;  %v518_v47 = vld [vmem:[%s8112_s30 + $0x740] sm:$0xff] }
  0xb0   : > { %3111 = vmatpush1.bf16.msra.mxu0 %v7617_v32  ;;  %3883 = vmatpush1.bf16.msra.mxu1 %v7620_v37  ;;  %v449_v32 = vld [vmem:[%s8112_s30 + $0x518] sm:$0xff]  ;;  %v459_v37 = vld [vmem:[%s8112_s30 + $0x568] sm:$0xff] }
  0xb1   : > { %3112 = vmatprep.subr.bf16.mxu0 %v7625_v39  ;;  %3884 = vmatprep.subr.bf16.mxu1 %v7628_v1  ;;  %v7650_v39 = vld [vmem:[%s10646_s1 + $0x3a8] ss:$16 sps:$4 sm:$0xff]   ;;  %v7658_v1 = vld [vmem:[%s10646_s1 + $0x3cc] ss:$16 sps:$4 sm:$0xff]   ;;  %v8805_v50 = vpack.c.bf16 %v459_v37, %v449_v32 }
  0xb4   : > { %3113 = vmatpush1.bf16.msra.mxu0 %v7623_v51  ;;  %3885 = vmatpush1.bf16.msra.mxu1 %v7626_v52  ;;  %v7661_v51 = vld [vmem:[%s10646_s1 + $0x5e4] ss:$16 sps:$4 sm:$0xff]   ;;  %v7664_v52 = vld [vmem:[%s10646_s1 + $0x3ec] ss:$16 sps:$4 sm:$0xff]  }
  0xb5   : > { %3114 = vmatprep.subr.bf16.mxu0 %v7631_v7  ;;  %3886 = vmatprep.subr.bf16.mxu1 %v7634_v20  ;;  %v448_v7 = vld [vmem:[%s8112_s30 + $0x510] sm:$0xff]  ;;  %v458_v20 = vld [vmem:[%s8112_s30 + $0x560] sm:$0xff] }
  0xb6   : > { %2984 = vmatmul.mubr.bf16.gmra.mrb[20].mxu0 %v8725_v53  ;;  %3756 = vmatmul.mubr.bf16.gmra.mrb[52].mxu1 %v8422_v33  ;;  %v7643_v33 = vld [vmem:[%s10646_s1 + $0x584] ss:$16 sps:$4 sm:$0xff]   ;;  %v8833_v34 = vpack.c.bf16 %v458_v20, %v448_v7  ;;  %v589_v7 = vld [vmem:[%s8112_s30 + $0x978] sm:$0xff]  ;;  %v599_v20 = vld [vmem:[%s8112_s30 + $0x9c8] sm:$0xff] }
  0xb7   : > { %2993 = vmatprep.mubr.bf16.mxu0 %v8727_v54  ;;  %3765 = vmatprep.mubr.bf16.mxu1 %v8443_v44  ;;  %v7646_v44 = vld [vmem:[%s10646_s1 + $0x38c] ss:$16 sps:$4 sm:$0xff]  }
  0xb8   : > { %3115 = vmatpush1.bf16.msra.mxu0 %v7629_v60  ;;  %3887 = vmatpush1.bf16.msra.mxu1 %v7632_v61  ;;  %v469_v60 = vld [vmem:[%s8112_s30 + $0x5b8] sm:$0xff]  ;;  %v479_v61 = vld [vmem:[%s8112_s30 + $0x608] sm:$0xff] }
  0xb9   : > { %3116 = vmatprep.subr.bf16.mxu0 %v7637_v3  ;;  %3888 = vmatprep.subr.bf16.mxu1 %v7640_v23  ;;  %v7662_v3 = vld [vmem:[%s10646_s1 + $0x3e8] ss:$16 sps:$4 sm:$0xff]   ;;  %v7670_v23 = vld [vmem:[%s10646_s1 + $0x40c] ss:$16 sps:$4 sm:$0xff]   ;;  %v8835_v6 = vpack.c.bf16 %v479_v61, %v469_v60  ;;  %v8907_v61 = vpack.c.bf16 %v599_v20, %v589_v7  ;;  %v7683_v7 = vld [vmem:[%s10646_s1 + $0x660] ss:$16 sps:$4 sm:$0xff]  }
  0xba   : > { %v7686_v20 = vld [vmem:[%s10646_s1 + $0x468] ss:$16 sps:$4 sm:$0xff]  }
  0xbc   : > { %3117 = vmatpush1.bf16.msra.mxu0 %v7635_v10  ;;  %3889 = vmatpush1.bf16.msra.mxu1 %v7638_v11  ;;  %v489_v10 = vld [vmem:[%s8112_s30 + $0x658] sm:$0xff]  ;;  %v499_v11 = vld [vmem:[%s8112_s30 + $0x6a8] sm:$0xff] }
  0xbd   : > { %3118 = vmatprep.subr.bf16.mxu0 %v7643_v33  ;;  %3890 = vmatprep.subr.bf16.mxu1 %v7646_v44  ;;  %v8847_v44 = vpack.c.bf16 %v499_v11, %v489_v10  ;;  %v7665_v10 = vld [vmem:[%s10646_s1 + $0x600] ss:$16 sps:$4 sm:$0xff]   ;;  %v7668_v11 = vld [vmem:[%s10646_s1 + $0x408] ss:$16 sps:$4 sm:$0xff]  }
  0xbe   : > { %2994 = vmatmul.mubr.bf16.gmra.mrb[24].mxu0 %v8761_v17  ;;  %3766 = vmatmul.mubr.bf16.gmra.mrb[56].mxu1 %v8466_v63  ;;  %v7655_v63 = vld [vmem:[%s10646_s1 + $0x5c4] ss:$16 sps:$4 sm:$0xff]  }
  0xbf   : > { %3003 = vmatprep.mubr.bf16.mxu0 %v8769_v56  ;;  %3775 = vmatprep.mubr.bf16.mxu1 %v8487_v14  ;;  %v7653_v14 = vld [vmem:[%s10646_s1 + $0x5c0] ss:$16 sps:$4 sm:$0xff]  }
  0xc0   : > { %3119 = vmatpush1.bf16.msra.mxu0 %v7641_v45  ;;  %3891 = vmatpush1.bf16.msra.mxu1 %v7644_v25  ;;  %v498_v45 = vld [vmem:[%s8112_s30 + $0x6a0] sm:$0xff]  ;;  %v509_v25 = vld [vmem:[%s8112_s30 + $0x6f8] sm:$0xff] }
  0xc1   : > { %3120 = vmatprep.subr.bf16.mxu0 %v7649_v26  ;;  %3892 = vmatprep.subr.bf16.mxu1 %v7652_v27 }
  0xc4   : > { %3121 = vmatpush1.bf16.msra.mxu0 %v7647_v38  ;;  %3893 = vmatpush1.bf16.msra.mxu1 %v7650_v39  ;;  %v549_v38 = vld [vmem:[%s8112_s30 + $0x838] sm:$0xff]  ;;  %v559_v39 = vld [vmem:[%s8112_s30 + $0x888] sm:$0xff] }
  0xc5   : > { %3122 = vmatprep.subr.bf16.mxu0 %v7655_v63  ;;  %3894 = vmatprep.subr.bf16.mxu1 %v7658_v1  ;;  %v8883_v1 = vpack.c.bf16 %v559_v39, %v549_v38  ;;  %v7677_v38 = vld [vmem:[%s10646_s1 + $0x640] ss:$16 sps:$4 sm:$0xff]  }
  0xc6   : > { %3004 = vmatmul.mubr.bf16.gmra.mrb[28].mxu0 %v8797_v12  ;;  %3776 = vmatmul.mubr.bf16.gmra.mrb[60].mxu1 %v8508_v29  ;;  %v7667_v29 = vld [vmem:[%s10646_s1 + $0x604] ss:$16 sps:$4 sm:$0xff]  }
  0xc7   : > { %3013 = vmatprep.mubr.bf16.mxu0 %v8805_v50  ;;  %3785 = vmatprep.mubr.bf16.mxu1 %v8129_v19  ;;  %v468_v19 = vld [vmem:[%s8112_s30 + $0x5b0] sm:$0xff] }
  0xc8   : > { %3123 = vmatpush1.bf16.msra.mxu0 %v7653_v14  ;;  %3895 = vmatpush1.bf16.msra.mxu1 %v7656_v43  ;;  %v8845_v33 = vpack.c.bf16 %v478_v9, %v468_v19  ;;  %v569_v14 = vld [vmem:[%s8112_s30 + $0x8d8] sm:$0xff]  ;;  %v579_v43 = vld [vmem:[%s8112_s30 + $0x928] sm:$0xff] }
  0xc9   : > { %3124 = vmatprep.subr.bf16.mxu0 %v7661_v51  ;;  %3896 = vmatprep.subr.bf16.mxu1 %v7664_v52  ;;  %v8895_v52 = vpack.c.bf16 %v579_v43, %v569_v14  ;;  %v311_v19 = vld [vmem:[%s8112_s30 + $0xc8] sm:$0xff]  ;;  %v321_v9 = vld [vmem:[%s8112_s30 + $0x118] sm:$0xff]  ;;  %v330_v14 = vld [vmem:[%s8112_s30 + $0x160] sm:$0xff] }
  0xca   : > { %v340_v43 = vld [vmem:[%s8112_s30 + $0x1b0] sm:$0xff] }
  0xcc   : > { %3125 = vmatpush1.bf16.msra.mxu0 %v7659_v15  ;;  %3897 = vmatpush1.bf16.msra.mxu1 %v7662_v3  ;;  %v291_v15 = vld [vmem:[%s8112_s30 + $0x28] sm:$0xff]  ;;  %v301_v3 = vld [vmem:[%s8112_s30 + $0x78] sm:$0xff] }
  0xcd   : > { %3287 = vmatprep.subr.bf16.mxu0 %v7667_v29  ;;  %4059 = vmatprep.subr.bf16.mxu1 %v7670_v23  ;;  %v8919_v23 = vpack.c.bf16 %v301_v3, %v291_v15  ;;  %v7692_v15 = vld [vmem:[%s10646_s1 + $0x488] ss:$16 sps:$4 sm:$0xff]  }
  0xce   : > { %3014 = vmatmul.mubr.bf16.gmra.mrb[32].mxu0 %v8833_v34  ;;  %3786 = vmatmul.mubr.bf16.gmra.mrb[64].mxu1 %v8200_v46  ;;  %v488_v46 = vld [vmem:[%s8112_s30 + $0x650] sm:$0xff] }
  0xcf   : > { %3023 = vmatprep.mubr.bf16.mxu0 %v8835_v6  ;;  %3795 = vmatprep.mubr.bf16.mxu1 %v8225_v57  ;;  %v519_v57 = vld [vmem:[%s8112_s30 + $0x748] sm:$0xff]  ;;  %v8857_v26 = vpack.c.bf16 %v498_v45, %v488_v46  ;;  %v8943_v45 = vpack.c.bf16 %v321_v9, %v311_v19  ;;  %v350_v19 = vld [vmem:[%s8112_s30 + $0x200] sm:$0xff]  ;;  %v360_v9 = vld [vmem:[%s8112_s30 + $0x250] sm:$0xff] }
  0xd0   : > { %v8859_v27 = vpack.c.bf16 %v519_v57, %v509_v25  ;;  %v7676_v46 = vld [vmem:[%s10646_s1 + $0x42c] ss:$16 sps:$4 sm:$0xff]   ;;  %v310_v25 = vld [vmem:[%s8112_s30 + $0xc0] sm:$0xff]  ;;  %v320_v57 = vld [vmem:[%s8112_s30 + $0x110] sm:$0xff] }
  0xd6   : > { %3024 = vmatmul.mubr.bf16.gmra.mrb[36].mxu0 %v8845_v33  ;;  %3796 = vmatmul.mubr.bf16.gmra.mrb[68].mxu1 %v8244_v2  ;;  %v508_v2 = vld [vmem:[%s8112_s30 + $0x6f0] sm:$0xff] }
  0xd7   : > { %3033 = vmatprep.mubr.bf16.mxu0 %v8847_v44  ;;  %3805 = vmatprep.mubr.bf16.mxu1 %v8269_v13  ;;  %v529_v13 = vld [vmem:[%s8112_s30 + $0x798] sm:$0xff]  ;;  %v8869_v32 = vpack.c.bf16 %v518_v47, %v508_v2  ;;  %v7671_v2 = vld [vmem:[%s10646_s1 + $0x620] ss:$16 sps:$4 sm:$0xff]  }
  0xd8   : > { %v8871_v37 = vpack.c.bf16 %v539_v58, %v529_v13  ;;  %v7674_v47 = vld [vmem:[%s10646_s1 + $0x428] ss:$16 sps:$4 sm:$0xff]  }
  0xd9   : > { %v331_v13 = vld [vmem:[%s8112_s30 + $0x168] sm:$0xff]  ;;  %v341_v58 = vld [vmem:[%s8112_s30 + $0x1b8] sm:$0xff] }
  0xda   : > { %v8973_v39 = vpack.c.bf16 %v341_v58, %v331_v13  ;;  %v7704_v13 = vld [vmem:[%s10646_s1 + $0x4c8] ss:$16 sps:$4 sm:$0xff]  }
  0xde   : > { %3034 = vmatmul.mubr.bf16.gmra.mrb[40].mxu0 %v8857_v26  ;;  %3806 = vmatmul.mubr.bf16.gmra.mrb[72].mxu1 %v8288_v24  ;;  %v528_v24 = vld [vmem:[%s8112_s30 + $0x790] sm:$0xff] }
  0xdf   : > { %3043 = vmatprep.mubr.bf16.mxu0 %v8859_v27  ;;  %3815 = vmatprep.mubr.bf16.mxu1 %v8313_v35  ;;  %v538_v35 = vld [vmem:[%s8112_s30 + $0x7e0] sm:$0xff] }
  0xe0   : > { %v8881_v63 = vpack.c.bf16 %v538_v35, %v528_v24  ;;  %v7682_v24 = vld [vmem:[%s10646_s1 + $0x44c] ss:$16 sps:$4 sm:$0xff]   ;;  %v8965_v35 = vpack.c.bf16 %v320_v57, %v310_v25 }
  0xe1   : > { %v7706_v25 = vld [vmem:[%s10646_s1 + $0x4cc] ss:$16 sps:$4 sm:$0xff]  }
  0xe6   : > { %3044 = vmatmul.mubr.bf16.gmra.mrb[44].mxu0 %v8869_v32  ;;  %3816 = vmatmul.mubr.bf16.gmra.mrb[76].mxu1 %v8336_v48  ;;  %v548_v48 = vld [vmem:[%s8112_s30 + $0x830] sm:$0xff] }
  0xe7   : > { %3053 = vmatprep.mubr.bf16.mxu0 %v8871_v37  ;;  %3825 = vmatprep.mubr.bf16.mxu1 %v8357_v59  ;;  %v558_v59 = vld [vmem:[%s8112_s30 + $0x880] sm:$0xff] }
  0xe8   : > { %v8893_v51 = vpack.c.bf16 %v558_v59, %v548_v48  ;;  %v7685_v48 = vld [vmem:[%s10646_s1 + $0x664] ss:$16 sps:$4 sm:$0xff]   ;;  %v7688_v59 = vld [vmem:[%s10646_s1 + $0x46c] ss:$16 sps:$4 sm:$0xff]  }
  0xee   : > { %3054 = vmatmul.mubr.bf16.gmra.mrb[48].mxu0 %v8881_v63  ;;  %3826 = vmatmul.mubr.bf16.gmra.mrb[80].mxu1 %v8380_v8  ;;  %v568_v8 = vld [vmem:[%s8112_s30 + $0x8d0] sm:$0xff] }
  0xef   : > { %3063 = vmatprep.mubr.bf16.mxu0 %v8883_v1  ;;  %3835 = vmatprep.mubr.bf16.mxu1 %v8401_v21  ;;  %v578_v21 = vld [vmem:[%s8112_s30 + $0x920] sm:$0xff] }
  0xf0   : > { %v8905_v60 = vpack.c.bf16 %v578_v21, %v568_v8  ;;  %v351_v8 = vld [vmem:[%s8112_s30 + $0x208] sm:$0xff]  ;;  %v361_v21 = vld [vmem:[%s8112_s30 + $0x258] sm:$0xff] }
  0xf1   : > { %v9009_v3 = vpack.c.bf16 %v361_v21, %v351_v8  ;;  %v7707_v8 = vld [vmem:[%s10646_s1 + $0x6e0] ss:$16 sps:$4 sm:$0xff]   ;;  %v7710_v21 = vld [vmem:[%s10646_s1 + $0x4e8] ss:$16 sps:$4 sm:$0xff]  }
  0xf6   : > { %3064 = vmatmul.mubr.bf16.gmra.mrb[52].mxu0 %v8893_v51  ;;  %3836 = vmatmul.mubr.bf16.gmra.mrb[84].mxu1 %v8424_v36  ;;  %v588_v36 = vld [vmem:[%s8112_s30 + $0x970] sm:$0xff] }
  0xf7   : > { %3073 = vmatprep.mubr.bf16.mxu0 %v8895_v52  ;;  %3845 = vmatprep.mubr.bf16.mxu1 %v8445_v49  ;;  %v598_v49 = vld [vmem:[%s8112_s30 + $0x9c0] sm:$0xff] }
  0xf8   : > { %v8917_v29 = vpack.c.bf16 %v598_v49, %v588_v36  ;;  %v9001_v36 = vpack.c.bf16 %v340_v43, %v330_v14  ;;  %v7689_v49 = vld [vmem:[%s10646_s1 + $0x680] ss:$16 sps:$4 sm:$0xff]   ;;  %v391_v14 = vld [vmem:[%s8112_s30 + $0x348] sm:$0xff]  ;;  %v401_v43 = vld [vmem:[%s8112_s30 + $0x398] sm:$0xff] }
  0xfe   : > { %3074 = vmatmul.mubr.bf16.gmra.mrb[56].mxu0 %v8905_v60  ;;  %3846 = vmatmul.mubr.bf16.gmra.mrb[88].mxu1 %v8468_v0  ;;  %v290_v0 = vld [vmem:[%s8112_s30 + $0x20] sm:$0xff] }
  0xff   : > { %3083 = vmatprep.mubr.bf16.mxu0 %v8907_v61  ;;  %3855 = vmatprep.mubr.bf16.mxu1 %v8489_v16  ;;  %v300_v16 = vld [vmem:[%s8112_s30 + $0x70] sm:$0xff] }
 0x106   : > { %3084 = vmatmul.mubr.bf16.gmra.mrb[60].mxu0 %v8917_v29  ;;  %3856 = vmatmul.mubr.bf16.gmra.mrb[92].mxu1 %v8510_v30  ;;  %v8935_v30 = vpack.c.bf16 %v300_v16, %v290_v0  ;;  %v7697_v0 = vld [vmem:[%s10646_s1 + $0x6a4] ss:$16 sps:$4 sm:$0xff]   ;;  %v7700_v16 = vld [vmem:[%s10646_s1 + $0x4ac] ss:$16 sps:$4 sm:$0xff]  }
 0x107   : > { %3126 = vmatprep.mubr.bf16.mxu0 %v8919_v23  ;;  %3898 = vmatprep.mubr.bf16.mxu1 %v8526_v41  ;;  %v7673_v41 = vld [vmem:[%s10646_s1 + $0x624] ss:$16 sps:$4 sm:$0xff]  }
 0x10e   : > { %3127 = vmatmul.mubr.bf16.vlgmr.msra.gmra.mrb[0].mxu0 %v8935_v30  ;;  %3899 = vmatmul.mubr.bf16.vlgmr.msra.gmra.mrb[32].mxu1 %v8545_v55  ;;  %v7679_v55 = vld [vmem:[%s10646_s1 + $0x644] ss:$16 sps:$4 sm:$0xff]  }
 0x10f   : > { %3288 = vmatpush1.bf16.msra.mxu0 %v7665_v10  ;;  %4060 = vmatpush1.bf16.msra.mxu1 %v7668_v11  ;;  %v371_v10 = vld [vmem:[%s8112_s30 + $0x2a8] sm:$0xff]  ;;  %v381_v11 = vld [vmem:[%s8112_s30 + $0x2f8] sm:$0xff] }
 0x110   : > { %3136 = vmatprep.mubr.bf16.mxu0 %v8943_v45  ;;  %3908 = vmatprep.mubr.bf16.mxu1 %v8553_v62  ;;  %v7680_v62 = vld [vmem:[%s10646_s1 + $0x448] ss:$16 sps:$4 sm:$0xff]  }
 0x111   : > { %3289 = vmatprep.subr.bf16.mxu0 %v7673_v41  ;;  %4061 = vmatprep.subr.bf16.mxu1 %v7676_v46  ;;  %v7695_v41 = vld [vmem:[%s10646_s1 + $0x6a0] ss:$16 sps:$4 sm:$0xff]   ;;  %v7698_v46 = vld [vmem:[%s10646_s1 + $0x4a8] ss:$16 sps:$4 sm:$0xff]  }
 0x113   : > { %3290 = vmatpush1.bf16.msra.mxu0 %v7671_v2  ;;  %4062 = vmatpush1.bf16.msra.mxu1 %v7674_v47  ;;  %v9041_v2 = vpack.c.bf16 %v360_v9, %v350_v19  ;;  %v7701_v47 = vld [vmem:[%s10646_s1 + $0x6c0] ss:$16 sps:$4 sm:$0xff]   ;;  %v7724_v19 = vld [vmem:[%s10646_s1 + $0x52c] ss:$16 sps:$4 sm:$0xff]  }
 0x114   : > { %3291 = vmatprep.subr.bf16.mxu0 %v7679_v55  ;;  %4063 = vmatprep.subr.bf16.mxu1 %v7682_v24  ;;  %v9051_v55 = vpack.c.bf16 %v381_v11, %v371_v10  ;;  %v7709_v24 = vld [vmem:[%s10646_s1 + $0x6e4] ss:$16 sps:$4 sm:$0xff]  }
 0x115   : > { %v390_v10 = vld [vmem:[%s8112_s30 + $0x340] sm:$0xff]  ;;  %v400_v11 = vld [vmem:[%s8112_s30 + $0x390] sm:$0xff] }
 0x116   : > { %3137 = vmatmul.mubr.bf16.gmra.mrb[4].mxu0 %v8965_v35  ;;  %3909 = vmatmul.mubr.bf16.gmra.mrb[36].mxu1 %v8581_v18  ;;  %v7691_v18 = vld [vmem:[%s10646_s1 + $0x684] ss:$16 sps:$4 sm:$0xff]  }
 0x117   : > { %3146 = vmatprep.mubr.bf16.mxu0 %v8973_v39  ;;  %3918 = vmatprep.mubr.bf16.mxu1 %v8583_v22  ;;  %v7694_v22 = vld [vmem:[%s10646_s1 + $0x48c] ss:$16 sps:$4 sm:$0xff]  }
 0x118   : > { %3292 = vmatpush1.bf16.msra.mxu0 %v7677_v38  ;;  %4064 = vmatpush1.bf16.msra.mxu1 %v7680_v62  ;;  %v7712_v38 = vld [vmem:[%s10646_s1 + $0x4ec] ss:$16 sps:$4 sm:$0xff]  }
 0x119   : > { %3293 = vmatprep.subr.bf16.mxu0 %v7685_v48  ;;  %4065 = vmatprep.subr.bf16.mxu1 %v7688_v59  ;;  %v370_v48 = vld [vmem:[%s8112_s30 + $0x2a0] sm:$0xff]  ;;  %v380_v59 = vld [vmem:[%s8112_s30 + $0x2f0] sm:$0xff] }
 0x11c   : > { %3294 = vmatpush1.bf16.msra.mxu0 %v7683_v7  ;;  %4066 = vmatpush1.bf16.msra.mxu1 %v7686_v20  ;;  %v7718_v7 = vld [vmem:[%s10646_s1 + $0x50c] ss:$16 sps:$4 sm:$0xff]  }
 0x11d   : > { %3295 = vmatprep.subr.bf16.mxu0 %v7691_v18  ;;  %4067 = vmatprep.subr.bf16.mxu1 %v7694_v22  ;;  %v9085_v18 = vpack.c.bf16 %v380_v59, %v370_v48  ;;  %v7713_v22 = vld [vmem:[%s10646_s1 + $0x700] ss:$16 sps:$4 sm:$0xff]  }
 0x11e   : > { %3147 = vmatmul.mubr.bf16.gmra.mrb[8].mxu0 %v9001_v36  ;;  %3919 = vmatmul.mubr.bf16.gmra.mrb[40].mxu1 %v8617_v40  ;;  %v7703_v40 = vld [vmem:[%s10646_s1 + $0x6c4] ss:$16 sps:$4 sm:$0xff]  }
 0x11f   : > { %3156 = vmatprep.mubr.bf16.mxu0 %v9009_v3  ;;  %3928 = vmatprep.mubr.bf16.mxu1 %v8619_v42 }
 0x120   : > { %3296 = vmatpush1.bf16.msra.mxu0 %v7689_v49  ;;  %4068 = vmatpush1.bf16.msra.mxu1 %v7692_v15  ;;  %v7716_v49 = vld [vmem:[%s10646_s1 + $0x508] ss:$16 sps:$4 sm:$0xff]  }
 0x121   : > { %v9037_v42 = vpop.f32.mrb[0].mxu1  ;;  %3297 = vmatprep.subr.bf16.mxu0 %v7697_v0  ;;  %4069 = vmatprep.subr.bf16.mxu1 %v7700_v16  ;;  %v9095_v0 = vpack.c.bf16 %v401_v43, %v391_v14  ;;  %v7721_v16 = vld [vmem:[%s10646_s1 + $0x724] ss:$16 sps:$4 sm:$0xff]   ;;  %v7725_v14 = vld [vmem:[%s10646_s1 + $0x740] ss:$16 sps:$4 sm:$0xff]  }
 0x122   : > { %v9039_v57 = vpop.f32.mrb[1].mxu1  ;;  %v7728_v43 = vld [vmem:[%s10646_s1 + $0x548] ss:$16 sps:$4 sm:$0xff]  }
 0x123   : > { %v9049_v58 = vpop.f32.mrb[2].mxu1 }
 0x124   : > { %v9059_v62 = vpop.f32.mrb[3].mxu1  ;;  %3298 = vmatpush1.bf16.msra.mxu0 %v7695_v41  ;;  %4070 = vmatpush1.bf16.msra.mxu1 %v7698_v46  ;;  %v411_v41 = vld [vmem:[%s8112_s30 + $0x3e8] sm:$0xff]  ;;  %v421_v46 = vld [vmem:[%s8112_s30 + $0x438] sm:$0xff] }
 0x125   : > { %3299 = vmatprep.subr.bf16.mxu0 %v7703_v40  ;;  %4071 = vmatprep.subr.bf16.mxu1 %v7706_v25  ;;  %v7719_v40 = vld [vmem:[%s10646_s1 + $0x720] ss:$16 sps:$4 sm:$0xff]   ;;  %v7722_v25 = vld [vmem:[%s10646_s1 + $0x528] ss:$16 sps:$4 sm:$0xff]   ;;  %v9133_v48 = vpack.c.bf16 %v421_v46, %v411_v41 }
 0x126   : > { %3157 = vmatmul.mubr.bf16.gmra.mrb[12].mxu0 %v9041_v2  ;;  %3929 = vmatmul.mubr.bf16.gmra.mrb[44].mxu1 %v8653_v4  ;;  %v7715_v4 = vld [vmem:[%s10646_s1 + $0x704] ss:$16 sps:$4 sm:$0xff]  }
 0x127   : > { %3166 = vmatprep.mubr.bf16.mxu0 %v9051_v55  ;;  %3938 = vmatprep.mubr.bf16.mxu1 %v8655_v5 }
 0x128   : > { %3300 = vmatpush1.bf16.msra.mxu0 %v7701_v47  ;;  %4072 = vmatpush1.bf16.msra.mxu1 %v7704_v13  ;;  %v7730_v47 = vld [vmem:[%s10646_s1 + $0x54c] ss:$16 sps:$4 sm:$0xff]  }
 0x129   : > { %v9081_v5 = vpop.f32.mrb[4].mxu1  ;;  %3301 = vmatprep.subr.bf16.mxu0 %v7709_v24  ;;  %4073 = vmatprep.subr.bf16.mxu1 %v7712_v38  ;;  %v9129_v24 = vpack.c.bf16 %v400_v11, %v390_v10 }
 0x12a   : > { %v9083_v20 = vpop.f32.mrb[5].mxu1 }
 0x12b   : > { %v9093_v15 = vpop.f32.mrb[6].mxu1 }
 0x12c   : > { %v9103_v9 = vpop.f32.mrb[7].mxu1  ;;  %3302 = vmatpush1.bf16.msra.mxu0 %v7707_v8  ;;  %4074 = vmatpush1.bf16.msra.mxu1 %v7710_v21  ;;  %v7733_v8 = vld [vmem:[%s10646_s1 + $0x764] ss:$16 sps:$4 sm:$0xff]   ;;  %v7736_v21 = vld [vmem:[%s10646_s1 + $0x56c] ss:$16 sps:$4 sm:$0xff]  }
 0x12d   : > { %3303 = vmatprep.subr.bf16.mxu0 %v7715_v4  ;;  %4075 = vmatprep.subr.bf16.mxu1 %v7718_v7  ;;  %v410_v4 = vld [vmem:[%s8112_s30 + $0x3e0] sm:$0xff]  ;;  %v420_v7 = vld [vmem:[%s8112_s30 + $0x430] sm:$0xff] }
 0x12e   : > { %3167 = vmatmul.mubr.bf16.gmra.mrb[16].mxu0 %v9085_v18  ;;  %3939 = vmatmul.mubr.bf16.gmra.mrb[48].mxu1 %v8689_v28  ;;  %v7727_v28 = vld [vmem:[%s10646_s1 + $0x744] ss:$16 sps:$4 sm:$0xff]   ;;  %v9173_v41 = vpack.c.bf16 %v420_v7, %v410_v4  ;;  %v451_v4 = vld [vmem:[%s8112_s30 + $0x528] sm:$0xff]  ;;  %v461_v7 = vld [vmem:[%s8112_s30 + $0x578] sm:$0xff] }
 0x12f   : > { %3176 = vmatprep.mubr.bf16.mxu0 %v9095_v0  ;;  %3948 = vmatprep.mubr.bf16.mxu1 %v8691_v31 }
 0x130   : > { %3304 = vmatpush1.bf16.msra.mxu0 %v7713_v22  ;;  %4076 = vmatpush1.bf16.msra.mxu1 %v7716_v49  ;;  %v431_v22 = vld [vmem:[%s8112_s30 + $0x488] sm:$0xff]  ;;  %v441_v49 = vld [vmem:[%s8112_s30 + $0x4d8] sm:$0xff] }
 0x131   : > { %v9125_v31 = vpop.f32.mrb[8].mxu1  ;;  %3305 = vmatprep.subr.bf16.mxu0 %v7721_v16  ;;  %4077 = vmatprep.subr.bf16.mxu1 %v7724_v19  ;;  %v7731_v16 = vld [vmem:[%s10646_s1 + $0x760] ss:$16 sps:$4 sm:$0xff]   ;;  %v7734_v19 = vld [vmem:[%s10646_s1 + $0x568] ss:$16 sps:$4 sm:$0xff]  }
 0x132   : > { %v9127_v13 = vpop.f32.mrb[9].mxu1 }
 0x133   : > { %v9131_v38 = vpop.f32.mrb[10].mxu1 }
 0x134   : > { %v9135_v59 = vpop.f32.mrb[11].mxu1  ;;  %3306 = vmatpush1.bf16.msra.mxu0 %v7719_v40  ;;  %4078 = vmatpush1.bf16.msra.mxu1 %v7722_v25  ;;  %v9177_v40 = vpack.c.bf16 %v441_v49, %v431_v22  ;;  %v7743_v22 = vld [vmem:[%s10646_s1 + $0x7a0] ss:$16 sps:$4 sm:$0xff]   ;;  %v7746_v49 = vld [vmem:[%s10646_s1 + $0x5a8] ss:$16 sps:$4 sm:$0xff]  }
 0x135   : > { %3307 = vmatprep.subr.bf16.mxu0 %v7727_v28  ;;  %4079 = vmatprep.subr.bf16.mxu1 %v7730_v47  ;;  %v7737_v28 = vld [vmem:[%s10646_s1 + $0x780] ss:$16 sps:$4 sm:$0xff]   ;;  %v7740_v47 = vld [vmem:[%s10646_s1 + $0x588] ss:$16 sps:$4 sm:$0xff]  }
 0x136   : > { %3177 = vmatmul.mubr.bf16.gmra.mrb[20].mxu0 %v9129_v24  ;;  %3949 = vmatmul.mubr.bf16.gmra.mrb[52].mxu1 %v8725_v53  ;;  %v7739_v53 = vld [vmem:[%s10646_s1 + $0x784] ss:$16 sps:$4 sm:$0xff]  }
 0x137   : > { %3186 = vmatprep.mubr.bf16.mxu0 %v9133_v48  ;;  %3958 = vmatprep.mubr.bf16.mxu1 %v8727_v54  ;;  %v7742_v54 = vld [vmem:[%s10646_s1 + $0x58c] ss:$16 sps:$4 sm:$0xff]  }
 0x138   : > { %3308 = vmatpush1.bf16.msra.mxu0 %v7725_v14  ;;  %4080 = vmatpush1.bf16.msra.mxu1 %v7728_v43  ;;  %v7745_v14 = vld [vmem:[%s10646_s1 + $0x7a4] ss:$16 sps:$4 sm:$0xff]   ;;  %v7748_v43 = vld [vmem:[%s10646_s1 + $0x5ac] ss:$16 sps:$4 sm:$0xff]  }
 0x139   : > { %v9163_v10 = vpop.f32.mrb[12].mxu1  ;;  %3309 = vmatprep.subr.bf16.mxu0 %v7733_v8  ;;  %4081 = vmatprep.subr.bf16.mxu1 %v7736_v21  ;;  %v430_v8 = vld [vmem:[%s8112_s30 + $0x480] sm:$0xff]  ;;  %v440_v21 = vld [vmem:[%s8112_s30 + $0x4d0] sm:$0xff] }
 0x13a   : > { %v9171_v11 = vpop.f32.mrb[13].mxu1 }
 0x13b   : > { %v9175_v46 = vpop.f32.mrb[14].mxu1 }
 0x13c   : > { %v9179_v25 = vpop.f32.mrb[15].mxu1  ;;  %3310 = vmatpush1.bf16.msra.mxu0 %v7731_v16  ;;  %4082 = vmatpush1.bf16.msra.mxu1 %v7734_v19 }
 0x13d   : > { %3311 = vmatprep.subr.bf16.mxu0 %v7739_v53  ;;  %4083 = vmatprep.subr.bf16.mxu1 %v7742_v54  ;;  %v9217_v53 = vpack.c.bf16 %v440_v21, %v430_v8  ;;  %v7757_v8 = vld [vmem:[%s10646_s1 + $0x7e4] ss:$16 sps:$4 sm:$0xff]   ;;  %v7760_v21 = vld [vmem:[%s10646_s1 + $0x5ec] ss:$16 sps:$4 sm:$0xff]  }
 0x13e   : > { %3187 = vmatmul.mubr.bf16.gmra.mrb[24].mxu0 %v9173_v41  ;;  %3959 = vmatmul.mubr.bf16.gmra.mrb[56].mxu1 %v8761_v17  ;;  %v7751_v17 = vld [vmem:[%s10646_s1 + $0x7c4] ss:$16 sps:$4 sm:$0xff]  }
 0x13f   : > { %3196 = vmatprep.mubr.bf16.mxu0 %v9177_v40  ;;  %3968 = vmatprep.mubr.bf16.mxu1 %v8769_v56  ;;  %v7754_v56 = vld [vmem:[%s10646_s1 + $0x5cc] ss:$16 sps:$4 sm:$0xff]  }
 0x140   : > { %3312 = vmatpush1.bf16.msra.mxu0 %v7737_v28  ;;  %4084 = vmatpush1.bf16.msra.mxu1 %v7740_v47  ;;  %v9221_v28 = vpack.c.bf16 %v461_v7, %v451_v4  ;;  %v450_v4 = vld [vmem:[%s8112_s30 + $0x520] sm:$0xff]  ;;  %v460_v7 = vld [vmem:[%s8112_s30 + $0x570] sm:$0xff] }
 0x141   : > { %v9207_v16 = vpop.f32.mrb[16].mxu1  ;;  %3313 = vmatprep.subr.bf16.mxu0 %v7745_v14  ;;  %4085 = vmatprep.subr.bf16.mxu1 %v7748_v43  ;;  %v7749_v14 = vld [vmem:[%s10646_s1 + $0x7c0] ss:$16 sps:$4 sm:$0xff]   ;;  %v7752_v43 = vld [vmem:[%s10646_s1 + $0x5c8] ss:$16 sps:$4 sm:$0xff]  }
 0x142   : > { %v9215_v19 = vpop.f32.mrb[17].mxu1 }
 0x143   : > { %v9219_v54 = vpop.f32.mrb[18].mxu1 }
 0x144   : > { %10653 = vst [vmem:[#allocation2_spill] sm:$0xff] %v9219_v54  ;;  %v9223_v47 = vpop.f32.mrb[19].mxu1  ;;  %3314 = vmatpush1.bf16.msra.mxu0 %v7743_v22  ;;  %4086 = vmatpush1.bf16.msra.mxu1 %v7746_v49  ;;  %v471_v22 = vld [vmem:[%s8112_s30 + $0x5c8] sm:$0xff]  ;;  %v481_v49 = vld [vmem:[%s8112_s30 + $0x618] sm:$0xff] }
 0x145   : > { %10654 = vst [vmem:[#allocation3_spill] sm:$0xff] %v9223_v47  ;;  %3315 = vmatprep.subr.bf16.mxu0 %v7751_v17  ;;  %4087 = vmatprep.subr.bf16.mxu1 %v7754_v56  ;;  %v7755_v17 = vld [vmem:[%s10646_s1 + $0x7e0] ss:$16 sps:$4 sm:$0xff]   ;;  %v7758_v56 = vld [vmem:[%s10646_s1 + $0x5e8] ss:$16 sps:$4 sm:$0xff]  }
 0x146   : > { %3197 = vmatmul.mubr.bf16.gmra.mrb[28].mxu0 %v9217_v53  ;;  %3969 = vmatmul.mubr.bf16.gmra.mrb[60].mxu1 %v8797_v12  ;;  %v7763_v12 = vld [vmem:[%s10646_s1 + $0x804] ss:$16 sps:$4 sm:$0xff]  }
 0x147   : > { %3206 = vmatprep.mubr.bf16.mxu0 %v9221_v28  ;;  %3978 = vmatprep.mubr.bf16.mxu1 %v8805_v50  ;;  %v7766_v50 = vld [vmem:[%s10646_s1 + $0x60c] ss:$16 sps:$4 sm:$0xff]  }
 0x148   : > { %3316 = vmatpush1.bf16.msra.mxu0 %v7749_v14  ;;  %4088 = vmatpush1.bf16.msra.mxu1 %v7752_v43  ;;  %v9261_v43 = vpack.c.bf16 %v460_v7, %v450_v4  ;;  %v470_v4 = vld [vmem:[%s8112_s30 + $0x5c0] sm:$0xff]  ;;  %v480_v7 = vld [vmem:[%s8112_s30 + $0x610] sm:$0xff] }
 0x149   : > { %v9251_v47 = vpop.f32.mrb[20].mxu1  ;;  %3317 = vmatprep.subr.bf16.mxu0 %v7757_v8  ;;  %4089 = vmatprep.subr.bf16.mxu1 %v7760_v21  ;;  %v9265_v8 = vpack.c.bf16 %v481_v49, %v471_v22  ;;  %v491_v22 = vld [vmem:[%s8112_s30 + $0x668] sm:$0xff]  ;;  %v501_v49 = vld [vmem:[%s8112_s30 + $0x6b8] sm:$0xff] }
 0x14a   : > { %v9259_v14 = vpop.f32.mrb[21].mxu1 }
 0x14b   : > { %10655 = vst [vmem:[#allocation4_spill] sm:$0xff] %v9259_v14  ;;  %v9263_v54 = vpop.f32.mrb[22].mxu1 }
 0x14c   : > { %10656 = vst [vmem:[#allocation5_spill] sm:$0xff] %v9263_v54  ;;  %v9267_v21 = vpop.f32.mrb[23].mxu1  ;;  %3318 = vmatpush1.bf16.msra.mxu0 %v7755_v17  ;;  %4090 = vmatpush1.bf16.msra.mxu1 %v7758_v56  ;;  %v343_v54 = vld [vmem:[%s8112_s30 + $0x1c8] sm:$0xff] }
 0x14d   : > { %10657 = vst [vmem:[#allocation6_spill] sm:$0xff] %v9267_v21  ;;  %3480 = vmatprep.subr.bf16.mxu0 %v7763_v12  ;;  %4252 = vmatprep.subr.bf16.mxu1 %v7766_v50  ;;  %v9281_v12 = vpack.c.bf16 %v480_v7, %v470_v4  ;;  %v500_v4 = vld [vmem:[%s8112_s30 + $0x6b0] sm:$0xff]  ;;  %v511_v7 = vld [vmem:[%s8112_s30 + $0x708] sm:$0xff] }
 0x14e   : > { %3207 = vmatmul.mubr.bf16.gmra.mrb[32].mxu0 %v9261_v43  ;;  %3979 = vmatmul.mubr.bf16.gmra.mrb[64].mxu1 %v8833_v34  ;;  %v9285_v34 = vpack.c.bf16 %v501_v49, %v491_v22 }
 0x14f   : > { %3216 = vmatprep.mubr.bf16.mxu0 %v9265_v8  ;;  %3988 = vmatprep.mubr.bf16.mxu1 %v8835_v6  ;;  %v490_v6 = vld [vmem:[%s8112_s30 + $0x660] sm:$0xff] }
 0x151   : > { %v9277_v17 = vpop.f32.mrb[24].mxu1 }
 0x152   : > { %10658 = vst [vmem:[#allocation7_spill] sm:$0xff] %v9277_v17  ;;  %v9279_v56 = vpop.f32.mrb[25].mxu1 }
 0x153   : > { %10659 = vst [vmem:[#allocation8_spill] sm:$0xff] %v9279_v56  ;;  %v9283_v50 = vpop.f32.mrb[26].mxu1 }
 0x154   : > { %10660 = vst [vmem:[#allocation9_spill] sm:$0xff] %v9283_v50  ;;  %v9287_v21 = vpop.f32.mrb[27].mxu1  ;;  %v521_v50 = vld [vmem:[%s8112_s30 + $0x758] sm:$0xff] }
 0x155   : > { %10661 = vst [vmem:[#allocation10_spill] sm:$0xff] %v9287_v21  ;;  %v9301_v21 = vpack.c.bf16 %v500_v4, %v490_v6  ;;  %v520_v6 = vld [vmem:[%s8112_s30 + $0x750] sm:$0xff]  ;;  %v531_v4 = vld [vmem:[%s8112_s30 + $0x7a8] sm:$0xff] }
 0x156   : > { %3217 = vmatmul.mubr.bf16.gmra.mrb[36].mxu0 %v9281_v12  ;;  %3989 = vmatmul.mubr.bf16.gmra.mrb[68].mxu1 %v8845_v33  ;;  %v9305_v33 = vpack.c.bf16 %v521_v50, %v511_v7 }
 0x157   : > { %3226 = vmatprep.mubr.bf16.mxu0 %v9285_v34  ;;  %3998 = vmatprep.mubr.bf16.mxu1 %v8847_v44  ;;  %v510_v44 = vld [vmem:[%s8112_s30 + $0x700] sm:$0xff] }
 0x158   : > { %v9317_v50 = vpack.c.bf16 %v520_v6, %v510_v44  ;;  %v571_v6 = vld [vmem:[%s8112_s30 + $0x8e8] sm:$0xff] }
 0x159   : > { %v9297_v22 = vpop.f32.mrb[28].mxu1 }
 0x15a   : > { %10662 = vst [vmem:[#allocation11_spill] sm:$0xff] %v9297_v22  ;;  %v9299_v49 = vpop.f32.mrb[29].mxu1 }
 0x15b   : > { %10663 = vst [vmem:[#allocation12_spill] sm:$0xff] %v9299_v49  ;;  %v9303_v56 = vpop.f32.mrb[30].mxu1  ;;  %v561_v49 = vld [vmem:[%s8112_s30 + $0x898] sm:$0xff] }
 0x15c   : > { %10664 = vst [vmem:[#allocation13_spill] sm:$0xff] %v9303_v56  ;;  %v9307_v17 = vpop.f32.mrb[31].mxu1  ;;  %v541_v56 = vld [vmem:[%s8112_s30 + $0x7f8] sm:$0xff] }
 0x15d   : > { %10665 = vst [vmem:[#allocation14_spill] sm:$0xff] %v9307_v17  ;;  %v9319_v7 = vpack.c.bf16 %v541_v56, %v531_v4  ;;  %v551_v17 = vld [vmem:[%s8112_s30 + $0x848] sm:$0xff]  ;;  %v581_v4 = vld [vmem:[%s8112_s30 + $0x938] sm:$0xff] }
 0x15e   : > { %3227 = vmatmul.mubr.bf16.gmra.mrb[40].mxu0 %v9301_v21  ;;  %3999 = vmatmul.mubr.bf16.gmra.mrb[72].mxu1 %v8857_v26  ;;  %v530_v26 = vld [vmem:[%s8112_s30 + $0x7a0] sm:$0xff]  ;;  %v9331_v56 = vpack.c.bf16 %v561_v49, %v551_v17  ;;  %v9343_v17 = vpack.c.bf16 %v581_v4, %v571_v6  ;;  %v591_v49 = vld [vmem:[%s8112_s30 + $0x988] sm:$0xff]  ;;  %v293_v6 = vld [vmem:[%s8112_s30 + $0x38] sm:$0xff] }
 0x15f   : > { %3236 = vmatprep.mubr.bf16.mxu0 %v9305_v33  ;;  %4008 = vmatprep.mubr.bf16.mxu1 %v8859_v27  ;;  %v540_v27 = vld [vmem:[%s8112_s30 + $0x7f0] sm:$0xff]  ;;  %v303_v4 = vld [vmem:[%s8112_s30 + $0x88] sm:$0xff] }
 0x160   : > { %v9329_v44 = vpack.c.bf16 %v540_v27, %v530_v26  ;;  %v601_v27 = vld [vmem:[%s8112_s30 + $0x9d8] sm:$0xff] }
 0x166   : > { %3237 = vmatmul.mubr.bf16.gmra.mrb[44].mxu0 %v9317_v50  ;;  %4009 = vmatmul.mubr.bf16.gmra.mrb[76].mxu1 %v8869_v32  ;;  %v550_v32 = vld [vmem:[%s8112_s30 + $0x840] sm:$0xff] }
 0x167   : > { %3246 = vmatprep.mubr.bf16.mxu0 %v9319_v7  ;;  %4018 = vmatprep.mubr.bf16.mxu1 %v8871_v37  ;;  %v560_v37 = vld [vmem:[%s8112_s30 + $0x890] sm:$0xff] }
 0x168   : > { %v9341_v26 = vpack.c.bf16 %v560_v37, %v550_v32  ;;  %v9355_v37 = vpack.c.bf16 %v601_v27, %v591_v49  ;;  %v313_v49 = vld [vmem:[%s8112_s30 + $0xd8] sm:$0xff]  ;;  %v323_v27 = vld [vmem:[%s8112_s30 + $0x128] sm:$0xff] }
 0x16e   : > { %3247 = vmatmul.mubr.bf16.gmra.mrb[48].mxu0 %v9329_v44  ;;  %4019 = vmatmul.mubr.bf16.gmra.mrb[80].mxu1 %v8881_v63  ;;  %v570_v63 = vld [vmem:[%s8112_s30 + $0x8e0] sm:$0xff] }
 0x16f   : > { %3256 = vmatprep.mubr.bf16.mxu0 %v9331_v56  ;;  %4028 = vmatprep.mubr.bf16.mxu1 %v8883_v1  ;;  %v580_v1 = vld [vmem:[%s8112_s30 + $0x930] sm:$0xff] }
 0x170   : > { %v9353_v32 = vpack.c.bf16 %v580_v1, %v570_v63  ;;  %v9367_v1 = vpack.c.bf16 %v303_v4, %v293_v6  ;;  %v7772_v6 = vld [vmem:[%s10646_s1 + $0x62c] ss:$16 sps:$4 sm:$0xff]   ;;  %v312_v4 = vld [vmem:[%s8112_s30 + $0xd0] sm:$0xff] }
 0x176   : > { %3257 = vmatmul.mubr.bf16.gmra.mrb[52].mxu0 %v9341_v26  ;;  %4029 = vmatmul.mubr.bf16.gmra.mrb[84].mxu1 %v8893_v51  ;;  %v590_v51 = vld [vmem:[%s8112_s30 + $0x980] sm:$0xff] }
 0x177   : > { %3266 = vmatprep.mubr.bf16.mxu0 %v9343_v17  ;;  %4038 = vmatprep.mubr.bf16.mxu1 %v8895_v52  ;;  %v600_v52 = vld [vmem:[%s8112_s30 + $0x9d0] sm:$0xff] }
 0x178   : > { %v9365_v63 = vpack.c.bf16 %v600_v52, %v590_v51  ;;  %v7761_v51 = vld [vmem:[%s10646_s1 + $0x800] ss:$16 sps:$4 sm:$0xff]   ;;  %v9385_v52 = vpack.c.bf16 %v323_v27, %v313_v49  ;;  %v7770_v49 = vld [vmem:[%s10646_s1 + $0x628] ss:$16 sps:$4 sm:$0xff]  }
 0x179   : > { %v333_v27 = vld [vmem:[%s8112_s30 + $0x178] sm:$0xff] }
 0x17a   : > { %v9415_v14 = vpack.c.bf16 %v343_v54, %v333_v27  ;;  %v7784_v54 = vld [vmem:[%s10646_s1 + $0x66c] ss:$16 sps:$4 sm:$0xff]   ;;  %v7779_v27 = vld [vmem:[%s10646_s1 + $0x860] ss:$16 sps:$4 sm:$0xff]  }
 0x17e   : > { %3267 = vmatmul.mubr.bf16.gmra.mrb[56].mxu0 %v9353_v32  ;;  %4039 = vmatmul.mubr.bf16.gmra.mrb[88].mxu1 %v8905_v60  ;;  %v292_v60 = vld [vmem:[%s8112_s30 + $0x30] sm:$0xff] }
 0x17f   : > { %3276 = vmatprep.mubr.bf16.mxu0 %v9355_v37  ;;  %4048 = vmatprep.mubr.bf16.mxu1 %v8907_v61  ;;  %v302_v61 = vld [vmem:[%s8112_s30 + $0x80] sm:$0xff] }
 0x180   : > { %v9377_v22 = vpack.c.bf16 %v302_v61, %v292_v60  ;;  %v322_v60 = vld [vmem:[%s8112_s30 + $0x120] sm:$0xff] }
 0x181   : > { %v7767_v61 = vld [vmem:[%s10646_s1 + $0x820] ss:$16 sps:$4 sm:$0xff]  }
 0x186   : > { %3277 = vmatmul.mubr.bf16.gmra.mrb[60].mxu0 %v9365_v63  ;;  %4049 = vmatmul.mubr.bf16.gmra.mrb[92].mxu1 %v8917_v29  ;;  %v7764_v29 = vld [vmem:[%s10646_s1 + $0x608] ss:$16 sps:$4 sm:$0xff]  }
 0x187   : > { %3319 = vmatprep.mubr.bf16.mxu0 %v9367_v1  ;;  %4091 = vmatprep.mubr.bf16.mxu1 %v8919_v23  ;;  %v7769_v23 = vld [vmem:[%s10646_s1 + $0x824] ss:$16 sps:$4 sm:$0xff]  }
 0x18e   : > { %3320 = vmatmul.mubr.bf16.vlgmr.msra.gmra.mrb[0].mxu0 %v9377_v22  ;;  %4092 = vmatmul.mubr.bf16.vlgmr.msra.gmra.mrb[32].mxu1 %v8935_v30  ;;  %v7775_v30 = vld [vmem:[%s10646_s1 + $0x844] ss:$16 sps:$4 sm:$0xff]  }
 0x18f   : > { %3481 = vmatpush1.bf16.msra.mxu0 %v7761_v51  ;;  %4253 = vmatpush1.bf16.msra.mxu1 %v7764_v29  ;;  %v7778_v51 = vld [vmem:[%s10646_s1 + $0x64c] ss:$16 sps:$4 sm:$0xff]   ;;  %v9413_v29 = vpack.c.bf16 %v322_v60, %v312_v4  ;;  %v332_v4 = vld [vmem:[%s8112_s30 + $0x170] sm:$0xff]  ;;  %v342_v60 = vld [vmem:[%s8112_s30 + $0x1c0] sm:$0xff] }
 0x190   : > { %3329 = vmatprep.mubr.bf16.mxu0 %v9385_v52  ;;  %4101 = vmatprep.mubr.bf16.mxu1 %v8943_v45  ;;  %v7773_v45 = vld [vmem:[%s10646_s1 + $0x840] ss:$16 sps:$4 sm:$0xff]  }
 0x191   : > { %3482 = vmatprep.subr.bf16.mxu0 %v7769_v23  ;;  %4254 = vmatprep.subr.bf16.mxu1 %v7772_v6  ;;  %v7776_v23 = vld [vmem:[%s10646_s1 + $0x648] ss:$16 sps:$4 sm:$0xff]   ;;  %v7781_v6 = vld [vmem:[%s10646_s1 + $0x864] ss:$16 sps:$4 sm:$0xff]  }
 0x193   : > { %3483 = vmatpush1.bf16.msra.mxu0 %v7767_v61  ;;  %4255 = vmatpush1.bf16.msra.mxu1 %v7770_v49  ;;  %v353_v61 = vld [vmem:[%s8112_s30 + $0x218] sm:$0xff]  ;;  %v363_v49 = vld [vmem:[%s8112_s30 + $0x268] sm:$0xff] }
 0x194   : > { %3484 = vmatprep.subr.bf16.mxu0 %v7775_v30  ;;  %4256 = vmatprep.subr.bf16.mxu1 %v7778_v51  ;;  %v7782_v30 = vld [vmem:[%s10646_s1 + $0x668] ss:$16 sps:$4 sm:$0xff]   ;;  %v9449_v51 = vpack.c.bf16 %v342_v60, %v332_v4  ;;  %v7796_v4 = vld [vmem:[%s10646_s1 + $0x6ac] ss:$16 sps:$4 sm:$0xff]   ;;  %v352_v60 = vld [vmem:[%s8112_s30 + $0x210] sm:$0xff] }
 0x196   : > { %3330 = vmatmul.mubr.bf16.gmra.mrb[4].mxu0 %v9413_v29  ;;  %4102 = vmatmul.mubr.bf16.gmra.mrb[36].mxu1 %v8965_v35  ;;  %v7787_v35 = vld [vmem:[%s10646_s1 + $0x884] ss:$16 sps:$4 sm:$0xff]  }
 0x197   : > { %3339 = vmatprep.mubr.bf16.mxu0 %v9415_v14  ;;  %4111 = vmatprep.mubr.bf16.mxu1 %v8973_v39  ;;  %v7790_v39 = vld [vmem:[%s10646_s1 + $0x68c] ss:$16 sps:$4 sm:$0xff]  }
 0x198   : > { %3485 = vmatpush1.bf16.msra.mxu0 %v7773_v45  ;;  %4257 = vmatpush1.bf16.msra.mxu1 %v7776_v23  ;;  %v9451_v45 = vpack.c.bf16 %v363_v49, %v353_v61  ;;  %v7785_v23 = vld [vmem:[%s10646_s1 + $0x880] ss:$16 sps:$4 sm:$0xff]   ;;  %v373_v49 = vld [vmem:[%s8112_s30 + $0x2b8] sm:$0xff] }
 0x199   : > { %3486 = vmatprep.subr.bf16.mxu0 %v7781_v6  ;;  %4258 = vmatprep.subr.bf16.mxu1 %v7784_v54  ;;  %v7788_v6 = vld [vmem:[%s10646_s1 + $0x688] ss:$16 sps:$4 sm:$0xff]   ;;  %v7793_v54 = vld [vmem:[%s10646_s1 + $0x8a4] ss:$16 sps:$4 sm:$0xff]  }
 0x19a   : > { %v362_v61 = vld [vmem:[%s8112_s30 + $0x260] sm:$0xff] }
 0x19c   : > { %3487 = vmatpush1.bf16.msra.mxu0 %v7779_v27  ;;  %4259 = vmatpush1.bf16.msra.mxu1 %v7782_v30  ;;  %v383_v27 = vld [vmem:[%s8112_s30 + $0x308] sm:$0xff]  ;;  %v7791_v30 = vld [vmem:[%s10646_s1 + $0x8a0] ss:$16 sps:$4 sm:$0xff]  }
 0x19d   : > { %3488 = vmatprep.subr.bf16.mxu0 %v7787_v35  ;;  %4260 = vmatprep.subr.bf16.mxu1 %v7790_v39  ;;  %v7794_v35 = vld [vmem:[%s10646_s1 + $0x6a8] ss:$16 sps:$4 sm:$0xff]   ;;  %v9485_v39 = vpack.c.bf16 %v362_v61, %v352_v60  ;;  %v7808_v60 = vld [vmem:[%s10646_s1 + $0x6ec] ss:$16 sps:$4 sm:$0xff]   ;;  %v372_v61 = vld [vmem:[%s8112_s30 + $0x2b0] sm:$0xff] }
 0x19e   : > { %3340 = vmatmul.mubr.bf16.gmra.mrb[8].mxu0 %v9449_v51  ;;  %4112 = vmatmul.mubr.bf16.gmra.mrb[40].mxu1 %v9001_v36  ;;  %v7799_v36 = vld [vmem:[%s10646_s1 + $0x8c4] ss:$16 sps:$4 sm:$0xff]  }
 0x19f   : > { %3349 = vmatprep.mubr.bf16.mxu0 %v9451_v45  ;;  %4121 = vmatprep.mubr.bf16.mxu1 %v9009_v3  ;;  %v7802_v3 = vld [vmem:[%s10646_s1 + $0x6cc] ss:$16 sps:$4 sm:$0xff]  }
 0x1a0   : > { %3489 = vmatpush1.bf16.msra.mxu0 %v7785_v23  ;;  %4261 = vmatpush1.bf16.msra.mxu1 %v7788_v6  ;;  %v9487_v23 = vpack.c.bf16 %v383_v27, %v373_v49  ;;  %v7797_v6 = vld [vmem:[%s10646_s1 + $0x8c0] ss:$16 sps:$4 sm:$0xff]   ;;  %v393_v27 = vld [vmem:[%s8112_s30 + $0x358] sm:$0xff] }
 0x1a1   : > { %3490 = vmatprep.subr.bf16.mxu0 %v7793_v54  ;;  %4262 = vmatprep.subr.bf16.mxu1 %v7796_v4  ;;  %v7800_v54 = vld [vmem:[%s10646_s1 + $0x6c8] ss:$16 sps:$4 sm:$0xff]   ;;  %v7805_v4 = vld [vmem:[%s10646_s1 + $0x8e4] ss:$16 sps:$4 sm:$0xff]  }
 0x1a2   : > { %v382_v49 = vld [vmem:[%s8112_s30 + $0x300] sm:$0xff] }
 0x1a4   : > { %3491 = vmatpush1.bf16.msra.mxu0 %v7791_v30  ;;  %4263 = vmatpush1.bf16.msra.mxu1 %v7794_v35  ;;  %v403_v30 = vld [vmem:[%s8112_s30 + $0x3a8] sm:$0xff]  ;;  %v7803_v35 = vld [vmem:[%s10646_s1 + $0x8e0] ss:$16 sps:$4 sm:$0xff]  }
 0x1a5   : > { %3492 = vmatprep.subr.bf16.mxu0 %v7799_v36  ;;  %4264 = vmatprep.subr.bf16.mxu1 %v7802_v3  ;;  %v7806_v36 = vld [vmem:[%s10646_s1 + $0x6e8] ss:$16 sps:$4 sm:$0xff]   ;;  %v9521_v3 = vpack.c.bf16 %v382_v49, %v372_v61  ;;  %v7820_v61 = vld [vmem:[%s10646_s1 + $0x72c] ss:$16 sps:$4 sm:$0xff]   ;;  %v392_v49 = vld [vmem:[%s8112_s30 + $0x350] sm:$0xff] }
 0x1a6   : > { %3350 = vmatmul.mubr.bf16.gmra.mrb[12].mxu0 %v9485_v39  ;;  %4122 = vmatmul.mubr.bf16.gmra.mrb[44].mxu1 %v9041_v2  ;;  %v7811_v2 = vld [vmem:[%s10646_s1 + $0x904] ss:$16 sps:$4 sm:$0xff]  }
 0x1a7   : > { %3359 = vmatprep.mubr.bf16.mxu0 %v9487_v23  ;;  %4131 = vmatprep.mubr.bf16.mxu1 %v9051_v55  ;;  %v7814_v55 = vld [vmem:[%s10646_s1 + $0x70c] ss:$16 sps:$4 sm:$0xff]  }
 0x1a8   : > { %3493 = vmatpush1.bf16.msra.mxu0 %v7797_v6  ;;  %4265 = vmatpush1.bf16.msra.mxu1 %v7800_v54  ;;  %v9523_v6 = vpack.c.bf16 %v403_v30, %v393_v27  ;;  %v7809_v54 = vld [vmem:[%s10646_s1 + $0x900] ss:$16 sps:$4 sm:$0xff]   ;;  %v413_v30 = vld [vmem:[%s8112_s30 + $0x3f8] sm:$0xff] }
 0x1a9   : > { %3494 = vmatprep.subr.bf16.mxu0 %v7805_v4  ;;  %4266 = vmatprep.subr.bf16.mxu1 %v7808_v60  ;;  %v7812_v4 = vld [vmem:[%s10646_s1 + $0x708] ss:$16 sps:$4 sm:$0xff]   ;;  %v7817_v60 = vld [vmem:[%s10646_s1 + $0x924] ss:$16 sps:$4 sm:$0xff]  }
 0x1aa   : > { %v402_v27 = vld [vmem:[%s8112_s30 + $0x3a0] sm:$0xff] }
 0x1ac   : > { %3495 = vmatpush1.bf16.msra.mxu0 %v7803_v35  ;;  %4267 = vmatpush1.bf16.msra.mxu1 %v7806_v36  ;;  %v423_v35 = vld [vmem:[%s8112_s30 + $0x448] sm:$0xff]  ;;  %v7815_v36 = vld [vmem:[%s10646_s1 + $0x920] ss:$16 sps:$4 sm:$0xff]  }
 0x1ad   : > { %3496 = vmatprep.subr.bf16.mxu0 %v7811_v2  ;;  %4268 = vmatprep.subr.bf16.mxu1 %v7814_v55  ;;  %v7818_v2 = vld [vmem:[%s10646_s1 + $0x728] ss:$16 sps:$4 sm:$0xff]   ;;  %v9557_v55 = vpack.c.bf16 %v402_v27, %v392_v49  ;;  %v7832_v49 = vld [vmem:[%s10646_s1 + $0x76c] ss:$16 sps:$4 sm:$0xff]   ;;  %v412_v27 = vld [vmem:[%s8112_s30 + $0x3f0] sm:$0xff] }
 0x1ae   : > { %3360 = vmatmul.mubr.bf16.gmra.mrb[16].mxu0 %v9521_v3  ;;  %4132 = vmatmul.mubr.bf16.gmra.mrb[48].mxu1 %v9085_v18  ;;  %v7823_v18 = vld [vmem:[%s10646_s1 + $0x944] ss:$16 sps:$4 sm:$0xff]  }
 0x1af   : > { %3369 = vmatprep.mubr.bf16.mxu0 %v9523_v6  ;;  %4141 = vmatprep.mubr.bf16.mxu1 %v9095_v0  ;;  %v7826_v0 = vld [vmem:[%s10646_s1 + $0x74c] ss:$16 sps:$4 sm:$0xff]  }
 0x1b0   : > { %3497 = vmatpush1.bf16.msra.mxu0 %v7809_v54  ;;  %4269 = vmatpush1.bf16.msra.mxu1 %v7812_v4  ;;  %v9559_v54 = vpack.c.bf16 %v423_v35, %v413_v30  ;;  %v7821_v4 = vld [vmem:[%s10646_s1 + $0x940] ss:$16 sps:$4 sm:$0xff]   ;;  %v433_v35 = vld [vmem:[%s8112_s30 + $0x498] sm:$0xff] }
 0x1b1   : > { %3498 = vmatprep.subr.bf16.mxu0 %v7817_v60  ;;  %4270 = vmatprep.subr.bf16.mxu1 %v7820_v61  ;;  %v7824_v60 = vld [vmem:[%s10646_s1 + $0x748] ss:$16 sps:$4 sm:$0xff]   ;;  %v7829_v61 = vld [vmem:[%s10646_s1 + $0x964] ss:$16 sps:$4 sm:$0xff]  }
 0x1b2   : > { %v422_v30 = vld [vmem:[%s8112_s30 + $0x440] sm:$0xff] }
 0x1b4   : > { %3499 = vmatpush1.bf16.msra.mxu0 %v7815_v36  ;;  %4271 = vmatpush1.bf16.msra.mxu1 %v7818_v2  ;;  %v443_v36 = vld [vmem:[%s8112_s30 + $0x4e8] sm:$0xff]  ;;  %v7827_v2 = vld [vmem:[%s10646_s1 + $0x960] ss:$16 sps:$4 sm:$0xff]  }
 0x1b5   : > { %3500 = vmatprep.subr.bf16.mxu0 %v7823_v18  ;;  %4272 = vmatprep.subr.bf16.mxu1 %v7826_v0  ;;  %v7830_v18 = vld [vmem:[%s10646_s1 + $0x768] ss:$16 sps:$4 sm:$0xff]   ;;  %v9593_v0 = vpack.c.bf16 %v422_v30, %v412_v27  ;;  %v7844_v27 = vld [vmem:[%s10646_s1 + $0x7ac] ss:$16 sps:$4 sm:$0xff]   ;;  %v432_v30 = vld [vmem:[%s8112_s30 + $0x490] sm:$0xff] }
 0x1b6   : > { %3370 = vmatmul.mubr.bf16.gmra.mrb[20].mxu0 %v9557_v55  ;;  %4142 = vmatmul.mubr.bf16.gmra.mrb[52].mxu1 %v9129_v24  ;;  %v7835_v24 = vld [vmem:[%s10646_s1 + $0x984] ss:$16 sps:$4 sm:$0xff]  }
 0x1b7   : > { %3379 = vmatprep.mubr.bf16.mxu0 %v9559_v54  ;;  %4151 = vmatprep.mubr.bf16.mxu1 %v9133_v48  ;;  %v7838_v48 = vld [vmem:[%s10646_s1 + $0x78c] ss:$16 sps:$4 sm:$0xff]  }
 0x1b8   : > { %3501 = vmatpush1.bf16.msra.mxu0 %v7821_v4  ;;  %4273 = vmatpush1.bf16.msra.mxu1 %v7824_v60  ;;  %v9595_v4 = vpack.c.bf16 %v443_v36, %v433_v35  ;;  %v7833_v60 = vld [vmem:[%s10646_s1 + $0x980] ss:$16 sps:$4 sm:$0xff]   ;;  %v453_v36 = vld [vmem:[%s8112_s30 + $0x538] sm:$0xff] }
 0x1b9   : > { %3502 = vmatprep.subr.bf16.mxu0 %v7829_v61  ;;  %4274 = vmatprep.subr.bf16.mxu1 %v7832_v49  ;;  %v7836_v61 = vld [vmem:[%s10646_s1 + $0x788] ss:$16 sps:$4 sm:$0xff]   ;;  %v7841_v49 = vld [vmem:[%s10646_s1 + $0x9a4] ss:$16 sps:$4 sm:$0xff]  }
 0x1ba   : > { %v442_v35 = vld [vmem:[%s8112_s30 + $0x4e0] sm:$0xff] }
 0x1bc   : > { %3503 = vmatpush1.bf16.msra.mxu0 %v7827_v2  ;;  %4275 = vmatpush1.bf16.msra.mxu1 %v7830_v18  ;;  %v463_v2 = vld [vmem:[%s8112_s30 + $0x588] sm:$0xff]  ;;  %v7839_v18 = vld [vmem:[%s10646_s1 + $0x9a0] ss:$16 sps:$4 sm:$0xff]  }
 0x1bd   : > { %3504 = vmatprep.subr.bf16.mxu0 %v7835_v24  ;;  %4276 = vmatprep.subr.bf16.mxu1 %v7838_v48  ;;  %v7842_v24 = vld [vmem:[%s10646_s1 + $0x7a8] ss:$16 sps:$4 sm:$0xff]   ;;  %v9629_v48 = vpack.c.bf16 %v442_v35, %v432_v30  ;;  %v7856_v30 = vld [vmem:[%s10646_s1 + $0x7ec] ss:$16 sps:$4 sm:$0xff]   ;;  %v452_v35 = vld [vmem:[%s8112_s30 + $0x530] sm:$0xff] }
 0x1be   : > { %3380 = vmatmul.mubr.bf16.gmra.mrb[24].mxu0 %v9593_v0  ;;  %4152 = vmatmul.mubr.bf16.gmra.mrb[56].mxu1 %v9173_v41  ;;  %v7847_v41 = vld [vmem:[%s10646_s1 + $0x9c4] ss:$16 sps:$4 sm:$0xff]  }
 0x1bf   : > { %3389 = vmatprep.mubr.bf16.mxu0 %v9595_v4  ;;  %4161 = vmatprep.mubr.bf16.mxu1 %v9177_v40  ;;  %v7850_v40 = vld [vmem:[%s10646_s1 + $0x7cc] ss:$16 sps:$4 sm:$0xff]  }
 0x1c0   : > { %3505 = vmatpush1.bf16.msra.mxu0 %v7833_v60  ;;  %4277 = vmatpush1.bf16.msra.mxu1 %v7836_v61  ;;  %v9631_v60 = vpack.c.bf16 %v463_v2, %v453_v36  ;;  %v7845_v61 = vld [vmem:[%s10646_s1 + $0x9c0] ss:$16 sps:$4 sm:$0xff]   ;;  %v473_v2 = vld [vmem:[%s8112_s30 + $0x5d8] sm:$0xff] }
 0x1c1   : > { %3506 = vmatprep.subr.bf16.mxu0 %v7841_v49  ;;  %4278 = vmatprep.subr.bf16.mxu1 %v7844_v27  ;;  %v7848_v49 = vld [vmem:[%s10646_s1 + $0x7c8] ss:$16 sps:$4 sm:$0xff]   ;;  %v7853_v27 = vld [vmem:[%s10646_s1 + $0x9e4] ss:$16 sps:$4 sm:$0xff]  }
 0x1c2   : > { %v462_v36 = vld [vmem:[%s8112_s30 + $0x580] sm:$0xff] }
 0x1c4   : > { %3507 = vmatpush1.bf16.msra.mxu0 %v7839_v18  ;;  %4279 = vmatpush1.bf16.msra.mxu1 %v7842_v24  ;;  %v483_v18 = vld [vmem:[%s8112_s30 + $0x628] sm:$0xff]  ;;  %v7851_v24 = vld [vmem:[%s10646_s1 + $0x9e0] ss:$16 sps:$4 sm:$0xff]  }
 0x1c5   : > { %3508 = vmatprep.subr.bf16.mxu0 %v7847_v41  ;;  %4280 = vmatprep.subr.bf16.mxu1 %v7850_v40  ;;  %v9662_v41 = vpack.c.bf16 %v462_v36, %v452_v35  ;;  %v9664_v40 = vpack.c.bf16 %v483_v18, %v473_v2  ;;  %v513_v2 = vld [vmem:[%s8112_s30 + $0x718] sm:$0xff]  ;;  %v523_v18 = vld [vmem:[%s8112_s30 + $0x768] sm:$0xff] }
 0x1c6   : > { %3390 = vmatmul.mubr.bf16.gmra.mrb[28].mxu0 %v9629_v48  ;;  %4162 = vmatmul.mubr.bf16.gmra.mrb[60].mxu1 %v9217_v53  ;;  %v7854_v53 = vld [vmem:[%s10646_s1 + $0x7e8] ss:$16 sps:$4 sm:$0xff]  }
 0x1c7   : > { %3399 = vmatprep.mubr.bf16.mxu0 %v9631_v60  ;;  %4171 = vmatprep.mubr.bf16.mxu1 %v9221_v28  ;;  %v7859_v28 = vld [vmem:[%s10646_s1 + $0x80c] ss:$16 sps:$4 sm:$0xff]  }
 0x1c8   : > { %3509 = vmatpush1.bf16.msra.mxu0 %v7845_v61  ;;  %4281 = vmatpush1.bf16.msra.mxu1 %v7848_v49  ;;  %v472_v61 = vld [vmem:[%s8112_s30 + $0x5d0] sm:$0xff]  ;;  %v482_v49 = vld [vmem:[%s8112_s30 + $0x620] sm:$0xff] }
 0x1c9   : > { %3510 = vmatprep.subr.bf16.mxu0 %v7853_v27  ;;  %4282 = vmatprep.subr.bf16.mxu1 %v7856_v30  ;;  %v493_v27 = vld [vmem:[%s8112_s30 + $0x678] sm:$0xff]  ;;  %v503_v30 = vld [vmem:[%s8112_s30 + $0x6c8] sm:$0xff]  ;;  %v9674_v35 = vpack.c.bf16 %v482_v49, %v472_v61 }
 0x1ca   : > { %v9676_v36 = vpack.c.bf16 %v503_v30, %v493_v27  ;;  %v543_v61 = vld [vmem:[%s8112_s30 + $0x808] sm:$0xff] }
 0x1cb   : > { %v7895_v30 = vld [vmem:[%s10648_s3 + $0x4] ss:$8 sps:$4 sm:$0xff]  }
 0x1cc   : > { %3511 = vmatpush1.bf16.msra.mxu0 %v7851_v24  ;;  %4283 = vmatpush1.bf16.msra.mxu1 %v7854_v53  ;;  %v9688_v53 = vpack.c.bf16 %v523_v18, %v513_v2  ;;  %v562_v18 = vld [vmem:[%s8112_s30 + $0x8a0] sm:$0xff] }
 0x1cd   : > { %4445 = vmatprep.subr.bf16.mxu1 %v7859_v28  ;;  %v533_v28 = vld [vmem:[%s8112_s30 + $0x7b8] sm:$0xff]  ;;  %5226 = vmatprep.subr.bf16.mxu0 %v7895_v30 }
 0x1ce   : > { %3400 = vmatmul.mubr.bf16.gmra.mrb[32].mxu0 %v9662_v41  ;;  %4172 = vmatmul.mubr.bf16.gmra.mrb[64].mxu1 %v9261_v43  ;;  %v492_v43 = vld [vmem:[%s8112_s30 + $0x670] sm:$0xff]  ;;  %v9700_v27 = vpack.c.bf16 %v543_v61, %v533_v28 }
 0x1cf   : > { %3409 = vmatprep.mubr.bf16.mxu0 %v9664_v40  ;;  %4181 = vmatprep.mubr.bf16.mxu1 %v9265_v8  ;;  %v502_v8 = vld [vmem:[%s8112_s30 + $0x6c0] sm:$0xff] }
 0x1d0   : > { %v9686_v24 = vpack.c.bf16 %v502_v8, %v492_v43  ;;  %v553_v43 = vld [vmem:[%s8112_s30 + $0x858] sm:$0xff]  ;;  %v563_v8 = vld [vmem:[%s8112_s30 + $0x8a8] sm:$0xff] }
 0x1d6   : > { %3410 = vmatmul.mubr.bf16.gmra.mrb[36].mxu0 %v9674_v35  ;;  %4182 = vmatmul.mubr.bf16.gmra.mrb[68].mxu1 %v9281_v12  ;;  %v512_v12 = vld [vmem:[%s8112_s30 + $0x710] sm:$0xff] }
 0x1d7   : > { %3419 = vmatprep.mubr.bf16.mxu0 %v9676_v36  ;;  %4191 = vmatprep.mubr.bf16.mxu1 %v9285_v34  ;;  %v522_v34 = vld [vmem:[%s8112_s30 + $0x760] sm:$0xff] }
 0x1d8   : > { %v9698_v49 = vpack.c.bf16 %v522_v34, %v512_v12  ;;  %v573_v12 = vld [vmem:[%s8112_s30 + $0x8f8] sm:$0xff]  ;;  %v583_v34 = vld [vmem:[%s8112_s30 + $0x948] sm:$0xff] }
 0x1d9   : > { %v9727_v61 = vpack.c.bf16 %v583_v34, %v573_v12  ;;  %v315_v34 = vld [vmem:[%s8112_s30 + $0xe8] sm:$0xff] }
 0x1de   : > { %3420 = vmatmul.mubr.bf16.gmra.mrb[40].mxu0 %v9686_v24  ;;  %4192 = vmatmul.mubr.bf16.gmra.mrb[72].mxu1 %v9301_v21  ;;  %v532_v21 = vld [vmem:[%s8112_s30 + $0x7b0] sm:$0xff] }
 0x1df   : > { %3429 = vmatprep.mubr.bf16.mxu0 %v9688_v53  ;;  %4201 = vmatprep.mubr.bf16.mxu1 %v9305_v33  ;;  %v542_v33 = vld [vmem:[%s8112_s30 + $0x800] sm:$0xff] }
 0x1e0   : > { %v9713_v2 = vpack.c.bf16 %v542_v33, %v532_v21  ;;  %v593_v21 = vld [vmem:[%s8112_s30 + $0x998] sm:$0xff]  ;;  %v603_v33 = vld [vmem:[%s8112_s30 + $0x9e8] sm:$0xff] }
 0x1e6   : > { %3430 = vmatmul.mubr.bf16.gmra.mrb[44].mxu0 %v9698_v49  ;;  %4202 = vmatmul.mubr.bf16.gmra.mrb[76].mxu1 %v9317_v50  ;;  %v9715_v50 = vpack.c.bf16 %v563_v8, %v553_v43  ;;  %v9739_v43 = vpack.c.bf16 %v603_v33, %v593_v21  ;;  %v295_v8 = vld [vmem:[%s8112_s30 + $0x48] sm:$0xff] }
 0x1e7   : > { %3439 = vmatprep.mubr.bf16.mxu0 %v9700_v27  ;;  %4211 = vmatprep.mubr.bf16.mxu1 %v9319_v7  ;;  %v552_v7 = vld [vmem:[%s8112_s30 + $0x850] sm:$0xff]  ;;  %v7857_v21 = vld [vmem:[%s10646_s1 + $0x808] ss:$16 sps:$4 sm:$0xff]  }
 0x1e8   : > { %v9725_v28 = vpack.c.bf16 %v562_v18, %v552_v7  ;;  %v305_v7 = vld [vmem:[%s8112_s30 + $0x98] sm:$0xff] }
 0x1e9   : > { %v9751_v12 = vpack.c.bf16 %v305_v7, %v295_v8  ;;  %v324_v8 = vld [vmem:[%s8112_s30 + $0x130] sm:$0xff]  ;;  %v7860_v7 = vld [vmem:[%s10646_s1 + $0x828] ss:$16 sps:$4 sm:$0xff]  }
 0x1ee   : > { %3440 = vmatmul.mubr.bf16.gmra.mrb[48].mxu0 %v9713_v2  ;;  %4212 = vmatmul.mubr.bf16.gmra.mrb[80].mxu1 %v9329_v44  ;;  %v572_v44 = vld [vmem:[%s8112_s30 + $0x8f0] sm:$0xff] }
 0x1ef   : > { %3449 = vmatprep.mubr.bf16.mxu0 %v9715_v50  ;;  %4221 = vmatprep.mubr.bf16.mxu1 %v9331_v56  ;;  %v582_v56 = vld [vmem:[%s8112_s30 + $0x940] sm:$0xff] }
 0x1f0   : > { %v9737_v30 = vpack.c.bf16 %v582_v56, %v572_v44  ;;  %v325_v44 = vld [vmem:[%s8112_s30 + $0x138] sm:$0xff] }
 0x1f1   : > { %v9766_v33 = vpack.c.bf16 %v325_v44, %v315_v34  ;;  %v7899_v34 = vld [vmem:[%s10648_s3 + $0x10] ss:$8 sps:$4 sm:$0xff]  }
 0x1f6   : > { %3450 = vmatmul.mubr.bf16.gmra.mrb[52].mxu0 %v9725_v28  ;;  %4222 = vmatmul.mubr.bf16.gmra.mrb[84].mxu1 %v9341_v26  ;;  %v592_v26 = vld [vmem:[%s8112_s30 + $0x990] sm:$0xff] }
 0x1f7   : > { %3459 = vmatprep.mubr.bf16.mxu0 %v9727_v61  ;;  %4231 = vmatprep.mubr.bf16.mxu1 %v9343_v17  ;;  %v602_v17 = vld [vmem:[%s8112_s30 + $0x9e0] sm:$0xff] }
 0x1f8   : > { %v9749_v18 = vpack.c.bf16 %v602_v17, %v592_v26  ;;  %v7901_v26 = vld [vmem:[%s10648_s3 + $0x14] ss:$8 sps:$4 sm:$0xff]   ;;  %v314_v17 = vld [vmem:[%s8112_s30 + $0xe0] sm:$0xff] }
 0x1f9   : > { %v9794_v44 = vpack.c.bf16 %v324_v8, %v314_v17  ;;  %v7913_v17 = vld [vmem:[%s10648_s3 + $0x34] ss:$8 sps:$4 sm:$0xff]   ;;  %v334_v8 = vld [vmem:[%s8112_s30 + $0x180] sm:$0xff] }
 0x1fe   : > { %3460 = vmatmul.mubr.bf16.gmra.mrb[56].mxu0 %v9737_v30  ;;  %4232 = vmatmul.mubr.bf16.gmra.mrb[88].mxu1 %v9353_v32  ;;  %v294_v32 = vld [vmem:[%s8112_s30 + $0x40] sm:$0xff] }
 0x1ff   : > { %3469 = vmatprep.mubr.bf16.mxu0 %v9739_v43  ;;  %4241 = vmatprep.mubr.bf16.mxu1 %v9355_v37  ;;  %v304_v37 = vld [vmem:[%s8112_s30 + $0x90] sm:$0xff] }
 0x200   : > { %v9761_v56 = vpack.c.bf16 %v304_v37, %v294_v32  ;;  %v335_v32 = vld [vmem:[%s8112_s30 + $0x188] sm:$0xff]  ;;  %v345_v37 = vld [vmem:[%s8112_s30 + $0x1d8] sm:$0xff] }
 0x206   : > { %3470 = vmatmul.mubr.bf16.gmra.mrb[60].mxu0 %v9749_v18  ;;  %4242 = vmatmul.mubr.bf16.gmra.mrb[92].mxu1 %v9365_v63  ;;  %v7862_v63 = vld [vmem:[%s10646_s1 + $0x82c] ss:$16 sps:$4 sm:$0xff]  }
 0x207   : > { %3512 = vmatprep.mubr.bf16.mxu0 %v9751_v12  ;;  %4284 = vmatprep.mubr.bf16.mxu1 %v9367_v1  ;;  %v7893_v1 = vld [vmem:[%s10648_s3] ss:$8 sps:$4 sm:$0xff]  }
 0x20e   : > { %3513 = vmatmul.mubr.bf16.vlgmr.msra.gmra.mrb[0].mxu0 %v9761_v56  ;;  %4285 = vmatmul.mubr.bf16.vlgmr.msra.gmra.mrb[32].mxu1 %v9377_v22  ;;  %v7865_v22 = vld [vmem:[%s10646_s1 + $0x84c] ss:$16 sps:$4 sm:$0xff]  }
 0x20f   : > { %4446 = vmatpush1.bf16.msra.mxu1 %v7857_v21  ;;  %3522 = vmatprep.mubr.bf16.mxu0 %v9766_v33  ;;  %v7863_v21 = vld [vmem:[%s10646_s1 + $0x848] ss:$16 sps:$4 sm:$0xff]  }
 0x210   : > { %4294 = vmatprep.mubr.bf16.mxu1 %v9385_v52  ;;  %4447 = vmatprep.subr.bf16.mxu1 %v7862_v63  ;;  %v9796_v52 = vpack.c.bf16 %v345_v37, %v335_v32  ;;  %v7907_v63 = vld [vmem:[%s10648_s3 + $0x24] ss:$8 sps:$4 sm:$0xff]   ;;  %v365_v37 = vld [vmem:[%s8112_s30 + $0x278] sm:$0xff] }
 0x211   : > { %5227 = vmatpush1.bf16.msra.mxu0 %v7893_v1  ;;  %v7868_v1 = vld [vmem:[%s10646_s1 + $0x86c] ss:$16 sps:$4 sm:$0xff]  }
 0x212   : > { %5228 = vmatprep.subr.bf16.mxu0 %v7901_v26  ;;  %v7905_v26 = vld [vmem:[%s10648_s3 + $0x20] ss:$8 sps:$4 sm:$0xff]  }
 0x213   : > { %4448 = vmatpush1.bf16.msra.mxu1 %v7860_v7  ;;  %v344_v7 = vld [vmem:[%s8112_s30 + $0x1d0] sm:$0xff]  ;;  %v355_v32 = vld [vmem:[%s8112_s30 + $0x228] sm:$0xff] }
 0x214   : > { %4449 = vmatprep.subr.bf16.mxu1 %v7865_v22  ;;  %v7866_v22 = vld [vmem:[%s10646_s1 + $0x868] ss:$16 sps:$4 sm:$0xff]  }
 0x215   : > { %5229 = vmatpush1.bf16.msra.mxu0 %v7899_v34  ;;  %v9830_v34 = vpack.c.bf16 %v344_v7, %v334_v8  ;;  %v7922_v8 = vld [vmem:[%s10648_s3 + $0x54] ss:$8 sps:$4 sm:$0xff]   ;;  %v354_v7 = vld [vmem:[%s8112_s30 + $0x220] sm:$0xff] }
 0x216   : > { %3523 = vmatmul.mubr.bf16.gmra.mrb[4].mxu0 %v9794_v44  ;;  %4295 = vmatmul.mubr.bf16.gmra.mrb[36].mxu1 %v9413_v29  ;;  %v7871_v29 = vld [vmem:[%s10646_s1 + $0x88c] ss:$16 sps:$4 sm:$0xff]  }
 0x217   : > { %3532 = vmatprep.mubr.bf16.mxu0 %v9796_v52  ;;  %4304 = vmatprep.mubr.bf16.mxu1 %v9415_v14  ;;  %v7911_v14 = vld [vmem:[%s10648_s3 + $0x30] ss:$8 sps:$4 sm:$0xff]  }
 0x218   : > { %4450 = vmatpush1.bf16.msra.mxu1 %v7863_v21  ;;  %5230 = vmatprep.subr.bf16.mxu0 %v7907_v63  ;;  %v9832_v21 = vpack.c.bf16 %v365_v37, %v355_v32  ;;  %v7869_v63 = vld [vmem:[%s10646_s1 + $0x888] ss:$16 sps:$4 sm:$0xff]   ;;  %v364_v32 = vld [vmem:[%s8112_s30 + $0x270] sm:$0xff] }
 0x219   : > { %4451 = vmatprep.subr.bf16.mxu1 %v7868_v1  ;;  %5231 = vmatpush1.bf16.msra.mxu0 %v7905_v26  ;;  %v7919_v1 = vld [vmem:[%s10648_s3 + $0x44] ss:$8 sps:$4 sm:$0xff]  }
 0x21a   : > { %5232 = vmatprep.subr.bf16.mxu0 %v7913_v17  ;;  %v7874_v26 = vld [vmem:[%s10646_s1 + $0x8ac] ss:$16 sps:$4 sm:$0xff]   ;;  %v7917_v17 = vld [vmem:[%s10648_s3 + $0x40] ss:$8 sps:$4 sm:$0xff]  }
 0x21b   : > { %v375_v37 = vld [vmem:[%s8112_s30 + $0x2c8] sm:$0xff] }
 0x21c   : > { %4452 = vmatpush1.bf16.msra.mxu1 %v7866_v22  ;;  %v385_v22 = vld [vmem:[%s8112_s30 + $0x318] sm:$0xff] }
 0x21d   : > { %4453 = vmatprep.subr.bf16.mxu1 %v7871_v29  ;;  %5233 = vmatpush1.bf16.msra.mxu0 %v7911_v14  ;;  %v7872_v29 = vld [vmem:[%s10646_s1 + $0x8a8] ss:$16 sps:$4 sm:$0xff]   ;;  %v9866_v14 = vpack.c.bf16 %v364_v32, %v354_v7  ;;  %v7928_v7 = vld [vmem:[%s10648_s3 + $0x74] ss:$8 sps:$4 sm:$0xff]   ;;  %v374_v32 = vld [vmem:[%s8112_s30 + $0x2c0] sm:$0xff] }
 0x21e   : > { %3533 = vmatmul.mubr.bf16.gmra.mrb[8].mxu0 %v9830_v34  ;;  %4305 = vmatmul.mubr.bf16.gmra.mrb[40].mxu1 %v9449_v51  ;;  %v7877_v51 = vld [vmem:[%s10646_s1 + $0x8cc] ss:$16 sps:$4 sm:$0xff]  }
 0x21f   : > { %3542 = vmatprep.mubr.bf16.mxu0 %v9832_v21  ;;  %4314 = vmatprep.mubr.bf16.mxu1 %v9451_v45  ;;  %v7920_v45 = vld [vmem:[%s10648_s3 + $0x50] ss:$8 sps:$4 sm:$0xff]  }
 0x220   : > { %4454 = vmatpush1.bf16.msra.mxu1 %v7869_v63  ;;  %5234 = vmatprep.subr.bf16.mxu0 %v7919_v1  ;;  %v9868_v63 = vpack.c.bf16 %v385_v22, %v375_v37  ;;  %v7875_v1 = vld [vmem:[%s10646_s1 + $0x8c8] ss:$16 sps:$4 sm:$0xff]   ;;  %v384_v37 = vld [vmem:[%s8112_s30 + $0x310] sm:$0xff] }
 0x221   : > { %4455 = vmatprep.subr.bf16.mxu1 %v7874_v26  ;;  %5235 = vmatpush1.bf16.msra.mxu0 %v7917_v17  ;;  %v7925_v26 = vld [vmem:[%s10648_s3 + $0x64] ss:$8 sps:$4 sm:$0xff]  }
 0x222   : > { %5236 = vmatprep.subr.bf16.mxu0 %v7922_v8  ;;  %v7880_v17 = vld [vmem:[%s10646_s1 + $0x8ec] ss:$16 sps:$4 sm:$0xff]   ;;  %v7923_v8 = vld [vmem:[%s10648_s3 + $0x60] ss:$8 sps:$4 sm:$0xff]  }
 0x223   : > { %v395_v22 = vld [vmem:[%s8112_s30 + $0x368] sm:$0xff] }
 0x224   : > { %4456 = vmatpush1.bf16.msra.mxu1 %v7872_v29  ;;  %v405_v29 = vld [vmem:[%s8112_s30 + $0x3b8] sm:$0xff] }
 0x225   : > { %4457 = vmatprep.subr.bf16.mxu1 %v7877_v51  ;;  %5237 = vmatpush1.bf16.msra.mxu0 %v7920_v45  ;;  %v7878_v51 = vld [vmem:[%s10646_s1 + $0x8e8] ss:$16 sps:$4 sm:$0xff]   ;;  %v9902_v45 = vpack.c.bf16 %v384_v37, %v374_v32  ;;  %v7934_v32 = vld [vmem:[%s10648_s3 + $0x94] ss:$8 sps:$4 sm:$0xff]   ;;  %v394_v37 = vld [vmem:[%s8112_s30 + $0x360] sm:$0xff] }
 0x226   : > { %3543 = vmatmul.mubr.bf16.gmra.mrb[12].mxu0 %v9866_v14  ;;  %4315 = vmatmul.mubr.bf16.gmra.mrb[44].mxu1 %v9485_v39  ;;  %v7883_v39 = vld [vmem:[%s10646_s1 + $0x90c] ss:$16 sps:$4 sm:$0xff]  }
 0x227   : > { %3552 = vmatprep.mubr.bf16.mxu0 %v9868_v63  ;;  %4324 = vmatprep.mubr.bf16.mxu1 %v9487_v23  ;;  %v7926_v23 = vld [vmem:[%s10648_s3 + $0x70] ss:$8 sps:$4 sm:$0xff]  }
 0x228   : > { %4458 = vmatpush1.bf16.msra.mxu1 %v7875_v1  ;;  %5238 = vmatprep.subr.bf16.mxu0 %v7925_v26  ;;  %v9904_v1 = vpack.c.bf16 %v405_v29, %v395_v22  ;;  %v7881_v26 = vld [vmem:[%s10646_s1 + $0x908] ss:$16 sps:$4 sm:$0xff]   ;;  %v404_v22 = vld [vmem:[%s8112_s30 + $0x3b0] sm:$0xff] }
 0x229   : > { %4459 = vmatprep.subr.bf16.mxu1 %v7880_v17  ;;  %5239 = vmatpush1.bf16.msra.mxu0 %v7923_v8  ;;  %v7931_v17 = vld [vmem:[%s10648_s3 + $0x84] ss:$8 sps:$4 sm:$0xff]  }
 0x22a   : > { %5240 = vmatprep.subr.bf16.mxu0 %v7928_v7  ;;  %v7886_v8 = vld [vmem:[%s10646_s1 + $0x92c] ss:$16 sps:$4 sm:$0xff]   ;;  %v7929_v7 = vld [vmem:[%s10648_s3 + $0x80] ss:$8 sps:$4 sm:$0xff]  }
 0x22b   : > { %v415_v29 = vld [vmem:[%s8112_s30 + $0x408] sm:$0xff] }
 0x22c   : > { %4460 = vmatpush1.bf16.msra.mxu1 %v7878_v51  ;;  %v425_v51 = vld [vmem:[%s8112_s30 + $0x458] sm:$0xff] }
 0x22d   : > { %4461 = vmatprep.subr.bf16.mxu1 %v7883_v39  ;;  %5241 = vmatpush1.bf16.msra.mxu0 %v7926_v23  ;;  %v7884_v39 = vld [vmem:[%s10646_s1 + $0x928] ss:$16 sps:$4 sm:$0xff]   ;;  %v9938_v23 = vpack.c.bf16 %v404_v22, %v394_v37  ;;  %v414_v37 = vld [vmem:[%s8112_s30 + $0x400] sm:$0xff]  ;;  %v424_v22 = vld [vmem:[%s8112_s30 + $0x450] sm:$0xff] }
 0x22e   : > { %3553 = vmatmul.mubr.bf16.gmra.mrb[16].mxu0 %v9902_v45  ;;  %4325 = vmatmul.mubr.bf16.gmra.mrb[48].mxu1 %v9521_v3  ;;  %v7889_v3 = vld [vmem:[%s10646_s1 + $0x94c] ss:$16 sps:$4 sm:$0xff]  }
 0x22f   : > { %3562 = vmatprep.mubr.bf16.mxu0 %v9904_v1  ;;  %4334 = vmatprep.mubr.bf16.mxu1 %v9523_v6  ;;  %v7932_v6 = vld [vmem:[%s10648_s3 + $0x90] ss:$8 sps:$4 sm:$0xff]  }
 0x230   : > { %4462 = vmatpush1.bf16.msra.mxu1 %v7881_v26  ;;  %5242 = vmatprep.subr.bf16.mxu0 %v7931_v17  ;;  %v9940_v26 = vpack.c.bf16 %v425_v51, %v415_v29  ;;  %v7887_v17 = vld [vmem:[%s10646_s1 + $0x948] ss:$16 sps:$4 sm:$0xff]  }
 0x231   : > { %4463 = vmatprep.subr.bf16.mxu1 %v7886_v8  ;;  %5243 = vmatpush1.bf16.msra.mxu0 %v7929_v7  ;;  %v7892_v8 = vld [vmem:[%s10646_s1 + $0x96c] ss:$16 sps:$4 sm:$0xff]   ;;  %v7935_v7 = vld [vmem:[%s10648_s3 + $0xa0] ss:$8 sps:$4 sm:$0xff]  }
 0x232   : > { %5244 = vmatprep.subr.bf16.mxu0 %v7934_v32  ;;  %v7937_v32 = vld [vmem:[%s10648_s3 + $0xa4] ss:$8 sps:$4 sm:$0xff]   ;;  %v445_v51 = vld [vmem:[%s8112_s30 + $0x4f8] sm:$0xff] }
 0x233   : > { %v435_v29 = vld [vmem:[%s8112_s30 + $0x4a8] sm:$0xff] }
 0x234   : > { %4464 = vmatpush1.bf16.msra.mxu1 %v7884_v39  ;;  %v7898_v39 = vld [vmem:[%s10646_s1 + $0x98c] ss:$16 sps:$4 sm:$0xff]  }
 0x235   : > { %4465 = vmatprep.subr.bf16.mxu1 %v7889_v3  ;;  %5245 = vmatpush1.bf16.msra.mxu0 %v7932_v6  ;;  %v9970_v3 = vpack.c.bf16 %v445_v51, %v435_v29  ;;  %v7896_v6 = vld [vmem:[%s10646_s1 + $0x988] ss:$16 sps:$4 sm:$0xff]   ;;  %v7910_v51 = vld [vmem:[%s10646_s1 + $0x9cc] ss:$16 sps:$4 sm:$0xff]  }
 0x236   : > { %3563 = vmatmul.mubr.bf16.gmra.mrb[20].mxu0 %v9938_v23  ;;  %4335 = vmatmul.mubr.bf16.gmra.mrb[52].mxu1 %v9557_v55  ;;  %v7890_v55 = vld [vmem:[%s10646_s1 + $0x968] ss:$16 sps:$4 sm:$0xff]  }
 0x237   : > { %3572 = vmatprep.mubr.bf16.mxu0 %v9940_v26  ;;  %4344 = vmatprep.mubr.bf16.mxu1 %v9559_v54  ;;  %v9968_v54 = vpack.c.bf16 %v424_v22, %v414_v37  ;;  %v444_v37 = vld [vmem:[%s8112_s30 + $0x4f0] sm:$0xff]  ;;  %v455_v22 = vld [vmem:[%s8112_s30 + $0x548] sm:$0xff]  ;;  %v465_v29 = vld [vmem:[%s8112_s30 + $0x598] sm:$0xff] }
 0x238   : > { %4466 = vmatpush1.bf16.msra.mxu1 %v7887_v17  ;;  %5246 = vmatprep.subr.bf16.mxu0 %v7937_v32  ;;  %v7904_v17 = vld [vmem:[%s10646_s1 + $0x9ac] ss:$16 sps:$4 sm:$0xff]   ;;  %v434_v32 = vld [vmem:[%s8112_s30 + $0x4a0] sm:$0xff] }
 0x239   : > { %4467 = vmatprep.subr.bf16.mxu1 %v7892_v8  ;;  %5247 = vmatpush1.bf16.msra.mxu0 %v7935_v7  ;;  %v7938_v8 = vld [vmem:[%s10648_s3 + $0xb0] ss:$8 sps:$4 sm:$0xff]   ;;  %v7940_v7 = vld [vmem:[%s10648_s3 + $0xb4] ss:$8 sps:$4 sm:$0xff]  }
 0x23a   : > { %5248 = vmatprep.subr.bf16.mxu0 %v7940_v7  ;;  %v454_v7 = vld [vmem:[%s8112_s30 + $0x540] sm:$0xff] }
 0x23c   : > { %4468 = vmatpush1.bf16.msra.mxu1 %v7890_v55  ;;  %v10000_v55 = vpack.c.bf16 %v465_v29, %v455_v22  ;;  %v485_v22 = vld [vmem:[%s8112_s30 + $0x638] sm:$0xff] }
 0x23d   : > { %4469 = vmatprep.subr.bf16.mxu1 %v7898_v39  ;;  %5249 = vmatpush1.bf16.msra.mxu0 %v7938_v8  ;;  %v7908_v39 = vld [vmem:[%s10646_s1 + $0x9c8] ss:$16 sps:$4 sm:$0xff]   ;;  %v7943_v8 = vld [vmem:[%s10648_s3 + $0xc4] ss:$8 sps:$4 sm:$0xff]  }
 0x23e   : > { %3573 = vmatmul.mubr.bf16.gmra.mrb[24].mxu0 %v9968_v54  ;;  %4345 = vmatmul.mubr.bf16.gmra.mrb[56].mxu1 %v9593_v0  ;;  %v7902_v0 = vld [vmem:[%s10646_s1 + $0x9a8] ss:$16 sps:$4 sm:$0xff]  }
 0x23f   : > { %3582 = vmatprep.mubr.bf16.mxu0 %v9970_v3  ;;  %4354 = vmatprep.mubr.bf16.mxu1 %v9595_v4  ;;  %v9998_v4 = vpack.c.bf16 %v444_v37, %v434_v32  ;;  %v464_v32 = vld [vmem:[%s8112_s30 + $0x590] sm:$0xff]  ;;  %v475_v37 = vld [vmem:[%s8112_s30 + $0x5e8] sm:$0xff] }
 0x240   : > { %4470 = vmatpush1.bf16.msra.mxu1 %v7896_v6  ;;  %v7916_v6 = vld [vmem:[%s10646_s1 + $0x9ec] ss:$16 sps:$4 sm:$0xff]   ;;  %5250 = vmatprep.subr.bf16.mxu0 %v7943_v8  ;;  %v10025_v29 = vpack.c.bf16 %v464_v32, %v454_v7 }
 0x241   : > { %4471 = vmatprep.subr.bf16.mxu1 %v7904_v17  ;;  %v7941_v17 = vld [vmem:[%s10648_s3 + $0xc0] ss:$8 sps:$4 sm:$0xff]   ;;  %v7949_v32 = vld [vmem:[%s10648_s3 + $0xe4] ss:$8 sps:$4 sm:$0xff]  }
 0x242   : > { %5251 = vmatpush1.bf16.msra.mxu0 %v7941_v17  ;;  %v495_v17 = vld [vmem:[%s8112_s30 + $0x688] sm:$0xff] }
 0x244   : > { %4472 = vmatpush1.bf16.msra.mxu1 %v7902_v0  ;;  %v10027_v0 = vpack.c.bf16 %v485_v22, %v475_v37  ;;  %v494_v37 = vld [vmem:[%s8112_s30 + $0x680] sm:$0xff]  ;;  %v504_v22 = vld [vmem:[%s8112_s30 + $0x6d0] sm:$0xff] }
 0x245   : > { %4473 = vmatprep.subr.bf16.mxu1 %v7910_v51  ;;  %v7946_v51 = vld [vmem:[%s10648_s3 + $0xd4] ss:$8 sps:$4 sm:$0xff]  }
 0x246   : > { %3583 = vmatmul.mubr.bf16.gmra.mrb[28].mxu0 %v9998_v4  ;;  %4355 = vmatmul.mubr.bf16.gmra.mrb[60].mxu1 %v9629_v48  ;;  %v7914_v48 = vld [vmem:[%s10646_s1 + $0x9e8] ss:$16 sps:$4 sm:$0xff]  }
 0x247   : > { %3592 = vmatprep.mubr.bf16.mxu0 %v10000_v55  ;;  %4364 = vmatprep.mubr.bf16.mxu1 %v9631_v60  ;;  %v7944_v60 = vld [vmem:[%s10648_s3 + $0xd0] ss:$8 sps:$4 sm:$0xff]  }
 0x248   : > { %4474 = vmatpush1.bf16.msra.mxu1 %v7908_v39  ;;  %v474_v39 = vld [vmem:[%s8112_s30 + $0x5e0] sm:$0xff]  ;;  %5252 = vmatprep.subr.bf16.mxu0 %v7946_v51 }
 0x249   : > { %4475 = vmatprep.subr.bf16.mxu1 %v7916_v6  ;;  %v484_v6 = vld [vmem:[%s8112_s30 + $0x630] sm:$0xff]  ;;  %5253 = vmatpush1.bf16.msra.mxu0 %v7944_v60  ;;  %v10061_v60 = vpack.c.bf16 %v504_v22, %v494_v37  ;;  %v555_v22 = vld [vmem:[%s8112_s30 + $0x868] sm:$0xff] }
 0x24a   : > { %v10043_v8 = vpack.c.bf16 %v484_v6, %v474_v39  ;;  %5254 = vmatprep.subr.bf16.mxu0 %v7949_v32  ;;  %v524_v39 = vld [vmem:[%s8112_s30 + $0x770] sm:$0xff]  ;;  %v535_v6 = vld [vmem:[%s8112_s30 + $0x7c8] sm:$0xff] }
 0x24b   : > { %v544_v32 = vld [vmem:[%s8112_s30 + $0x810] sm:$0xff] }
 0x24c   : > { %4476 = vmatpush1.bf16.msra.mxu1 %v7914_v48  ;;  %v515_v48 = vld [vmem:[%s8112_s30 + $0x728] sm:$0xff]  ;;  %v7950_v37 = vld [vmem:[%s10648_s3 + $0xf0] ss:$8 sps:$4 sm:$0xff]  }
 0x24e   : > { %3593 = vmatmul.mubr.bf16.gmra.mrb[32].mxu0 %v10025_v29  ;;  %4365 = vmatmul.mubr.bf16.gmra.mrb[64].mxu1 %v9662_v41  ;;  %v505_v41 = vld [vmem:[%s8112_s30 + $0x6d8] sm:$0xff] }
 0x24f   : > { %3602 = vmatprep.mubr.bf16.mxu0 %v10027_v0  ;;  %4374 = vmatprep.mubr.bf16.mxu1 %v9664_v40  ;;  %v10045_v7 = vpack.c.bf16 %v505_v41, %v495_v17  ;;  %v7947_v40 = vld [vmem:[%s10648_s3 + $0xe0] ss:$8 sps:$4 sm:$0xff]   ;;  %v545_v17 = vld [vmem:[%s8112_s30 + $0x818] sm:$0xff] }
 0x250   : > { %5255 = vmatpush1.bf16.msra.mxu0 %v7947_v40  ;;  %v10075_v40 = vpack.c.bf16 %v545_v17, %v535_v6  ;;  %v585_v6 = vld [vmem:[%s8112_s30 + $0x958] sm:$0xff]  ;;  %v7955_v17 = vld [vmem:[%s10648_s3 + $0x104] ss:$8 sps:$4 sm:$0xff]  }
 0x256   : > { %3603 = vmatmul.mubr.bf16.gmra.mrb[36].mxu0 %v10043_v8  ;;  %4375 = vmatmul.mubr.bf16.gmra.mrb[68].mxu1 %v9674_v35  ;;  %v525_v35 = vld [vmem:[%s8112_s30 + $0x778] sm:$0xff] }
 0x257   : > { %3612 = vmatprep.mubr.bf16.mxu0 %v10045_v7  ;;  %4384 = vmatprep.mubr.bf16.mxu1 %v9676_v36  ;;  %v10063_v51 = vpack.c.bf16 %v525_v35, %v515_v48  ;;  %v514_v36 = vld [vmem:[%s8112_s30 + $0x720] sm:$0xff] }
 0x258   : > { %v10073_v41 = vpack.c.bf16 %v524_v39, %v514_v36  ;;  %v564_v36 = vld [vmem:[%s8112_s30 + $0x8b0] sm:$0xff]  ;;  %v575_v39 = vld [vmem:[%s8112_s30 + $0x908] sm:$0xff] }
 0x25e   : > { %3613 = vmatmul.mubr.bf16.gmra.mrb[40].mxu0 %v10061_v60  ;;  %4385 = vmatmul.mubr.bf16.gmra.mrb[72].mxu1 %v9686_v24  ;;  %v7952_v24 = vld [vmem:[%s10648_s3 + $0xf4] ss:$8 sps:$4 sm:$0xff]  }
 0x25f   : > { %3622 = vmatprep.mubr.bf16.mxu0 %v10063_v51  ;;  %4394 = vmatprep.mubr.bf16.mxu1 %v9688_v53  ;;  %v534_v53 = vld [vmem:[%s8112_s30 + $0x7c0] sm:$0xff] }
 0x260   : > { %5256 = vmatprep.subr.bf16.mxu0 %v7952_v24  ;;  %v10091_v48 = vpack.c.bf16 %v544_v32, %v534_v53  ;;  %v10108_v53 = vpack.c.bf16 %v585_v6, %v575_v39  ;;  %v595_v32 = vld [vmem:[%s8112_s30 + $0x9a8] sm:$0xff] }
 0x261   : > { %5257 = vmatpush1.bf16.msra.mxu0 %v7950_v37  ;;  %v605_v37 = vld [vmem:[%s8112_s30 + $0x9f8] sm:$0xff] }
 0x262   : > { %5419 = vmatprep.subr.bf16.mxu0 %v7955_v17  ;;  %v7956_v17 = vld [vmem:[%s10648_s3 + $0x110] ss:$8 sps:$4 sm:$0xff]  }
 0x266   : > { %3623 = vmatmul.mubr.bf16.gmra.mrb[44].mxu0 %v10073_v41  ;;  %4395 = vmatmul.mubr.bf16.gmra.mrb[76].mxu1 %v9698_v49  ;;  %v565_v49 = vld [vmem:[%s8112_s30 + $0x8b8] sm:$0xff] }
 0x267   : > { %3632 = vmatprep.mubr.bf16.mxu0 %v10075_v40  ;;  %4404 = vmatprep.mubr.bf16.mxu1 %v9700_v27  ;;  %v10093_v35 = vpack.c.bf16 %v565_v49, %v555_v22  ;;  %v554_v27 = vld [vmem:[%s8112_s30 + $0x860] sm:$0xff]  ;;  %v10120_v49 = vpack.c.bf16 %v605_v37, %v595_v32 }
 0x268   : > { %v10106_v24 = vpack.c.bf16 %v564_v36, %v554_v27  ;;  %v604_v27 = vld [vmem:[%s8112_s30 + $0x9f0] sm:$0xff]  ;;  %v7961_v32 = vld [vmem:[%s10648_s3 + $0x124] ss:$8 sps:$4 sm:$0xff]  }
 0x26e   : > { %3633 = vmatmul.mubr.bf16.gmra.mrb[48].mxu0 %v10091_v48  ;;  %4405 = vmatmul.mubr.bf16.gmra.mrb[80].mxu1 %v9713_v2  ;;  %v574_v2 = vld [vmem:[%s8112_s30 + $0x900] sm:$0xff] }
 0x26f   : > { %3642 = vmatprep.mubr.bf16.mxu0 %v10093_v35  ;;  %4414 = vmatprep.mubr.bf16.mxu1 %v9715_v50  ;;  %v584_v50 = vld [vmem:[%s8112_s30 + $0x950] sm:$0xff] }
 0x270   : > { %v10118_v22 = vpack.c.bf16 %v584_v50, %v574_v2 }
 0x276   : > { %3643 = vmatmul.mubr.bf16.gmra.mrb[52].mxu0 %v10106_v24  ;;  %4415 = vmatmul.mubr.bf16.gmra.mrb[84].mxu1 %v9725_v28  ;;  %v594_v28 = vld [vmem:[%s8112_s30 + $0x9a0] sm:$0xff] }
 0x277   : > { %3652 = vmatprep.mubr.bf16.mxu0 %v10108_v53  ;;  %4424 = vmatprep.mubr.bf16.mxu1 %v9727_v61  ;;  %v10128_v36 = vpack.c.bf16 %v604_v27, %v594_v28  ;;  %v1088_v61 = vlaneseq }
 0x27e   : > { %3653 = vmatmul.mubr.bf16.gmra.mrb[56].mxu0 %v10118_v22  ;;  %4425 = vmatmul.mubr.bf16.gmra.mrb[88].mxu1 %v9737_v30  ;;  %v10153_v30 = vshrl.u32 %v1088_v61, 7 }
 0x27f   : > { %3662 = vmatprep.mubr.bf16.mxu0 %v10120_v49  ;;  %4434 = vmatprep.mubr.bf16.mxu1 %v9739_v43 }
 0x280   : > { %v1090_v43 = vsub.s32 0, %v10153_v30 }
 0x286   : > { %3663 = vmatmul.mubr.bf16.gmra.mrb[60].mxu0 %v10128_v36  ;;  %4435 = vmatmul.mubr.bf16.gmra.mrb[92].mxu1 %v9749_v18  ;;  %v10159_v18 = vld [vmem:[%s10647_s2] sm:$0xf] }
 0x287   : > { %4477 = vmatprep.mubr.bf16.mxu1 %v9751_v12  ;;  %v1094_v12 = vsub.s32 1, %v10153_v30 }
 0x28e   : > { %4478 = vmatmul.mubr.bf16.vlgmr.msra.gmra.mrb[32].mxu1 %v9761_v56  ;;  %v10167_v56 = vrot.slane %v10159_v18, %v1090_v43 }
 0x28f   : > { %4487 = vmatprep.mubr.bf16.mxu1 %v9766_v33  ;;  %v10172_v33 = vrot.slane %v10159_v18, %v1094_v12 }
 0x296   : > { %4488 = vmatmul.mubr.bf16.gmra.mrb[36].mxu1 %v9794_v44 }
 0x297   : > { %4497 = vmatprep.mubr.bf16.mxu1 %v9796_v52 }
 0x29e   : > { %4498 = vmatmul.mubr.bf16.gmra.mrb[40].mxu1 %v9830_v34 }
 0x29f   : > { %4507 = vmatprep.mubr.bf16.mxu1 %v9832_v21 }
 0x2a6   : > { %4508 = vmatmul.mubr.bf16.gmra.mrb[44].mxu1 %v9866_v14 }
 0x2a7   : > { %4517 = vmatprep.mubr.bf16.mxu1 %v9868_v63 }
 0x2ae   : > { %4518 = vmatmul.mubr.bf16.gmra.mrb[48].mxu1 %v9902_v45 }
 0x2af   : > { %4527 = vmatprep.mubr.bf16.mxu1 %v9904_v1 }
 0x2b6   : > { %4528 = vmatmul.mubr.bf16.gmra.mrb[52].mxu1 %v9938_v23 }
 0x2b7   : > { %4537 = vmatprep.mubr.bf16.mxu1 %v9940_v26 }
 0x2be   : > { %4538 = vmatmul.mubr.bf16.gmra.mrb[56].mxu1 %v9968_v54 }
 0x2bf   : > { %4547 = vmatprep.mubr.bf16.mxu1 %v9970_v3 }
 0x2c6   : > { %4548 = vmatmul.mubr.bf16.gmra.mrb[60].mxu1 %v9998_v4 }
 0x2c7   : > { %4557 = vmatprep.mubr.bf16.mxu1 %v10000_v55 }
 0x2ce   : > { %4558 = vmatmul.mubr.bf16.gmra.mrb[64].mxu1 %v10025_v29 }
 0x2cf   : > { %4567 = vmatprep.mubr.bf16.mxu1 %v10027_v0  ;;  %v7953_v0 = vld [vmem:[%s10648_s3 + $0x100] ss:$8 sps:$4 sm:$0xff]  }
 0x2d6   : > { %4568 = vmatmul.mubr.bf16.gmra.mrb[68].mxu1 %v10043_v8 }
 0x2d7   : > { %4577 = vmatprep.mubr.bf16.mxu1 %v10045_v7 }
 0x2de   : > { %4578 = vmatmul.mubr.bf16.gmra.mrb[72].mxu1 %v10061_v60  ;;  %v7958_v60 = vld [vmem:[%s10648_s3 + $0x114] ss:$8 sps:$4 sm:$0xff]  }
 0x2df   : > { %4587 = vmatprep.mubr.bf16.mxu1 %v10063_v51 }
 0x2e1   : > { %v3514_v44 = vpop.f32.mrb[0].mxu0 }
 0x2e2   : > { %v6648_v52 = vadd.f32 %v3514_v44, %v10167_v56  ;;  %v3516_v34 = vpop.f32.mrb[1].mxu0 }
 0x2e3   : > { %v6649_v21 = vadd.f32 %v3516_v34, %v10172_v33  ;;  %v3518_v14 = vpop.f32.mrb[2].mxu0 }
 0x2e4   : > { %v6650_v63 = vadd.f32 %v3518_v14, %v10167_v56  ;;  %v3520_v45 = vpop.f32.mrb[3].mxu0  ;;  %v4638_v23 = vmax.f32 %v6648_v52, 0.0  ;;  %v7959_v52 = vld [vmem:[%s10648_s3 + $0x120] ss:$8 sps:$4 sm:$0xff]  }
 0x2e5   : > { %v6651_v1 = vadd.f32 %v3520_v45, %v10172_v33  ;;  %v4639_v54 = vmax.f32 %v6649_v21, 0.0  ;;  %v7964_v21 = vld [vmem:[%s10648_s3 + $0x134] ss:$8 sps:$4 sm:$0xff]  }
 0x2e6   : > { %v4642_v26 = vmax.f32 %v6650_v63, 0.0  ;;  %4588 = vmatmul.mubr.bf16.gmra.mrb[76].mxu1 %v10073_v41 }
 0x2e7   : > { %v4643_v3 = vmax.f32 %v6651_v1, 0.0  ;;  %4597 = vmatprep.mubr.bf16.mxu1 %v10075_v40 }
 0x2e8   : > { %v4766_v4 = vpack.c.bf16 %v4642_v26, %v4638_v23  ;;  %v7962_v23 = vld [vmem:[%s10648_s3 + $0x130] ss:$8 sps:$4 sm:$0xff]  }
 0x2e9   : > { %v4767_v55 = vpack.c.bf16 %v4643_v3, %v4639_v54  ;;  %v3524_v29 = vpop.f32.mrb[4].mxu0  ;;  %v7967_v3 = vld [vmem:[%s10648_s3 + $0x144] ss:$8 sps:$4 sm:$0xff]  }
 0x2ea   : > { %v6652_v8 = vadd.f32 %v3524_v29, %v10167_v56  ;;  %v3526_v7 = vpop.f32.mrb[5].mxu0 }
 0x2eb   : > { %v6653_v51 = vadd.f32 %v3526_v7, %v10172_v33  ;;  %v3528_v41 = vpop.f32.mrb[6].mxu0  ;;  %5258 = vmatprep.mubr.bf16.mxu0 %v4767_v55  ;;  %v7965_v7 = vld [vmem:[%s10648_s3 + $0x140] ss:$8 sps:$4 sm:$0xff]  }
 0x2ec   : > { %v6654_v40 = vadd.f32 %v3528_v41, %v10167_v56  ;;  %v3530_v39 = vpop.f32.mrb[7].mxu0  ;;  %5259 = vmatmul.mubr.bf16.vlgmr.msra.gmra.mrb[64].mxu0 %v4766_v4  ;;  %v4646_v2 = vmax.f32 %v6652_v8, 0.0 }
 0x2ed   : > { %v6655_v6 = vadd.f32 %v3530_v39, %v10172_v33  ;;  %5420 = vmatpush1.bf16.msra.mxu0 %v7953_v0  ;;  %v4647_v37 = vmax.f32 %v6653_v51, 0.0  ;;  %v7970_v51 = vld [vmem:[%s10648_s3 + $0x154] ss:$8 sps:$4 sm:$0xff]  }
 0x2ee   : > { %v4650_v50 = vmax.f32 %v6654_v40, 0.0  ;;  %4598 = vmatmul.mubr.bf16.gmra.mrb[80].mxu1 %v10091_v48  ;;  %5421 = vmatprep.subr.bf16.mxu0 %v7958_v60 }
 0x2ef   : > { %v4651_v28 = vmax.f32 %v6655_v6, 0.0  ;;  %4607 = vmatprep.mubr.bf16.mxu1 %v10093_v35 }
 0x2f0   : > { %v4770_v27 = vpack.c.bf16 %v4650_v50, %v4646_v2 }
 0x2f1   : > { %v4771_v61 = vpack.c.bf16 %v4651_v28, %v4647_v37  ;;  %v3534_v44 = vpop.f32.mrb[8].mxu0  ;;  %5422 = vmatpush1.bf16.msra.mxu0 %v7956_v17  ;;  %v7968_v17 = vld [vmem:[%s10648_s3 + $0x150] ss:$8 sps:$4 sm:$0xff]  }
 0x2f2   : > { %v6656_v34 = vadd.f32 %v3534_v44, %v10167_v56  ;;  %v3536_v48 = vpop.f32.mrb[9].mxu0  ;;  %5423 = vmatprep.subr.bf16.mxu0 %v7961_v32  ;;  %v7973_v32 = vld [vmem:[%s10648_s3 + $0x164] ss:$8 sps:$4 sm:$0xff]  }
 0x2f3   : > { %v6657_v14 = vadd.f32 %v3536_v48, %v10172_v33  ;;  %v3538_v63 = vpop.f32.mrb[10].mxu0  ;;  %5268 = vmatprep.mubr.bf16.mxu0 %v4771_v61  ;;  %v7976_v48 = vld [vmem:[%s10648_s3 + $0x174] ss:$8 sps:$4 sm:$0xff]  }
 0x2f4   : > { %v6658_v35 = vadd.f32 %v3538_v63, %v10167_v56  ;;  %v3540_v45 = vpop.f32.mrb[11].mxu0  ;;  %5269 = vmatmul.mubr.bf16.gmra.mrb[68].mxu0 %v4770_v27  ;;  %v4654_v26 = vmax.f32 %v6656_v34, 0.0 }
 0x2f5   : > { %v6659_v1 = vadd.f32 %v3540_v45, %v10172_v33  ;;  %5424 = vmatpush1.bf16.msra.mxu0 %v7959_v52  ;;  %v4655_v4 = vmax.f32 %v6657_v14, 0.0  ;;  %v7971_v52 = vld [vmem:[%s10648_s3 + $0x160] ss:$8 sps:$4 sm:$0xff]   ;;  %v7974_v45 = vld [vmem:[%s10648_s3 + $0x170] ss:$8 sps:$4 sm:$0xff]  }
 0x2f6   : > { %v4658_v54 = vmax.f32 %v6658_v35, 0.0  ;;  %4608 = vmatmul.mubr.bf16.gmra.mrb[84].mxu1 %v10106_v24  ;;  %5425 = vmatprep.subr.bf16.mxu0 %v7964_v21 }
 0x2f7   : > { %v4659_v55 = vmax.f32 %v6659_v1, 0.0  ;;  %4617 = vmatprep.mubr.bf16.mxu1 %v10108_v53 }
 0x2f8   : > { %v4774_v29 = vpack.c.bf16 %v4658_v54, %v4654_v26  ;;  %v7979_v26 = vld [vmem:[%s10648_s3 + $0x184] ss:$8 sps:$4 sm:$0xff]  }
 0x2f9   : > { %v4775_v0 = vpack.c.bf16 %v4659_v55, %v4655_v4  ;;  %v3544_v8 = vpop.f32.mrb[12].mxu0  ;;  %5426 = vmatpush1.bf16.msra.mxu0 %v7962_v23 }
 0x2fa   : > { %v6660_v60 = vadd.f32 %v3544_v8, %v10167_v56  ;;  %v3546_v24 = vpop.f32.mrb[13].mxu0  ;;  %5427 = vmatprep.subr.bf16.mxu0 %v7967_v3 }
 0x2fb   : > { %v6661_v41 = vadd.f32 %v3546_v24, %v10172_v33  ;;  %v3548_v40 = vpop.f32.mrb[14].mxu0  ;;  %5278 = vmatprep.mubr.bf16.mxu0 %v4775_v0  ;;  %v7977_v0 = vld [vmem:[%s10648_s3 + $0x180] ss:$8 sps:$4 sm:$0xff]  }
 0x2fc   : > { %v6662_v53 = vadd.f32 %v3548_v40, %v10167_v56  ;;  %v3550_v39 = vpop.f32.mrb[15].mxu0  ;;  %5279 = vmatmul.mubr.bf16.gmra.mrb[72].mxu0 %v4774_v29  ;;  %v4662_v2 = vmax.f32 %v6660_v60, 0.0 }
 0x2fd   : > { %v6663_v6 = vadd.f32 %v3550_v39, %v10172_v33  ;;  %5428 = vmatpush1.bf16.msra.mxu0 %v7965_v7  ;;  %v4663_v37 = vmax.f32 %v6661_v41, 0.0 }
 0x2fe   : > { %v4666_v50 = vmax.f32 %v6662_v53, 0.0  ;;  %4618 = vmatmul.mubr.bf16.gmra.mrb[88].mxu1 %v10118_v22  ;;  %5429 = vmatprep.subr.bf16.mxu0 %v7970_v51  ;;  %v7980_v53 = vld [vmem:[%s10648_s3 + $0x190] ss:$8 sps:$4 sm:$0xff]  }
 0x2ff   : > { %v4667_v28 = vmax.f32 %v6663_v6, 0.0  ;;  %4627 = vmatprep.mubr.bf16.mxu1 %v10120_v49 }
 0x300   : > { %v4778_v27 = vpack.c.bf16 %v4666_v50, %v4662_v2 }
 0x301   : > { %v4779_v61 = vpack.c.bf16 %v4667_v28, %v4663_v37  ;;  %v3554_v44 = vpop.f32.mrb[16].mxu0  ;;  %5430 = vmatpush1.bf16.msra.mxu0 %v7968_v17  ;;  %v7985_v17 = vld [vmem:[%s10648_s3 + $0x1a4] ss:$8 sps:$4 sm:$0xff]  }
 0x302   : > { %v6664_v34 = vadd.f32 %v3554_v44, %v10167_v56  ;;  %v3556_v22 = vpop.f32.mrb[17].mxu0  ;;  %5431 = vmatprep.subr.bf16.mxu0 %v7973_v32 }
 0x303   : > { %v6665_v21 = vadd.f32 %v3556_v22, %v10172_v33  ;;  %v3558_v14 = vpop.f32.mrb[18].mxu0  ;;  %5288 = vmatprep.mubr.bf16.mxu0 %v4779_v61 }
 0x304   : > { %v6666_v49 = vadd.f32 %v3558_v14, %v10167_v56  ;;  %v3560_v63 = vpop.f32.mrb[19].mxu0  ;;  %5289 = vmatmul.mubr.bf16.gmra.mrb[76].mxu0 %v4778_v27  ;;  %v4670_v1 = vmax.f32 %v6664_v34, 0.0  ;;  %v7983_v27 = vld [vmem:[%s10648_s3 + $0x1a0] ss:$8 sps:$4 sm:$0xff]  }
 0x305   : > { %v6667_v35 = vadd.f32 %v3560_v63, %v10172_v33  ;;  %5432 = vmatpush1.bf16.msra.mxu0 %v7971_v52  ;;  %v4671_v54 = vmax.f32 %v6665_v21, 0.0  ;;  %v7988_v52 = vld [vmem:[%s10648_s3 + $0x1b4] ss:$8 sps:$4 sm:$0xff]  }
 0x306   : > { %v4674_v23 = vmax.f32 %v6666_v49, 0.0  ;;  %4628 = vmatmul.mubr.bf16.gmra.mrb[92].mxu1 %v10128_v36  ;;  %5433 = vmatprep.subr.bf16.mxu0 %v7976_v48  ;;  %v7982_v36 = vld [vmem:[%s10648_s3 + $0x194] ss:$8 sps:$4 sm:$0xff]   ;;  %v7986_v49 = vld [vmem:[%s10648_s3 + $0x1b0] ss:$8 sps:$4 sm:$0xff]  }
 0x307   : > { %v4675_v3 = vmax.f32 %v6667_v35, 0.0 }
 0x308   : > { %v4782_v4 = vpack.c.bf16 %v4674_v23, %v4670_v1 }
 0x309   : > { %v4783_v55 = vpack.c.bf16 %v4675_v3, %v4671_v54  ;;  %v3564_v29 = vpop.f32.mrb[20].mxu0  ;;  %5434 = vmatpush1.bf16.msra.mxu0 %v7974_v45  ;;  %v7991_v45 = vld [vmem:[%s10648_s3 + $0x1c4] ss:$8 sps:$4 sm:$0xff]  }
 0x30a   : > { %v6668_v8 = vadd.f32 %v3564_v29, %v10167_v56  ;;  %v3566_v7 = vpop.f32.mrb[21].mxu0  ;;  %5435 = vmatprep.subr.bf16.mxu0 %v7979_v26 }
 0x30b   : > { %v6669_v60 = vadd.f32 %v3566_v7, %v10172_v33  ;;  %v3568_v24 = vpop.f32.mrb[22].mxu0  ;;  %5298 = vmatprep.mubr.bf16.mxu0 %v4783_v55 }
 0x30c   : > { %v6670_v51 = vadd.f32 %v3568_v24, %v10167_v56  ;;  %v3570_v41 = vpop.f32.mrb[23].mxu0  ;;  %5299 = vmatmul.mubr.bf16.gmra.mrb[80].mxu0 %v4782_v4  ;;  %v4678_v39 = vmax.f32 %v6668_v8, 0.0  ;;  %v7989_v4 = vld [vmem:[%s10648_s3 + $0x1c0] ss:$8 sps:$4 sm:$0xff]  }
 0x30d   : > { %v6671_v40 = vadd.f32 %v3570_v41, %v10172_v33  ;;  %5436 = vmatpush1.bf16.msra.mxu0 %v7977_v0  ;;  %v4679_v2 = vmax.f32 %v6669_v60, 0.0  ;;  %v7994_v0 = vld [vmem:[%s10648_s3 + $0x1d4] ss:$8 sps:$4 sm:$0xff]  }
 0x30e   : > { %v4682_v6 = vmax.f32 %v6670_v51, 0.0  ;;  %5437 = vmatprep.subr.bf16.mxu0 %v7982_v36  ;;  %v7992_v51 = vld [vmem:[%s10648_s3 + $0x1d0] ss:$8 sps:$4 sm:$0xff]  }
 0x30f   : > { %v4683_v50 = vmax.f32 %v6671_v40, 0.0 }
 0x310   : > { %v4786_v32 = vpack.c.bf16 %v4682_v6, %v4678_v39 }
 0x311   : > { %v4787_v37 = vpack.c.bf16 %v4683_v50, %v4679_v2  ;;  %v3574_v28 = vpop.f32.mrb[24].mxu0  ;;  %5438 = vmatpush1.bf16.msra.mxu0 %v7980_v53  ;;  %v7997_v53 = vld [vmem:[%s10648_s3 + $0x1e4] ss:$8 sps:$4 sm:$0xff]   ;;  %v2825_v50 = vadd.f32 %v9039_v57, %v10172_v33  ;;  %v2829_v57 = vadd.f32 %v9059_v62, %v10172_v33  ;;  %v2833_v62 = vadd.f32 %v9081_v5, %v10167_v56 }
 0x312   : > { %v6672_v61 = vadd.f32 %v3574_v28, %v10167_v56  ;;  %v3576_v44 = vpop.f32.mrb[25].mxu0  ;;  %5439 = vmatprep.subr.bf16.mxu0 %v7985_v17  ;;  %v2823_v17 = vadd.f32 %v9037_v42, %v10167_v56  ;;  %v7995_v28 = vld [vmem:[%s10648_s3 + $0x1e0] ss:$8 sps:$4 sm:$0xff]   ;;  %v8000_v42 = vld [vmem:[%s10648_s3 + $0x1f4] ss:$8 sps:$4 sm:$0xff]  }
 0x313   : > { %v6673_v34 = vadd.f32 %v3576_v44, %v10172_v33  ;;  %v3578_v22 = vpop.f32.mrb[26].mxu0  ;;  %5308 = vmatprep.mubr.bf16.mxu0 %v4787_v37 }
 0x314   : > { %v6674_v48 = vadd.f32 %v3578_v22, %v10167_v56  ;;  %v3580_v21 = vpop.f32.mrb[27].mxu0  ;;  %5309 = vmatmul.mubr.bf16.gmra.mrb[84].mxu0 %v4786_v32  ;;  %v4686_v63 = vmax.f32 %v6672_v61, 0.0 }
 0x315   : > { %v6675_v14 = vadd.f32 %v3580_v21, %v10172_v33  ;;  %5440 = vmatpush1.bf16.msra.mxu0 %v7983_v27  ;;  %v4687_v1 = vmax.f32 %v6673_v34, 0.0  ;;  %v2827_v27 = vadd.f32 %v9049_v58, %v10167_v56  ;;  %v7998_v58 = vld [vmem:[%s10648_s3 + $0x1f0] ss:$8 sps:$4 sm:$0xff]  }
 0x316   : > { %v4690_v35 = vmax.f32 %v6674_v48, 0.0  ;;  %5441 = vmatprep.subr.bf16.mxu0 %v7988_v52 }
 0x317   : > { %v4691_v23 = vmax.f32 %v6675_v14, 0.0 }
 0x318   : > { %v4790_v26 = vpack.c.bf16 %v4690_v35, %v4686_v63 }
 0x319   : > { %v4791_v54 = vpack.c.bf16 %v4691_v23, %v4687_v1  ;;  %v3584_v3 = vpop.f32.mrb[28].mxu0  ;;  %5442 = vmatpush1.bf16.msra.mxu0 %v7986_v49  ;;  %v2835_v1 = vadd.f32 %v9083_v20, %v10172_v33 }
 0x31a   : > { %v6676_v55 = vadd.f32 %v3584_v3, %v10167_v56  ;;  %v3586_v29 = vpop.f32.mrb[29].mxu0  ;;  %5443 = vmatprep.subr.bf16.mxu0 %v7991_v45 }
 0x31b   : > { %v6677_v8 = vadd.f32 %v3586_v29, %v10172_v33  ;;  %v3588_v7 = vpop.f32.mrb[30].mxu0  ;;  %5318 = vmatprep.mubr.bf16.mxu0 %v4791_v54  ;;  %v2837_v54 = vadd.f32 %v9093_v15, %v10167_v56 }
 0x31c   : > { %v6678_v36 = vadd.f32 %v3588_v7, %v10167_v56  ;;  %v3590_v60 = vpop.f32.mrb[31].mxu0  ;;  %5319 = vmatmul.mubr.bf16.gmra.mrb[88].mxu0 %v4790_v26  ;;  %v4694_v41 = vmax.f32 %v6676_v55, 0.0  ;;  %v2839_v55 = vadd.f32 %v9103_v9, %v10172_v33 }
 0x31d   : > { %v6679_v24 = vadd.f32 %v3590_v60, %v10172_v33  ;;  %5444 = vmatpush1.bf16.msra.mxu0 %v7989_v4  ;;  %v4695_v39 = vmax.f32 %v6677_v8, 0.0 }
 0x31e   : > { %v4698_v40 = vmax.f32 %v6678_v36, 0.0  ;;  %5445 = vmatprep.subr.bf16.mxu0 %v7994_v0 }
 0x31f   : > { %v4699_v6 = vmax.f32 %v6679_v24, 0.0 }
 0x320   : > { %v4794_v2 = vpack.c.bf16 %v4698_v40, %v4694_v41  ;;  %v2845_v41 = vadd.f32 %v9127_v13, %v10172_v33 }
 0x321   : > { %v4795_v32 = vpack.c.bf16 %v4699_v6, %v4695_v39  ;;  %v3594_v37 = vpop.f32.mrb[32].mxu0  ;;  %5446 = vmatpush1.bf16.msra.mxu0 %v7992_v51  ;;  %v2843_v51 = vadd.f32 %v9125_v31, %v10167_v56 }
 0x322   : > { %v6681_v61 = vadd.f32 %v3594_v37, %v2823_v17  ;;  %v3596_v44 = vpop.f32.mrb[33].mxu0  ;;  %5447 = vmatprep.subr.bf16.mxu0 %v7997_v53  ;;  %v2847_v53 = vadd.f32 %v9131_v38, %v10167_v56  ;;  %v2849_v17 = vadd.f32 %v9135_v59, %v10172_v33 }
 0x323   : > { %v6683_v52 = vadd.f32 %v3596_v44, %v2825_v50  ;;  %v3598_v34 = vpop.f32.mrb[34].mxu0  ;;  %5328 = vmatprep.mubr.bf16.mxu0 %v4795_v32  ;;  %v2853_v44 = vadd.f32 %v9163_v10, %v10167_v56 }
 0x324   : > { %v6685_v22 = vadd.f32 %v3598_v34, %v2827_v27  ;;  %v3600_v48 = vpop.f32.mrb[35].mxu0  ;;  %5329 = vmatmul.mubr.bf16.gmra.mrb[92].mxu0 %v4794_v2  ;;  %v4702_v14 = vmax.f32 %v6681_v61, 0.0 }
 0x325   : > { %v6687_v21 = vadd.f32 %v3600_v48, %v2829_v57  ;;  %5448 = vmatpush1.bf16.msra.mxu0 %v7995_v28  ;;  %v4703_v63 = vmax.f32 %v6683_v52, 0.0  ;;  %v2857_v52 = vadd.f32 %v9175_v46, %v10167_v56  ;;  %v2859_v48 = vadd.f32 %v9179_v25, %v10172_v33 }
 0x326   : > { %v4706_v49 = vmax.f32 %v6685_v22, 0.0  ;;  %5449 = vmatprep.subr.bf16.mxu0 %v8000_v42  ;;  %v2855_v42 = vadd.f32 %v9171_v11, %v10172_v33 }
 0x327   : > { %v4707_v35 = vmax.f32 %v6687_v21, 0.0 }
 0x328   : > { %v4798_v45 = vpack.c.bf16 %v4706_v49, %v4702_v14 }
 0x329   : > { %v4799_v23 = vpack.c.bf16 %v4707_v35, %v4703_v63  ;;  %v3604_v26 = vpop.f32.mrb[36].mxu0  ;;  %5450 = vmatpush1.bf16.msra.mxu0 %v7998_v58 }
 0x32a   : > { %v6689_v3 = vadd.f32 %v3604_v26, %v2833_v62  ;;  %v3606_v4 = vpop.f32.mrb[37].mxu0  ;;  %v10666_v26 = vld [vmem:[#allocation2_spill] sm:$0xff] }
 0x32b   : > { %v6691_v29 = vadd.f32 %v3606_v4, %v2835_v1  ;;  %v3608_v0 = vpop.f32.mrb[38].mxu0  ;;  %5338 = vmatprep.mubr.bf16.mxu0 %v4799_v23  ;;  %v2865_v1 = vadd.f32 %v9215_v19, %v10172_v33 }
 0x32c   : > { %v6693_v8 = vadd.f32 %v3608_v0, %v2837_v54  ;;  %v3610_v5 = vpop.f32.mrb[39].mxu0  ;;  %5339 = vmatmul.mubr.bf16.gmra.mrb[96].mxu0 %v4798_v45  ;;  %v4710_v36 = vmax.f32 %v6689_v3, 0.0  ;;  %v2863_v45 = vadd.f32 %v9207_v16, %v10167_v56  ;;  %v2867_v54 = vadd.f32 %v10666_v26, %v10167_v56 }
 0x32d   : > { %v6695_v7 = vadd.f32 %v3610_v5, %v2839_v55  ;;  %v4711_v60 = vmax.f32 %v6691_v29, 0.0  ;;  %v10667_v55 = vld [vmem:[#allocation3_spill] sm:$0xff] }
 0x32e   : > { %v4714_v20 = vmax.f32 %v6693_v8, 0.0  ;;  %v2869_v29 = vadd.f32 %v10667_v55, %v10172_v33 }
 0x32f   : > { %v4715_v24 = vmax.f32 %v6695_v7, 0.0 }
 0x330   : > { %v4802_v15 = vpack.c.bf16 %v4714_v20, %v4710_v36 }
 0x331   : > { %v4803_v40 = vpack.c.bf16 %v4715_v24, %v4711_v60  ;;  %v3614_v9 = vpop.f32.mrb[40].mxu0  ;;  %v2873_v24 = vadd.f32 %v9251_v47, %v10167_v56 }
 0x332   : > { %v6697_v39 = vadd.f32 %v3614_v9, %v2843_v51  ;;  %v3616_v6 = vpop.f32.mrb[41].mxu0 }
 0x333   : > { %v6699_v2 = vadd.f32 %v3616_v6, %v2845_v41  ;;  %v3618_v50 = vpop.f32.mrb[42].mxu0  ;;  %5348 = vmatprep.mubr.bf16.mxu0 %v4803_v40 }
 0x334   : > { %v6701_v32 = vadd.f32 %v3618_v50, %v2847_v53  ;;  %v3620_v37 = vpop.f32.mrb[43].mxu0  ;;  %5349 = vmatmul.mubr.bf16.gmra.mrb[100].mxu0 %v4802_v15  ;;  %v4718_v28 = vmax.f32 %v6697_v39, 0.0  ;;  %v10668_v15 = vld [vmem:[#allocation4_spill] sm:$0xff]  ;;  %v10669_v53 = vld [vmem:[#allocation5_spill] sm:$0xff] }
 0x335   : > { %v6703_v31 = vadd.f32 %v3620_v37, %v2849_v17  ;;  %v4719_v13 = vmax.f32 %v6699_v2, 0.0  ;;  %v2875_v41 = vadd.f32 %v10668_v15, %v10172_v33  ;;  %v2877_v39 = vadd.f32 %v10669_v53, %v10167_v56  ;;  %v10670_v2 = vld [vmem:[#allocation6_spill] sm:$0xff] }
 0x336   : > { %v4722_v27 = vmax.f32 %v6701_v32, 0.0  ;;  %v2879_v50 = vadd.f32 %v10670_v2, %v10172_v33 }
 0x337   : > { %v4723_v61 = vmax.f32 %v6703_v31, 0.0 }
 0x338   : > { %v4806_v38 = vpack.c.bf16 %v4722_v27, %v4718_v28  ;;  %v8001_v27 = vld [vmem:[%s10650_s5 + $0x40] sm:$0xff]  }
 0x339   : > { %v4807_v57 = vpack.c.bf16 %v4723_v61, %v4719_v13  ;;  %v3624_v59 = vpop.f32.mrb[44].mxu0  ;;  %6504 = vmatprep.subr.bf16.mxu1 %v8001_v27 }
 0x33a   : > { %v6705_v34 = vadd.f32 %v3624_v59, %v2853_v44  ;;  %v3626_v22 = vpop.f32.mrb[45].mxu0 }
 0x33b   : > { %v6707_v21 = vadd.f32 %v3626_v22, %v2855_v42  ;;  %v3628_v58 = vpop.f32.mrb[46].mxu0  ;;  %5358 = vmatprep.mubr.bf16.mxu0 %v4807_v57  ;;  %v10671_v42 = vld [vmem:[#allocation7_spill] sm:$0xff] }
 0x33c   : > { %v6709_v14 = vadd.f32 %v3628_v58, %v2857_v52  ;;  %v3630_v49 = vpop.f32.mrb[47].mxu0  ;;  %5359 = vmatmul.mubr.bf16.gmra.mrb[104].mxu0 %v4806_v38  ;;  %v4726_v63 = vmax.f32 %v6705_v34, 0.0  ;;  %v2883_v57 = vadd.f32 %v10671_v42, %v10167_v56  ;;  %v8002_v52 = vld [vmem:[%s10650_s5] sm:$0xff]   ;;  %v10672_v34 = vld [vmem:[#allocation8_spill] sm:$0xff]  ;;  %v10673_v58 = vld [vmem:[#allocation9_spill] sm:$0xff] }
 0x33d   : > { %v6711_v10 = vadd.f32 %v3630_v49, %v2859_v48  ;;  %v4727_v11 = vmax.f32 %v6707_v21, 0.0  ;;  %v2885_v22 = vadd.f32 %v10672_v34, %v10172_v33  ;;  %6505 = vmatpush3.bf16.msra.mxu1 %v8002_v52  ;;  %v8006_v42 = vld [vmem:[%s10650_s5 + $0x10] sm:$0xff]  }
 0x33e   : > { %v4730_v35 = vmax.f32 %v6709_v14, 0.0  ;;  %v2887_v14 = vadd.f32 %v10673_v58, %v10167_v56 }
 0x33f   : > { %v4731_v62 = vmax.f32 %v6711_v10, 0.0 }
 0x340   : > { %v4810_v46 = vpack.c.bf16 %v4730_v35, %v4726_v63  ;;  %v10674_v63 = vld [vmem:[#allocation10_spill] sm:$0xff] }
 0x341   : > { %v4811_v23 = vpack.c.bf16 %v4731_v62, %v4727_v11  ;;  %v3634_v25 = vpop.f32.mrb[48].mxu0  ;;  %v2889_v35 = vadd.f32 %v10674_v63, %v10172_v33 }
 0x342   : > { %v6713_v3 = vadd.f32 %v3634_v25, %v2863_v45  ;;  %v3636_v4 = vpop.f32.mrb[49].mxu0 }
 0x343   : > { %v6715_v0 = vadd.f32 %v3636_v4, %v2865_v1  ;;  %v3638_v8 = vpop.f32.mrb[50].mxu0  ;;  %5368 = vmatprep.mubr.bf16.mxu0 %v4811_v23 }
 0x344   : > { %v6717_v5 = vadd.f32 %v3638_v8, %v2867_v54  ;;  %v3640_v7 = vpop.f32.mrb[51].mxu0  ;;  %5369 = vmatmul.mubr.bf16.gmra.mrb[108].mxu0 %v4810_v46  ;;  %v4734_v36 = vmax.f32 %v6713_v3, 0.0  ;;  %v10675_v3 = vld [vmem:[#allocation11_spill] sm:$0xff] }
 0x345   : > { %v6719_v16 = vadd.f32 %v3640_v7, %v2869_v29  ;;  %v4735_v19 = vmax.f32 %v6715_v0, 0.0  ;;  %v2893_v4 = vadd.f32 %v10675_v3, %v10167_v56  ;;  %v10676_v29 = vld [vmem:[#allocation12_spill] sm:$0xff]  ;;  %v10677_v7 = vld [vmem:[#allocation13_spill] sm:$0xff] }
 0x346   : > { %v4738_v20 = vmax.f32 %v6717_v5, 0.0  ;;  %v2895_v0 = vadd.f32 %v10676_v29, %v10172_v33 }
 0x347   : > { %v4739_v60 = vmax.f32 %v6719_v16, 0.0  ;;  %v2897_v16 = vadd.f32 %v10677_v7, %v10167_v56  ;;  %v8003_v56 = vld [vmem:[%s10650_s5 + $0x48] sm:$0xff]  }
 0x348   : > { %v4814_v51 = vpack.c.bf16 %v4738_v20, %v4734_v36  ;;  %6506 = vmatprep.subr.bf16.mxu1 %v8003_v56  ;;  %v8016_v56 = vld [vmem:[%s10650_s5 + $0x38] sm:$0xff]  }
 0x349   : > { %v4815_v40 = vpack.c.bf16 %v4739_v60, %v4735_v19  ;;  %v3644_v9 = vpop.f32.mrb[52].mxu0  ;;  %v1098_v19 = vsub.s32 2, %v10153_v30  ;;  %v10678_v60 = vld [vmem:[#allocation14_spill] sm:$0xff] }
 0x34a   : > { %v6721_v6 = vadd.f32 %v3644_v9, %v2873_v24  ;;  %v3646_v17 = vpop.f32.mrb[53].mxu0  ;;  %v2899_v24 = vadd.f32 %v10678_v60, %v10172_v33 }
 0x34b   : > { %v6723_v32 = vadd.f32 %v3646_v17, %v2875_v41  ;;  %v3648_v37 = vpop.f32.mrb[54].mxu0  ;;  %5378 = vmatprep.mubr.bf16.mxu0 %v4815_v40  ;;  %v1102_v41 = vsub.s32 3, %v10153_v30  ;;  %v10384_v17 = vrot.slane %v10159_v18, %v1098_v19  ;;  %v8014_v19 = vld [vmem:[%s10650_s5 + $0x30] sm:$0xff]  }
 0x34c   : > { %v6725_v31 = vadd.f32 %v3648_v37, %v2877_v39  ;;  %v3650_v28 = vpop.f32.mrb[55].mxu0  ;;  %5379 = vmatmul.mubr.bf16.gmra.mrb[112].mxu0 %v4814_v51  ;;  %v4742_v13 = vmax.f32 %v6721_v6, 0.0  ;;  %v8004_v37 = vld [vmem:[%s10650_s5 + $0x8] sm:$0xff]  }
 0x34d   : > { %v6727_v47 = vadd.f32 %v3650_v28, %v2879_v50  ;;  %v4743_v44 = vmax.f32 %v6723_v32, 0.0  ;;  %v10387_v50 = vrot.slane %v10159_v18, %v1102_v41  ;;  %6507 = vmatpush3.bf16.msra.mxu1 %v8004_v37 }
 0x34e   : > { %v4746_v61 = vmax.f32 %v6725_v31, 0.0 }
 0x34f   : > { %v4747_v38 = vmax.f32 %v6727_v47, 0.0 }
 0x350   : > { %v4818_v59 = vpack.c.bf16 %v4746_v61, %v4742_v13 }
 0x351   : > { %v4819_v48 = vpack.c.bf16 %v4747_v38, %v4743_v44  ;;  %v3654_v21 = vpop.f32.mrb[56].mxu0  ;;  %v8005_v38 = vld [vmem:[%s10650_s5 + $0x50] sm:$0xff]  }
 0x352   : > { %v6729_v49 = vadd.f32 %v3654_v21, %v2883_v57  ;;  %v3656_v10 = vpop.f32.mrb[57].mxu0  ;;  %v8007_v57 = vld [vmem:[%s10650_s5 + $0x58] sm:$0xff]   ;;  %6508 = vmatprep.subr.bf16.mxu1 %v8005_v38 }
 0x353   : > { %v6731_v11 = vadd.f32 %v3656_v10, %v2885_v22  ;;  %v3658_v62 = vpop.f32.mrb[58].mxu0  ;;  %5388 = vmatprep.mubr.bf16.mxu0 %v4819_v48  ;;  %6509 = vmatpush3.bf16.msra.mxu1 %v8006_v42  ;;  %v8008_v21 = vld [vmem:[%s10650_s5 + $0x18] sm:$0xff]  }
 0x354   : > { %v6733_v45 = vadd.f32 %v3658_v62, %v2887_v14  ;;  %v3660_v46 = vpop.f32.mrb[59].mxu0  ;;  %5389 = vmatmul.mubr.bf16.gmra.mrb[116].mxu0 %v4818_v59  ;;  %v4750_v23 = vmax.f32 %v6729_v49, 0.0  ;;  %6510 = vmatprep.subr.bf16.mxu1 %v8007_v57  ;;  %v8009_v14 = vld [vmem:[%s10650_s5 + $0x60] sm:$0xff]  }
 0x355   : > { %v6735_v1 = vadd.f32 %v3660_v46, %v2889_v35  ;;  %v4751_v26 = vmax.f32 %v6731_v11, 0.0 }
 0x356   : > { %v4754_v25 = vmax.f32 %v6733_v45, 0.0  ;;  %v8010_v45 = vld [vmem:[%s10650_s5 + $0x20] sm:$0xff]  }
 0x357   : > { %v4755_v54 = vmax.f32 %v6735_v1, 0.0  ;;  %6511 = vmatpush3.bf16.msra.mxu1 %v8008_v21 }
 0x358   : > { %v4822_v55 = vpack.c.bf16 %v4754_v25, %v4750_v23  ;;  %6512 = vmatprep.subr.bf16.mxu1 %v8009_v14  ;;  %v8011_v23 = vld [vmem:[%s10650_s5 + $0x68] sm:$0xff]  }
 0x359   : > { %v4823_v8 = vpack.c.bf16 %v4755_v54, %v4751_v26  ;;  %v3664_v5 = vpop.f32.mrb[60].mxu0 }
 0x35a   : > { %v6737_v36 = vadd.f32 %v3664_v5, %v2893_v4  ;;  %v3666_v20 = vpop.f32.mrb[61].mxu0 }
 0x35b   : > { %v6739_v51 = vadd.f32 %v3666_v20, %v2895_v0  ;;  %v3668_v15 = vpop.f32.mrb[62].mxu0  ;;  %5398 = vmatprep.mubr.bf16.mxu0 %v4823_v8  ;;  %6513 = vmatpush3.bf16.msra.mxu1 %v8010_v45  ;;  %v8013_v0 = vld [vmem:[%s10650_s5 + $0x70] sm:$0xff]  }
 0x35c   : > { %v6741_v40 = vadd.f32 %v3668_v15, %v2897_v16  ;;  %v3670_v9 = vpop.f32.mrb[63].mxu0  ;;  %5399 = vmatmul.mubr.bf16.gmra.mrb[120].mxu0 %v4822_v55  ;;  %v4758_v39 = vmax.f32 %v6737_v36, 0.0  ;;  %v8012_v55 = vld [vmem:[%s10650_s5 + $0x28] sm:$0xff]   ;;  %6514 = vmatprep.subr.bf16.mxu1 %v8011_v23 }
 0x35d   : > { %v6743_v53 = vadd.f32 %v3670_v9, %v2899_v24  ;;  %v4759_v2 = vmax.f32 %v6739_v51, 0.0  ;;  %v8015_v51 = vld [vmem:[%s10650_s5 + $0x78] sm:$0xff]  }
 0x35e   : > { %v4762_v6 = vmax.f32 %v6741_v40, 0.0 }
 0x35f   : > { %v4763_v33 = vmax.f32 %v6743_v53, 0.0  ;;  %6515 = vmatpush3.bf16.msra.mxu1 %v8012_v55 }
 0x360   : > { %v4826_v32 = vpack.c.bf16 %v4762_v6, %v4758_v39  ;;  %6516 = vmatprep.subr.bf16.mxu1 %v8013_v0 }
 0x361   : > { %v4827_v31 = vpack.c.bf16 %v4763_v33, %v4759_v2  ;;  %v4479_v28 = vpop.f32.mrb[32].mxu1 }
 0x362   : > { %v6744_v47 = vadd.f32 %v4479_v28, %v10384_v17  ;;  %v4481_v27 = vpop.f32.mrb[33].mxu1 }
 0x363   : > { %v6745_v13 = vadd.f32 %v4481_v27, %v10387_v50  ;;  %v4483_v61 = vpop.f32.mrb[34].mxu1  ;;  %5408 = vmatprep.mubr.bf16.mxu0 %v4827_v31  ;;  %6517 = vmatpush3.bf16.msra.mxu1 %v8014_v19 }
 0x364   : > { %v6746_v44 = vadd.f32 %v4483_v61, %v10384_v17  ;;  %v4485_v18 = vpop.f32.mrb[35].mxu1  ;;  %5409 = vmatmul.mubr.bf16.gmra.mrb[124].mxu0 %v4826_v32  ;;  %v4640_v52 = vmax.f32 %v6744_v47, 0.0  ;;  %6518 = vmatprep.subr.bf16.mxu1 %v8015_v51 }
 0x365   : > { %v6747_v59 = vadd.f32 %v4485_v18, %v10387_v50  ;;  %v4641_v22 = vmax.f32 %v6745_v13, 0.0 }
 0x366   : > { %v4644_v34 = vmax.f32 %v6746_v44, 0.0 }
 0x367   : > { %v4645_v48 = vmax.f32 %v6747_v59, 0.0  ;;  %6519 = vmatpush3.bf16.msra.mxu1 %v8016_v56 }
 0x368   : > { %v4768_v58 = vpack.c.bf16 %v4644_v34, %v4640_v52 }
 0x369   : > { %v4769_v49 = vpack.c.bf16 %v4645_v48, %v4641_v22  ;;  %v4489_v10 = vpop.f32.mrb[36].mxu1 }
 0x36a   : > { %v6748_v63 = vadd.f32 %v4489_v10, %v10384_v17  ;;  %v4491_v35 = vpop.f32.mrb[37].mxu1 }
 0x36b   : > { %v6749_v11 = vadd.f32 %v4491_v35, %v10387_v50  ;;  %v4493_v62 = vpop.f32.mrb[38].mxu1  ;;  %5451 = vmatprep.mubr.bf16.mxu0 %v4769_v49 }
 0x36c   : > { %v6750_v46 = vadd.f32 %v4493_v62, %v10384_v17  ;;  %v4495_v1 = vpop.f32.mrb[39].mxu1  ;;  %5452 = vmatmul.mubr.bf16.vlgmr.msra.gmra.mrb[64].mxu0 %v4768_v58  ;;  %v4648_v26 = vmax.f32 %v6748_v63, 0.0 }
 0x36d   : > { %v6751_v25 = vadd.f32 %v4495_v1, %v10387_v50  ;;  %v4649_v3 = vmax.f32 %v6749_v11, 0.0 }
 0x36e   : > { %v4652_v54 = vmax.f32 %v6750_v46, 0.0 }
 0x36f   : > { %v4653_v4 = vmax.f32 %v6751_v25, 0.0 }
 0x370   : > { %v4772_v29 = vpack.c.bf16 %v4652_v54, %v4648_v26 }
 0x371   : > { %v4773_v8 = vpack.c.bf16 %v4653_v4, %v4649_v3  ;;  %v4499_v5 = vpop.f32.mrb[40].mxu1 }
 0x372   : > { %v6752_v7 = vadd.f32 %v4499_v5, %v10384_v17  ;;  %v4501_v16 = vpop.f32.mrb[41].mxu1 }
 0x373   : > { %v6753_v36 = vadd.f32 %v4501_v16, %v10387_v50  ;;  %v4503_v20 = vpop.f32.mrb[42].mxu1  ;;  %5461 = vmatprep.mubr.bf16.mxu0 %v4773_v8 }
 0x374   : > { %v6754_v60 = vadd.f32 %v4503_v20, %v10384_v17  ;;  %v4505_v24 = vpop.f32.mrb[43].mxu1  ;;  %5462 = vmatmul.mubr.bf16.gmra.mrb[68].mxu0 %v4772_v29  ;;  %v4656_v41 = vmax.f32 %v6752_v7, 0.0 }
 0x375   : > { %v6755_v15 = vadd.f32 %v4505_v24, %v10387_v50  ;;  %v4657_v9 = vmax.f32 %v6753_v36, 0.0 }
 0x376   : > { %v4660_v40 = vmax.f32 %v6754_v60, 0.0 }
 0x377   : > { %v4661_v53 = vmax.f32 %v6755_v15, 0.0 }
 0x378   : > { %v4776_v39 = vpack.c.bf16 %v4660_v40, %v4656_v41 }
 0x379   : > { %v4777_v6 = vpack.c.bf16 %v4661_v53, %v4657_v9  ;;  %v4509_v2 = vpop.f32.mrb[44].mxu1 }
 0x37a   : > { %v6756_v33 = vadd.f32 %v4509_v2, %v10384_v17  ;;  %v4511_v32 = vpop.f32.mrb[45].mxu1 }
 0x37b   : > { %v6757_v37 = vadd.f32 %v4511_v32, %v10387_v50  ;;  %v4513_v31 = vpop.f32.mrb[46].mxu1  ;;  %5471 = vmatprep.mubr.bf16.mxu0 %v4777_v6 }
 0x37c   : > { %v6758_v28 = vadd.f32 %v4513_v31, %v10384_v17  ;;  %v4515_v47 = vpop.f32.mrb[47].mxu1  ;;  %5472 = vmatmul.mubr.bf16.gmra.mrb[72].mxu0 %v4776_v39  ;;  %v4664_v13 = vmax.f32 %v6756_v33, 0.0 }
 0x37d   : > { %v6759_v27 = vadd.f32 %v4515_v47, %v10387_v50  ;;  %v4665_v44 = vmax.f32 %v6757_v37, 0.0 }
 0x37e   : > { %v4668_v61 = vmax.f32 %v6758_v28, 0.0 }
 0x37f   : > { %v4669_v18 = vmax.f32 %v6759_v27, 0.0 }
 0x380   : > { %v4780_v38 = vpack.c.bf16 %v4668_v61, %v4664_v13 }
 0x381   : > { %v4781_v42 = vpack.c.bf16 %v4669_v18, %v4665_v44  ;;  %v4519_v57 = vpop.f32.mrb[48].mxu1 }
 0x382   : > { %v6760_v59 = vadd.f32 %v4519_v57, %v10384_v17  ;;  %v4521_v52 = vpop.f32.mrb[49].mxu1 }
 0x383   : > { %v6761_v34 = vadd.f32 %v4521_v52, %v10387_v50  ;;  %v4523_v22 = vpop.f32.mrb[50].mxu1  ;;  %5481 = vmatprep.mubr.bf16.mxu0 %v4781_v42 }
 0x384   : > { %v6762_v48 = vadd.f32 %v4523_v22, %v10384_v17  ;;  %v4525_v21 = vpop.f32.mrb[51].mxu1  ;;  %5482 = vmatmul.mubr.bf16.gmra.mrb[76].mxu0 %v4780_v38  ;;  %v4672_v14 = vmax.f32 %v6760_v59, 0.0 }
 0x385   : > { %v6763_v58 = vadd.f32 %v4525_v21, %v10387_v50  ;;  %v4673_v10 = vmax.f32 %v6761_v34, 0.0 }
 0x386   : > { %v4676_v49 = vmax.f32 %v6762_v48, 0.0 }
 0x387   : > { %v4677_v63 = vmax.f32 %v6763_v58, 0.0 }
 0x388   : > { %v4784_v35 = vpack.c.bf16 %v4676_v49, %v4672_v14 }
 0x389   : > { %v4785_v11 = vpack.c.bf16 %v4677_v63, %v4673_v10  ;;  %v4529_v62 = vpop.f32.mrb[52].mxu1 }
 0x38a   : > { %v6764_v45 = vadd.f32 %v4529_v62, %v10384_v17  ;;  %v4531_v46 = vpop.f32.mrb[53].mxu1 }
 0x38b   : > { %v6765_v1 = vadd.f32 %v4531_v46, %v10387_v50  ;;  %v4533_v23 = vpop.f32.mrb[54].mxu1  ;;  %5491 = vmatprep.mubr.bf16.mxu0 %v4785_v11 }
 0x38c   : > { %v6766_v25 = vadd.f32 %v4533_v23, %v10384_v17  ;;  %v4535_v26 = vpop.f32.mrb[55].mxu1  ;;  %5492 = vmatmul.mubr.bf16.gmra.mrb[80].mxu0 %v4784_v35  ;;  %v4680_v3 = vmax.f32 %v6764_v45, 0.0 }
 0x38d   : > { %v6767_v54 = vadd.f32 %v4535_v26, %v10387_v50  ;;  %v4681_v55 = vmax.f32 %v6765_v1, 0.0 }
 0x38e   : > { %v4684_v4 = vmax.f32 %v6766_v25, 0.0 }
 0x38f   : > { %v4685_v29 = vmax.f32 %v6767_v54, 0.0 }
 0x390   : > { %v4788_v0 = vpack.c.bf16 %v4684_v4, %v4680_v3 }
 0x391   : > { %v4789_v8 = vpack.c.bf16 %v4685_v29, %v4681_v55  ;;  %v4539_v5 = vpop.f32.mrb[56].mxu1 }
 0x392   : > { %v6768_v7 = vadd.f32 %v4539_v5, %v10384_v17  ;;  %v4541_v16 = vpop.f32.mrb[57].mxu1 }
 0x393   : > { %v6769_v36 = vadd.f32 %v4541_v16, %v10387_v50  ;;  %v4543_v20 = vpop.f32.mrb[58].mxu1  ;;  %5501 = vmatprep.mubr.bf16.mxu0 %v4789_v8 }
 0x394   : > { %v6770_v19 = vadd.f32 %v4543_v20, %v10384_v17  ;;  %v4545_v60 = vpop.f32.mrb[59].mxu1  ;;  %5502 = vmatmul.mubr.bf16.gmra.mrb[84].mxu0 %v4788_v0  ;;  %v4688_v51 = vmax.f32 %v6768_v7, 0.0 }
 0x395   : > { %v6771_v24 = vadd.f32 %v4545_v60, %v10387_v50  ;;  %v4689_v41 = vmax.f32 %v6769_v36, 0.0 }
 0x396   : > { %v4692_v15 = vmax.f32 %v6770_v19, 0.0 }
 0x397   : > { %v4693_v40 = vmax.f32 %v6771_v24, 0.0 }
 0x398   : > { %v4792_v9 = vpack.c.bf16 %v4692_v15, %v4688_v51 }
 0x399   : > { %v4793_v53 = vpack.c.bf16 %v4693_v40, %v4689_v41  ;;  %v4549_v56 = vpop.f32.mrb[60].mxu1 }
 0x39a   : > { %v6772_v39 = vadd.f32 %v4549_v56, %v10384_v17  ;;  %v4551_v6 = vpop.f32.mrb[61].mxu1 }
 0x39b   : > { %v6773_v2 = vadd.f32 %v4551_v6, %v10387_v50  ;;  %v4553_v33 = vpop.f32.mrb[62].mxu1  ;;  %5511 = vmatprep.mubr.bf16.mxu0 %v4793_v53 }
 0x39c   : > { %v6774_v32 = vadd.f32 %v4553_v33, %v10384_v17  ;;  %v4555_v37 = vpop.f32.mrb[63].mxu1  ;;  %5512 = vmatmul.mubr.bf16.gmra.mrb[88].mxu0 %v4792_v9  ;;  %v4696_v28 = vmax.f32 %v6772_v39, 0.0 }
 0x39d   : > { %v6775_v31 = vadd.f32 %v4555_v37, %v10387_v50  ;;  %v4697_v27 = vmax.f32 %v6773_v2, 0.0 }
 0x39e   : > { %v4700_v47 = vmax.f32 %v6774_v32, 0.0 }
 0x39f   : > { %v4701_v13 = vmax.f32 %v6775_v31, 0.0 }
 0x3a0   : > { %v4796_v61 = vpack.c.bf16 %v4700_v47, %v4696_v28 }
 0x3a1   : > { %v4797_v44 = vpack.c.bf16 %v4701_v13, %v4697_v27  ;;  %v4559_v18 = vpop.f32.mrb[64].mxu1 }
 0x3a2   : > { %v6776_v38 = vadd.f32 %v4559_v18, %v10384_v17  ;;  %v4561_v42 = vpop.f32.mrb[65].mxu1 }
 0x3a3   : > { %v6777_v57 = vadd.f32 %v4561_v42, %v10387_v50  ;;  %v4563_v59 = vpop.f32.mrb[66].mxu1  ;;  %5521 = vmatprep.mubr.bf16.mxu0 %v4797_v44 }
 0x3a4   : > { %v6778_v52 = vadd.f32 %v4563_v59, %v10384_v17  ;;  %v4565_v34 = vpop.f32.mrb[67].mxu1  ;;  %5522 = vmatmul.mubr.bf16.gmra.mrb[92].mxu0 %v4796_v61  ;;  %v4704_v48 = vmax.f32 %v6776_v38, 0.0 }
 0x3a5   : > { %v6779_v22 = vadd.f32 %v4565_v34, %v10387_v50  ;;  %v4705_v58 = vmax.f32 %v6777_v57, 0.0 }
 0x3a6   : > { %v4708_v21 = vmax.f32 %v6778_v52, 0.0 }
 0x3a7   : > { %v4709_v14 = vmax.f32 %v6779_v22, 0.0 }
 0x3a8   : > { %v4800_v49 = vpack.c.bf16 %v4708_v21, %v4704_v48 }
 0x3a9   : > { %v4801_v10 = vpack.c.bf16 %v4709_v14, %v4705_v58  ;;  %v4569_v63 = vpop.f32.mrb[68].mxu1 }
 0x3aa   : > { %v6780_v35 = vadd.f32 %v4569_v63, %v10384_v17  ;;  %v4571_v11 = vpop.f32.mrb[69].mxu1 }
 0x3ab   : > { %v6781_v62 = vadd.f32 %v4571_v11, %v10387_v50  ;;  %v4573_v45 = vpop.f32.mrb[70].mxu1  ;;  %5531 = vmatprep.mubr.bf16.mxu0 %v4801_v10 }
 0x3ac   : > { %v6782_v46 = vadd.f32 %v4573_v45, %v10384_v17  ;;  %v4575_v1 = vpop.f32.mrb[71].mxu1  ;;  %5532 = vmatmul.mubr.bf16.gmra.mrb[96].mxu0 %v4800_v49  ;;  %v4712_v25 = vmax.f32 %v6780_v35, 0.0 }
 0x3ad   : > { %v6783_v23 = vadd.f32 %v4575_v1, %v10387_v50  ;;  %v4713_v54 = vmax.f32 %v6781_v62, 0.0 }
 0x3ae   : > { %v4716_v26 = vmax.f32 %v6782_v46, 0.0 }
 0x3af   : > { %v4717_v3 = vmax.f32 %v6783_v23, 0.0 }
 0x3b0   : > { %v4804_v4 = vpack.c.bf16 %v4716_v26, %v4712_v25 }
 0x3b1   : > { %v4805_v55 = vpack.c.bf16 %v4717_v3, %v4713_v54  ;;  %v4579_v29 = vpop.f32.mrb[72].mxu1 }
 0x3b2   : > { %v6784_v0 = vadd.f32 %v4579_v29, %v10384_v17  ;;  %v4581_v8 = vpop.f32.mrb[73].mxu1 }
 0x3b3   : > { %v6785_v5 = vadd.f32 %v4581_v8, %v10387_v50  ;;  %v4583_v7 = vpop.f32.mrb[74].mxu1  ;;  %5541 = vmatprep.mubr.bf16.mxu0 %v4805_v55 }
 0x3b4   : > { %v6786_v16 = vadd.f32 %v4583_v7, %v10384_v17  ;;  %v4585_v36 = vpop.f32.mrb[75].mxu1  ;;  %5542 = vmatmul.mubr.bf16.gmra.mrb[100].mxu0 %v4804_v4  ;;  %v4720_v19 = vmax.f32 %v6784_v0, 0.0 }
 0x3b5   : > { %v6787_v20 = vadd.f32 %v4585_v36, %v10387_v50  ;;  %v4721_v24 = vmax.f32 %v6785_v5, 0.0 }
 0x3b6   : > { %v4724_v60 = vmax.f32 %v6786_v16, 0.0 }
 0x3b7   : > { %v4725_v51 = vmax.f32 %v6787_v20, 0.0 }
 0x3b8   : > { %v4808_v15 = vpack.c.bf16 %v4724_v60, %v4720_v19 }
 0x3b9   : > { %v4809_v41 = vpack.c.bf16 %v4725_v51, %v4721_v24  ;;  %v4589_v40 = vpop.f32.mrb[76].mxu1 }
 0x3ba   : > { %v6788_v9 = vadd.f32 %v4589_v40, %v10384_v17  ;;  %v4591_v53 = vpop.f32.mrb[77].mxu1 }
 0x3bb   : > { %v6789_v56 = vadd.f32 %v4591_v53, %v10387_v50  ;;  %v4593_v39 = vpop.f32.mrb[78].mxu1  ;;  %5551 = vmatprep.mubr.bf16.mxu0 %v4809_v41 }
 0x3bc   : > { %v6790_v6 = vadd.f32 %v4593_v39, %v10384_v17  ;;  %v4595_v2 = vpop.f32.mrb[79].mxu1  ;;  %5552 = vmatmul.mubr.bf16.gmra.mrb[104].mxu0 %v4808_v15  ;;  %v4728_v32 = vmax.f32 %v6788_v9, 0.0 }
 0x3bd   : > { %v6791_v33 = vadd.f32 %v4595_v2, %v10387_v50  ;;  %v4729_v31 = vmax.f32 %v6789_v56, 0.0 }
 0x3be   : > { %v4732_v37 = vmax.f32 %v6790_v6, 0.0 }
 0x3bf   : > { %v4733_v28 = vmax.f32 %v6791_v33, 0.0 }
 0x3c0   : > { %v4812_v47 = vpack.c.bf16 %v4732_v37, %v4728_v32 }
 0x3c1   : > { %v4813_v27 = vpack.c.bf16 %v4733_v28, %v4729_v31  ;;  %v4599_v13 = vpop.f32.mrb[80].mxu1  ;;  %v4894_v28 = vld [vmem:[%s10649_s4] sm:$0x3] }
 0x3c2   : > { %v6792_v61 = vadd.f32 %v4599_v13, %v10384_v17  ;;  %v4601_v44 = vpop.f32.mrb[81].mxu1 }
 0x3c3   : > { %v6793_v18 = vadd.f32 %v4601_v44, %v10387_v50  ;;  %v4603_v38 = vpop.f32.mrb[82].mxu1  ;;  %5561 = vmatprep.mubr.bf16.mxu0 %v4813_v27 }
 0x3c4   : > { %v6794_v42 = vadd.f32 %v4603_v38, %v10384_v17  ;;  %v4605_v57 = vpop.f32.mrb[83].mxu1  ;;  %5562 = vmatmul.mubr.bf16.gmra.mrb[108].mxu0 %v4812_v47  ;;  %v4736_v52 = vmax.f32 %v6792_v61, 0.0  ;;  %v10497_v47 = vrot.slane %v4894_v28, %v1090_v43 }
 0x3c5   : > { %v6795_v59 = vadd.f32 %v4605_v57, %v10387_v50  ;;  %v4737_v22 = vmax.f32 %v6793_v18, 0.0 }
 0x3c6   : > { %v4740_v34 = vmax.f32 %v6794_v42, 0.0 }
 0x3c7   : > { %v4741_v48 = vmax.f32 %v6795_v59, 0.0 }
 0x3c8   : > { %v4816_v21 = vpack.c.bf16 %v4740_v34, %v4736_v52 }
 0x3c9   : > { %v4817_v58 = vpack.c.bf16 %v4741_v48, %v4737_v22  ;;  %v4609_v14 = vpop.f32.mrb[84].mxu1 }
 0x3ca   : > { %v6796_v49 = vadd.f32 %v4609_v14, %v10384_v17  ;;  %v4611_v10 = vpop.f32.mrb[85].mxu1 }
 0x3cb   : > { %v6797_v63 = vadd.f32 %v4611_v10, %v10387_v50  ;;  %v4613_v35 = vpop.f32.mrb[86].mxu1  ;;  %5571 = vmatprep.mubr.bf16.mxu0 %v4817_v58 }
 0x3cc   : > { %v6798_v11 = vadd.f32 %v4613_v35, %v10384_v17  ;;  %v4615_v62 = vpop.f32.mrb[87].mxu1  ;;  %5572 = vmatmul.mubr.bf16.gmra.mrb[112].mxu0 %v4816_v21  ;;  %v4744_v46 = vmax.f32 %v6796_v49, 0.0 }
 0x3cd   : > { %v6799_v45 = vadd.f32 %v4615_v62, %v10387_v50  ;;  %v4745_v23 = vmax.f32 %v6797_v63, 0.0 }
 0x3ce   : > { %v4748_v1 = vmax.f32 %v6798_v11, 0.0 }
 0x3cf   : > { %v4749_v25 = vmax.f32 %v6799_v45, 0.0 }
 0x3d0   : > { %v4820_v26 = vpack.c.bf16 %v4748_v1, %v4744_v46 }
 0x3d1   : > { %v4821_v54 = vpack.c.bf16 %v4749_v25, %v4745_v23  ;;  %v4619_v3 = vpop.f32.mrb[88].mxu1 }
 0x3d2   : > { %v6800_v4 = vadd.f32 %v4619_v3, %v10384_v17  ;;  %v4621_v55 = vpop.f32.mrb[89].mxu1 }
 0x3d3   : > { %v6801_v29 = vadd.f32 %v4621_v55, %v10387_v50  ;;  %v4623_v0 = vpop.f32.mrb[90].mxu1  ;;  %5581 = vmatprep.mubr.bf16.mxu0 %v4821_v54 }
 0x3d4   : > { %v6802_v8 = vadd.f32 %v4623_v0, %v10384_v17  ;;  %v4625_v5 = vpop.f32.mrb[91].mxu1  ;;  %5582 = vmatmul.mubr.bf16.gmra.mrb[116].mxu0 %v4820_v26  ;;  %v4752_v16 = vmax.f32 %v6800_v4, 0.0 }
 0x3d5   : > { %v6803_v7 = vadd.f32 %v4625_v5, %v10387_v50  ;;  %v4753_v20 = vmax.f32 %v6801_v29, 0.0 }
 0x3d6   : > { %v4756_v36 = vmax.f32 %v6802_v8, 0.0 }
 0x3d7   : > { %v4757_v19 = vmax.f32 %v6803_v7, 0.0 }
 0x3d8   : > { %v4824_v60 = vpack.c.bf16 %v4756_v36, %v4752_v16 }
 0x3d9   : > { %v4825_v24 = vpack.c.bf16 %v4757_v19, %v4753_v20  ;;  %v4629_v51 = vpop.f32.mrb[92].mxu1 }
 0x3da   : > { %v6804_v15 = vadd.f32 %v4629_v51, %v10384_v17  ;;  %v4631_v41 = vpop.f32.mrb[93].mxu1 }
 0x3db   : > { %v6805_v40 = vadd.f32 %v4631_v41, %v10387_v50  ;;  %v4633_v9 = vpop.f32.mrb[94].mxu1  ;;  %5591 = vmatprep.mubr.bf16.mxu0 %v4825_v24 }
 0x3dc   : > { %v6806_v53 = vadd.f32 %v4633_v9, %v10384_v17  ;;  %v4635_v56 = vpop.f32.mrb[95].mxu1  ;;  %5592 = vmatmul.mubr.bf16.gmra.mrb[120].mxu0 %v4824_v60  ;;  %v4760_v6 = vmax.f32 %v6804_v15, 0.0  ;;  %v10501_v17 = vrot.slane %v4894_v28, %v1094_v12 }
 0x3dd   : > { %v6807_v39 = vadd.f32 %v4635_v56, %v10387_v50  ;;  %v4761_v33 = vmax.f32 %v6805_v40, 0.0 }
 0x3de   : > { %v4764_v2 = vmax.f32 %v6806_v53, 0.0 }
 0x3df   : > { %v4765_v32 = vmax.f32 %v6807_v39, 0.0 }
 0x3e0   : > { %v4828_v37 = vpack.c.bf16 %v4764_v2, %v4760_v6 }
 0x3e1   : > { %v4829_v31 = vpack.c.bf16 %v4765_v32, %v4761_v33 }
 0x3e3   : > { %5601 = vmatprep.mubr.bf16.mxu0 %v4829_v31 }
 0x3e4   : > { %5602 = vmatmul.mubr.bf16.gmra.mrb[124].mxu0 %v4828_v37 }
 0x43f   : > { %v5453_v50 = vpop.f32.mrb[64].mxu0 }
 0x440   : > { %v6808_v27 = vadd.f32 %v5453_v50, %v10497_v47  ;;  %v5455_v13 = vpop.f32.mrb[65].mxu0 }
 0x441   : > { %v6809_v61 = vadd.f32 %v5455_v13, %v10501_v17  ;;  %v5457_v44 = vpop.f32.mrb[66].mxu0 }
 0x442   : > { %v6810_v18 = vadd.f32 %v5457_v44, %v10497_v47  ;;  %v5459_v38 = vpop.f32.mrb[67].mxu0  ;;  %v5612_v57 = vmax.f32 %v6808_v27, 0.0 }
 0x443   : > { %v6811_v42 = vadd.f32 %v5459_v38, %v10501_v17  ;;  %v5613_v43 = vmax.f32 %v6809_v61, 0.0 }
 0x444   : > { %v5614_v59 = vmax.f32 %v6810_v18, 0.0 }
 0x445   : > { %v5615_v52 = vmax.f32 %v6811_v42, 0.0 }
 0x446   : > { %v5676_v34 = vpack.c.bf16 %v5614_v59, %v5612_v57 }
 0x447   : > { %v5677_v30 = vpack.c.bf16 %v5615_v52, %v5613_v43  ;;  %v5463_v12 = vpop.f32.mrb[68].mxu0 }
 0x448   : > { %v6812_v22 = vadd.f32 %v5463_v12, %v10497_v47  ;;  %v5465_v48 = vpop.f32.mrb[69].mxu0 }
 0x449   : > { %v6813_v21 = vadd.f32 %v5465_v48, %v10501_v17  ;;  %v5467_v58 = vpop.f32.mrb[70].mxu0  ;;  %5875 = vmatprep.mubr.bf16.mxu1 %v5677_v30 }
 0x44a   : > { %v6814_v14 = vadd.f32 %v5467_v58, %v10497_v47  ;;  %v5469_v49 = vpop.f32.mrb[71].mxu0  ;;  %5876 = vmatmul.mubr.bf16.vlgmr.msra.gmra.mrb[96].mxu1 %v5676_v34  ;;  %v5616_v63 = vmax.f32 %v6812_v22, 0.0 }
 0x44b   : > { %v6815_v10 = vadd.f32 %v5469_v49, %v10501_v17  ;;  %v5617_v11 = vmax.f32 %v6813_v21, 0.0 }
 0x44c   : > { %v5618_v35 = vmax.f32 %v6814_v14, 0.0 }
 0x44d   : > { %v5619_v62 = vmax.f32 %v6815_v10, 0.0 }
 0x44e   : > { %v5678_v45 = vpack.c.bf16 %v5618_v35, %v5616_v63 }
 0x44f   : > { %v5679_v46 = vpack.c.bf16 %v5619_v62, %v5617_v11  ;;  %v5473_v1 = vpop.f32.mrb[72].mxu0 }
 0x450   : > { %v6816_v23 = vadd.f32 %v5473_v1, %v10497_v47  ;;  %v5475_v25 = vpop.f32.mrb[73].mxu0 }
 0x451   : > { %v6817_v26 = vadd.f32 %v5475_v25, %v10501_v17  ;;  %v5477_v54 = vpop.f32.mrb[74].mxu0  ;;  %5883 = vmatprep.mubr.bf16.mxu1 %v5679_v46 }
 0x452   : > { %v6818_v3 = vadd.f32 %v5477_v54, %v10497_v47  ;;  %v5479_v4 = vpop.f32.mrb[75].mxu0  ;;  %5884 = vmatmul.mubr.bf16.gmra.mrb[100].mxu1 %v5678_v45  ;;  %v5620_v29 = vmax.f32 %v6816_v23, 0.0 }
 0x453   : > { %v6819_v55 = vadd.f32 %v5479_v4, %v10501_v17  ;;  %v5621_v8 = vmax.f32 %v6817_v26, 0.0 }
 0x454   : > { %v5622_v0 = vmax.f32 %v6818_v3, 0.0 }
 0x455   : > { %v5623_v5 = vmax.f32 %v6819_v55, 0.0 }
 0x456   : > { %v5680_v7 = vpack.c.bf16 %v5622_v0, %v5620_v29 }
 0x457   : > { %v5681_v16 = vpack.c.bf16 %v5623_v5, %v5621_v8  ;;  %v5483_v36 = vpop.f32.mrb[76].mxu0 }
 0x458   : > { %v6820_v20 = vadd.f32 %v5483_v36, %v10497_v47  ;;  %v5485_v19 = vpop.f32.mrb[77].mxu0 }
 0x459   : > { %v6821_v60 = vadd.f32 %v5485_v19, %v10501_v17  ;;  %v5487_v24 = vpop.f32.mrb[78].mxu0  ;;  %5891 = vmatprep.mubr.bf16.mxu1 %v5681_v16 }
 0x45a   : > { %v6822_v51 = vadd.f32 %v5487_v24, %v10497_v47  ;;  %v5489_v15 = vpop.f32.mrb[79].mxu0  ;;  %5892 = vmatmul.mubr.bf16.gmra.mrb[104].mxu1 %v5680_v7  ;;  %v5624_v40 = vmax.f32 %v6820_v20, 0.0 }
 0x45b   : > { %v6823_v41 = vadd.f32 %v5489_v15, %v10501_v17  ;;  %v5625_v53 = vmax.f32 %v6821_v60, 0.0 }
 0x45c   : > { %v5626_v9 = vmax.f32 %v6822_v51, 0.0 }
 0x45d   : > { %v5627_v56 = vmax.f32 %v6823_v41, 0.0 }
 0x45e   : > { %v5682_v39 = vpack.c.bf16 %v5626_v9, %v5624_v40 }
 0x45f   : > { %v5683_v6 = vpack.c.bf16 %v5627_v56, %v5625_v53  ;;  %v5493_v2 = vpop.f32.mrb[80].mxu0 }
 0x460   : > { %v6824_v33 = vadd.f32 %v5493_v2, %v10497_v47  ;;  %v5495_v32 = vpop.f32.mrb[81].mxu0 }
 0x461   : > { %v6825_v37 = vadd.f32 %v5495_v32, %v10501_v17  ;;  %v5497_v31 = vpop.f32.mrb[82].mxu0  ;;  %5899 = vmatprep.mubr.bf16.mxu1 %v5683_v6 }
 0x462   : > { %v6826_v28 = vadd.f32 %v5497_v31, %v10497_v47  ;;  %v5499_v50 = vpop.f32.mrb[83].mxu0  ;;  %5900 = vmatmul.mubr.bf16.gmra.mrb[108].mxu1 %v5682_v39  ;;  %v5628_v13 = vmax.f32 %v6824_v33, 0.0 }
 0x463   : > { %v6827_v27 = vadd.f32 %v5499_v50, %v10501_v17  ;;  %v5629_v44 = vmax.f32 %v6825_v37, 0.0 }
 0x464   : > { %v5630_v61 = vmax.f32 %v6826_v28, 0.0 }
 0x465   : > { %v5631_v18 = vmax.f32 %v6827_v27, 0.0 }
 0x466   : > { %v5684_v38 = vpack.c.bf16 %v5630_v61, %v5628_v13 }
 0x467   : > { %v5685_v42 = vpack.c.bf16 %v5631_v18, %v5629_v44  ;;  %v5503_v57 = vpop.f32.mrb[84].mxu0 }
 0x468   : > { %v6828_v59 = vadd.f32 %v5503_v57, %v10497_v47  ;;  %v5505_v43 = vpop.f32.mrb[85].mxu0 }
 0x469   : > { %v6829_v52 = vadd.f32 %v5505_v43, %v10501_v17  ;;  %v5507_v34 = vpop.f32.mrb[86].mxu0  ;;  %5907 = vmatprep.mubr.bf16.mxu1 %v5685_v42 }
 0x46a   : > { %v6830_v30 = vadd.f32 %v5507_v34, %v10497_v47  ;;  %v5509_v12 = vpop.f32.mrb[87].mxu0  ;;  %5908 = vmatmul.mubr.bf16.gmra.mrb[112].mxu1 %v5684_v38  ;;  %v5632_v48 = vmax.f32 %v6828_v59, 0.0 }
 0x46b   : > { %v6831_v22 = vadd.f32 %v5509_v12, %v10501_v17  ;;  %v5633_v58 = vmax.f32 %v6829_v52, 0.0 }
 0x46c   : > { %v5634_v21 = vmax.f32 %v6830_v30, 0.0 }
 0x46d   : > { %v5635_v14 = vmax.f32 %v6831_v22, 0.0 }
 0x46e   : > { %v5686_v49 = vpack.c.bf16 %v5634_v21, %v5632_v48 }
 0x46f   : > { %v5687_v10 = vpack.c.bf16 %v5635_v14, %v5633_v58  ;;  %v5513_v63 = vpop.f32.mrb[88].mxu0 }
 0x470   : > { %v6832_v35 = vadd.f32 %v5513_v63, %v10497_v47  ;;  %v5515_v11 = vpop.f32.mrb[89].mxu0 }
 0x471   : > { %v6833_v62 = vadd.f32 %v5515_v11, %v10501_v17  ;;  %v5517_v45 = vpop.f32.mrb[90].mxu0  ;;  %5915 = vmatprep.mubr.bf16.mxu1 %v5687_v10 }
 0x472   : > { %v6834_v46 = vadd.f32 %v5517_v45, %v10497_v47  ;;  %v5519_v1 = vpop.f32.mrb[91].mxu0  ;;  %5916 = vmatmul.mubr.bf16.gmra.mrb[116].mxu1 %v5686_v49  ;;  %v5636_v25 = vmax.f32 %v6832_v35, 0.0 }
 0x473   : > { %v6835_v23 = vadd.f32 %v5519_v1, %v10501_v17  ;;  %v5637_v54 = vmax.f32 %v6833_v62, 0.0 }
 0x474   : > { %v5638_v26 = vmax.f32 %v6834_v46, 0.0 }
 0x475   : > { %v5639_v3 = vmax.f32 %v6835_v23, 0.0 }
 0x476   : > { %v5688_v4 = vpack.c.bf16 %v5638_v26, %v5636_v25 }
 0x477   : > { %v5689_v55 = vpack.c.bf16 %v5639_v3, %v5637_v54  ;;  %v5523_v29 = vpop.f32.mrb[92].mxu0 }
 0x478   : > { %v6836_v0 = vadd.f32 %v5523_v29, %v10497_v47  ;;  %v5525_v8 = vpop.f32.mrb[93].mxu0 }
 0x479   : > { %v6837_v5 = vadd.f32 %v5525_v8, %v10501_v17  ;;  %v5527_v7 = vpop.f32.mrb[94].mxu0  ;;  %5923 = vmatprep.mubr.bf16.mxu1 %v5689_v55 }
 0x47a   : > { %v6838_v16 = vadd.f32 %v5527_v7, %v10497_v47  ;;  %v5529_v36 = vpop.f32.mrb[95].mxu0  ;;  %5924 = vmatmul.mubr.bf16.gmra.mrb[120].mxu1 %v5688_v4  ;;  %v5640_v19 = vmax.f32 %v6836_v0, 0.0 }
 0x47b   : > { %v6839_v20 = vadd.f32 %v5529_v36, %v10501_v17  ;;  %v5641_v24 = vmax.f32 %v6837_v5, 0.0 }
 0x47c   : > { %v5642_v60 = vmax.f32 %v6838_v16, 0.0 }
 0x47d   : > { %v5643_v51 = vmax.f32 %v6839_v20, 0.0 }
 0x47e   : > { %v5690_v15 = vpack.c.bf16 %v5642_v60, %v5640_v19 }
 0x47f   : > { %v5691_v41 = vpack.c.bf16 %v5643_v51, %v5641_v24  ;;  %v5533_v40 = vpop.f32.mrb[96].mxu0 }
 0x480   : > { %v6840_v9 = vadd.f32 %v5533_v40, %v10497_v47  ;;  %v5535_v53 = vpop.f32.mrb[97].mxu0 }
 0x481   : > { %v6841_v56 = vadd.f32 %v5535_v53, %v10501_v17  ;;  %v5537_v39 = vpop.f32.mrb[98].mxu0  ;;  %5931 = vmatprep.mubr.bf16.mxu1 %v5691_v41 }
 0x482   : > { %v6842_v6 = vadd.f32 %v5537_v39, %v10497_v47  ;;  %v5539_v2 = vpop.f32.mrb[99].mxu0  ;;  %5932 = vmatmul.mubr.bf16.gmra.mrb[124].mxu1 %v5690_v15  ;;  %v5644_v32 = vmax.f32 %v6840_v9, 0.0 }
 0x483   : > { %v6843_v33 = vadd.f32 %v5539_v2, %v10501_v17  ;;  %v5645_v31 = vmax.f32 %v6841_v56, 0.0 }
 0x484   : > { %v5646_v37 = vmax.f32 %v6842_v6, 0.0 }
 0x485   : > { %v5647_v28 = vmax.f32 %v6843_v33, 0.0 }
 0x486   : > { %v5692_v50 = vpack.c.bf16 %v5646_v37, %v5644_v32 }
 0x487   : > { %v5693_v27 = vpack.c.bf16 %v5647_v28, %v5645_v31  ;;  %v5543_v13 = vpop.f32.mrb[100].mxu0 }
 0x488   : > { %v6844_v61 = vadd.f32 %v5543_v13, %v10497_v47  ;;  %v5545_v44 = vpop.f32.mrb[101].mxu0 }
 0x489   : > { %v6845_v18 = vadd.f32 %v5545_v44, %v10501_v17  ;;  %v5547_v38 = vpop.f32.mrb[102].mxu0  ;;  %5939 = vmatprep.mubr.bf16.mxu1 %v5693_v27 }
 0x48a   : > { %v6846_v42 = vadd.f32 %v5547_v38, %v10497_v47  ;;  %v5549_v57 = vpop.f32.mrb[103].mxu0  ;;  %5940 = vmatmul.mubr.bf16.gmra.mrb[128].mxu1 %v5692_v50  ;;  %v5648_v43 = vmax.f32 %v6844_v61, 0.0 }
 0x48b   : > { %v6847_v59 = vadd.f32 %v5549_v57, %v10501_v17  ;;  %v5649_v34 = vmax.f32 %v6845_v18, 0.0 }
 0x48c   : > { %v5650_v52 = vmax.f32 %v6846_v42, 0.0 }
 0x48d   : > { %v5651_v30 = vmax.f32 %v6847_v59, 0.0 }
 0x48e   : > { %v5694_v12 = vpack.c.bf16 %v5650_v52, %v5648_v43 }
 0x48f   : > { %v5695_v22 = vpack.c.bf16 %v5651_v30, %v5649_v34  ;;  %v5553_v48 = vpop.f32.mrb[104].mxu0 }
 0x490   : > { %v6848_v21 = vadd.f32 %v5553_v48, %v10497_v47  ;;  %v5555_v58 = vpop.f32.mrb[105].mxu0 }
 0x491   : > { %v6849_v14 = vadd.f32 %v5555_v58, %v10501_v17  ;;  %v5557_v49 = vpop.f32.mrb[106].mxu0  ;;  %5947 = vmatprep.mubr.bf16.mxu1 %v5695_v22 }
 0x492   : > { %v6850_v10 = vadd.f32 %v5557_v49, %v10497_v47  ;;  %v5559_v63 = vpop.f32.mrb[107].mxu0  ;;  %5948 = vmatmul.mubr.bf16.gmra.mrb[132].mxu1 %v5694_v12  ;;  %v5652_v11 = vmax.f32 %v6848_v21, 0.0 }
 0x493   : > { %v6851_v35 = vadd.f32 %v5559_v63, %v10501_v17  ;;  %v5653_v45 = vmax.f32 %v6849_v14, 0.0 }
 0x494   : > { %v5654_v62 = vmax.f32 %v6850_v10, 0.0 }
 0x495   : > { %v5655_v46 = vmax.f32 %v6851_v35, 0.0 }
 0x496   : > { %v5696_v1 = vpack.c.bf16 %v5654_v62, %v5652_v11 }
 0x497   : > { %v5697_v23 = vpack.c.bf16 %v5655_v46, %v5653_v45  ;;  %v5563_v25 = vpop.f32.mrb[108].mxu0 }
 0x498   : > { %v6852_v26 = vadd.f32 %v5563_v25, %v10497_v47  ;;  %v5565_v54 = vpop.f32.mrb[109].mxu0 }
 0x499   : > { %v6853_v3 = vadd.f32 %v5565_v54, %v10501_v17  ;;  %v5567_v4 = vpop.f32.mrb[110].mxu0  ;;  %5955 = vmatprep.mubr.bf16.mxu1 %v5697_v23 }
 0x49a   : > { %v6854_v55 = vadd.f32 %v5567_v4, %v10497_v47  ;;  %v5569_v29 = vpop.f32.mrb[111].mxu0  ;;  %5956 = vmatmul.mubr.bf16.gmra.mrb[136].mxu1 %v5696_v1  ;;  %v5656_v8 = vmax.f32 %v6852_v26, 0.0 }
 0x49b   : > { %v6855_v0 = vadd.f32 %v5569_v29, %v10501_v17  ;;  %v5657_v7 = vmax.f32 %v6853_v3, 0.0 }
 0x49c   : > { %v5658_v5 = vmax.f32 %v6854_v55, 0.0 }
 0x49d   : > { %v5659_v16 = vmax.f32 %v6855_v0, 0.0 }
 0x49e   : > { %v5698_v36 = vpack.c.bf16 %v5658_v5, %v5656_v8  ;;  %v10571_v5 = vld [vmem:[%s10651_s6] ss:$0 sm:$0xff] }
 0x49f   : > { %v5699_v20 = vpack.c.bf16 %v5659_v16, %v5657_v7  ;;  %v5573_v19 = vpop.f32.mrb[112].mxu0 }
 0x4a0   : > { %v6856_v60 = vadd.f32 %v5573_v19, %v10497_v47  ;;  %v5575_v24 = vpop.f32.mrb[113].mxu0 }
 0x4a1   : > { %v6857_v51 = vadd.f32 %v5575_v24, %v10501_v17  ;;  %v5577_v15 = vpop.f32.mrb[114].mxu0  ;;  %5963 = vmatprep.mubr.bf16.mxu1 %v5699_v20 }
 0x4a2   : > { %v6858_v41 = vadd.f32 %v5577_v15, %v10497_v47  ;;  %v5579_v40 = vpop.f32.mrb[115].mxu0  ;;  %5964 = vmatmul.mubr.bf16.gmra.mrb[140].mxu1 %v5698_v36  ;;  %v5660_v53 = vmax.f32 %v6856_v60, 0.0 }
 0x4a3   : > { %v6859_v9 = vadd.f32 %v5579_v40, %v10501_v17  ;;  %v5661_v39 = vmax.f32 %v6857_v51, 0.0 }
 0x4a4   : > { %v5662_v56 = vmax.f32 %v6858_v41, 0.0 }
 0x4a5   : > { %v5663_v6 = vmax.f32 %v6859_v9, 0.0 }
 0x4a6   : > { %v5700_v2 = vpack.c.bf16 %v5662_v56, %v5660_v53 }
 0x4a7   : > { %v5701_v33 = vpack.c.bf16 %v5663_v6, %v5661_v39  ;;  %v5583_v32 = vpop.f32.mrb[116].mxu0 }
 0x4a8   : > { %v6860_v37 = vadd.f32 %v5583_v32, %v10497_v47  ;;  %v5585_v31 = vpop.f32.mrb[117].mxu0 }
 0x4a9   : > { %v6861_v28 = vadd.f32 %v5585_v31, %v10501_v17  ;;  %v5587_v50 = vpop.f32.mrb[118].mxu0  ;;  %5971 = vmatprep.mubr.bf16.mxu1 %v5701_v33 }
 0x4aa   : > { %v6862_v27 = vadd.f32 %v5587_v50, %v10497_v47  ;;  %v5589_v13 = vpop.f32.mrb[119].mxu0  ;;  %5972 = vmatmul.mubr.bf16.gmra.mrb[144].mxu1 %v5700_v2  ;;  %v5664_v44 = vmax.f32 %v6860_v37, 0.0 }
 0x4ab   : > { %v6863_v61 = vadd.f32 %v5589_v13, %v10501_v17  ;;  %v5665_v38 = vmax.f32 %v6861_v28, 0.0 }
 0x4ac   : > { %v5666_v18 = vmax.f32 %v6862_v27, 0.0 }
 0x4ad   : > { %v5667_v42 = vmax.f32 %v6863_v61, 0.0 }
 0x4ae   : > { %v5702_v57 = vpack.c.bf16 %v5666_v18, %v5664_v44 }
 0x4af   : > { %v5703_v59 = vpack.c.bf16 %v5667_v42, %v5665_v38  ;;  %v5593_v43 = vpop.f32.mrb[120].mxu0 }
 0x4b0   : > { %v6864_v52 = vadd.f32 %v5593_v43, %v10497_v47  ;;  %v5595_v34 = vpop.f32.mrb[121].mxu0 }
 0x4b1   : > { %v6865_v30 = vadd.f32 %v5595_v34, %v10501_v17  ;;  %v5597_v12 = vpop.f32.mrb[122].mxu0  ;;  %5979 = vmatprep.mubr.bf16.mxu1 %v5703_v59 }
 0x4b2   : > { %v6866_v22 = vadd.f32 %v5597_v12, %v10497_v47  ;;  %v5599_v48 = vpop.f32.mrb[123].mxu0  ;;  %5980 = vmatmul.mubr.bf16.gmra.mrb[148].mxu1 %v5702_v57  ;;  %v5668_v58 = vmax.f32 %v6864_v52, 0.0 }
 0x4b3   : > { %v6867_v21 = vadd.f32 %v5599_v48, %v10501_v17  ;;  %v5669_v49 = vmax.f32 %v6865_v30, 0.0 }
 0x4b4   : > { %v5670_v14 = vmax.f32 %v6866_v22, 0.0 }
 0x4b5   : > { %v5671_v10 = vmax.f32 %v6867_v21, 0.0 }
 0x4b6   : > { %v5704_v63 = vpack.c.bf16 %v5670_v14, %v5668_v58 }
 0x4b7   : > { %v5705_v35 = vpack.c.bf16 %v5671_v10, %v5669_v49  ;;  %v5603_v11 = vpop.f32.mrb[124].mxu0 }
 0x4b8   : > { %v6868_v62 = vadd.f32 %v5603_v11, %v10497_v47  ;;  %v5605_v45 = vpop.f32.mrb[125].mxu0 }
 0x4b9   : > { %v6869_v46 = vadd.f32 %v5605_v45, %v10501_v17  ;;  %v5607_v1 = vpop.f32.mrb[126].mxu0  ;;  %5987 = vmatprep.mubr.bf16.mxu1 %v5705_v35 }
 0x4ba   : > { %v6870_v23 = vadd.f32 %v5607_v1, %v10497_v47  ;;  %v5609_v25 = vpop.f32.mrb[127].mxu0  ;;  %5988 = vmatmul.mubr.bf16.gmra.mrb[152].mxu1 %v5704_v63  ;;  %v5672_v54 = vmax.f32 %v6868_v62, 0.0 }
 0x4bb   : > { %v6871_v26 = vadd.f32 %v5609_v25, %v10501_v17  ;;  %v5673_v4 = vmax.f32 %v6869_v46, 0.0 }
 0x4bc   : > { %v5674_v3 = vmax.f32 %v6870_v23, 0.0 }
 0x4bd   : > { %v5675_v55 = vmax.f32 %v6871_v26, 0.0 }
 0x4be   : > { %v5706_v29 = vpack.c.bf16 %v5674_v3, %v5672_v54 }
 0x4bf   : > { %v5707_v0 = vpack.c.bf16 %v5675_v55, %v5673_v4 }
 0x4c1   : > { %5995 = vmatprep.mubr.bf16.mxu1 %v5707_v0 }
 0x4c2   : > { %5996 = vmatmul.mubr.bf16.gmra.mrb[156].mxu1 %v5706_v29 }
 0x51d   : > { %v6520_v8 = vpop.f32.mrb[96].mxu1 }
 0x51e   : > { %v6521_v47 = vpop.f32.mrb[97].mxu1 }
 0x51f   : > { %v6522_v7 = vadd.f32 %v6521_v47, %v6520_v8  ;;  %v6523_v16 = vpop.f32.mrb[98].mxu1 }
 0x520   : > { %v6524_v17 = vpop.f32.mrb[99].mxu1 }
 0x521   : > { %v5878_v36 = vadd.f32 %v6522_v7, %v10571_v5  ;;  %v6525_v20 = vadd.f32 %v6524_v17, %v6523_v16 }
 0x523   : > { %6004 = vst [vmem:[%s10576_s10] sm:$0xff] %v5878_v36  ;;  %v5881_v19 = vadd.f32 %v6525_v20, %v10571_v5 }
 0x525   : > { %6005 = vst [vmem:[%s10576_s10 + $0x8] sm:$0xff] %v5881_v19  ;;  %v6526_v60 = vpop.f32.mrb[100].mxu1 }
 0x526   : > { %v6527_v24 = vpop.f32.mrb[101].mxu1 }
 0x527   : > { %v6528_v51 = vadd.f32 %v6527_v24, %v6526_v60  ;;  %v6529_v15 = vpop.f32.mrb[102].mxu1 }
 0x528   : > { %v6530_v41 = vpop.f32.mrb[103].mxu1 }
 0x529   : > { %v5886_v40 = vadd.f32 %v6528_v51, %v10571_v5  ;;  %v6531_v9 = vadd.f32 %v6530_v41, %v6529_v15 }
 0x52b   : > { %6006 = vst [vmem:[%s10576_s10 + $0x10] sm:$0xff] %v5886_v40  ;;  %v5889_v53 = vadd.f32 %v6531_v9, %v10571_v5 }
 0x52d   : > { %6007 = vst [vmem:[%s10576_s10 + $0x18] sm:$0xff] %v5889_v53  ;;  %v6532_v56 = vpop.f32.mrb[104].mxu1 }
 0x52e   : > { %v6533_v39 = vpop.f32.mrb[105].mxu1 }
 0x52f   : > { %v6534_v6 = vadd.f32 %v6533_v39, %v6532_v56  ;;  %v6535_v2 = vpop.f32.mrb[106].mxu1 }
 0x530   : > { %v6536_v33 = vpop.f32.mrb[107].mxu1 }
 0x531   : > { %v5894_v32 = vadd.f32 %v6534_v6, %v10571_v5  ;;  %v6537_v37 = vadd.f32 %v6536_v33, %v6535_v2 }
 0x533   : > { %6008 = vst [vmem:[%s10576_s10 + $0x20] sm:$0xff] %v5894_v32  ;;  %v5897_v31 = vadd.f32 %v6537_v37, %v10571_v5 }
 0x535   : > { %6009 = vst [vmem:[%s10576_s10 + $0x28] sm:$0xff] %v5897_v31  ;;  %v6538_v28 = vpop.f32.mrb[108].mxu1 }
 0x536   : > { %v6539_v50 = vpop.f32.mrb[109].mxu1 }
 0x537   : > { %v6540_v27 = vadd.f32 %v6539_v50, %v6538_v28  ;;  %v6541_v13 = vpop.f32.mrb[110].mxu1 }
 0x538   : > { %v6542_v61 = vpop.f32.mrb[111].mxu1 }
 0x539   : > { %v5902_v44 = vadd.f32 %v6540_v27, %v10571_v5  ;;  %v6543_v18 = vadd.f32 %v6542_v61, %v6541_v13 }
 0x53b   : > { %6010 = vst [vmem:[%s10576_s10 + $0x30] sm:$0xff] %v5902_v44  ;;  %v5905_v38 = vadd.f32 %v6543_v18, %v10571_v5 }
 0x53d   : > { %6011 = vst [vmem:[%s10576_s10 + $0x38] sm:$0xff] %v5905_v38  ;;  %v6544_v42 = vpop.f32.mrb[112].mxu1 }
 0x53e   : > { %v6545_v57 = vpop.f32.mrb[113].mxu1 }
 0x53f   : > { %v6546_v59 = vadd.f32 %v6545_v57, %v6544_v42  ;;  %v6547_v43 = vpop.f32.mrb[114].mxu1 }
 0x540   : > { %v6548_v52 = vpop.f32.mrb[115].mxu1 }
 0x541   : > { %v5910_v34 = vadd.f32 %v6546_v59, %v10571_v5  ;;  %v6549_v30 = vadd.f32 %v6548_v52, %v6547_v43 }
 0x543   : > { %6012 = vst [vmem:[%s10576_s10 + $0x40] sm:$0xff] %v5910_v34  ;;  %v5913_v12 = vadd.f32 %v6549_v30, %v10571_v5 }
 0x545   : > { %6013 = vst [vmem:[%s10576_s10 + $0x48] sm:$0xff] %v5913_v12  ;;  %v6550_v22 = vpop.f32.mrb[116].mxu1 }
 0x546   : > { %v6551_v48 = vpop.f32.mrb[117].mxu1 }
 0x547   : > { %v6552_v21 = vadd.f32 %v6551_v48, %v6550_v22  ;;  %v6553_v58 = vpop.f32.mrb[118].mxu1 }
 0x548   : > { %v6554_v14 = vpop.f32.mrb[119].mxu1 }
 0x549   : > { %v5918_v49 = vadd.f32 %v6552_v21, %v10571_v5  ;;  %v6555_v10 = vadd.f32 %v6554_v14, %v6553_v58 }
 0x54b   : > { %6014 = vst [vmem:[%s10576_s10 + $0x50] sm:$0xff] %v5918_v49  ;;  %v5921_v63 = vadd.f32 %v6555_v10, %v10571_v5 }
 0x54d   : > { %6015 = vst [vmem:[%s10576_s10 + $0x58] sm:$0xff] %v5921_v63  ;;  %v6556_v35 = vpop.f32.mrb[120].mxu1 }
 0x54e   : > { %v6557_v11 = vpop.f32.mrb[121].mxu1 }
 0x54f   : > { %v6558_v62 = vadd.f32 %v6557_v11, %v6556_v35  ;;  %v6559_v45 = vpop.f32.mrb[122].mxu1 }
 0x550   : > { %v6560_v46 = vpop.f32.mrb[123].mxu1 }
 0x551   : > { %v5926_v1 = vadd.f32 %v6558_v62, %v10571_v5  ;;  %v6561_v23 = vadd.f32 %v6560_v46, %v6559_v45 }
 0x553   : > { %6016 = vst [vmem:[%s10576_s10 + $0x60] sm:$0xff] %v5926_v1  ;;  %v5929_v25 = vadd.f32 %v6561_v23, %v10571_v5 }
 0x555   : > { %6017 = vst [vmem:[%s10576_s10 + $0x68] sm:$0xff] %v5929_v25  ;;  %v6562_v26 = vpop.f32.mrb[124].mxu1 }
 0x556   : > { %v6563_v54 = vpop.f32.mrb[125].mxu1 }
 0x557   : > { %v6564_v3 = vadd.f32 %v6563_v54, %v6562_v26  ;;  %v6565_v4 = vpop.f32.mrb[126].mxu1 }
 0x558   : > { %v6566_v55 = vpop.f32.mrb[127].mxu1 }
 0x559   : > { %v5934_v29 = vadd.f32 %v6564_v3, %v10571_v5  ;;  %v6567_v0 = vadd.f32 %v6566_v55, %v6565_v4 }
 0x55b   : > { %6018 = vst [vmem:[%s10576_s10 + $0x70] sm:$0xff] %v5934_v29  ;;  %v5937_v8 = vadd.f32 %v6567_v0, %v10571_v5 }
 0x55d   : > { %6019 = vst [vmem:[%s10576_s10 + $0x78] sm:$0xff] %v5937_v8  ;;  %v6568_v47 = vpop.f32.mrb[128].mxu1 }
 0x55e   : > { %v6569_v7 = vpop.f32.mrb[129].mxu1 }
 0x55f   : > { %v6570_v16 = vadd.f32 %v6569_v7, %v6568_v47  ;;  %v6571_v17 = vpop.f32.mrb[130].mxu1 }
 0x560   : > { %v6572_v36 = vpop.f32.mrb[131].mxu1 }
 0x561   : > { %v5942_v20 = vadd.f32 %v6570_v16, %v10571_v5  ;;  %v6573_v19 = vadd.f32 %v6572_v36, %v6571_v17 }
 0x563   : > { %6020 = vst [vmem:[%s10576_s10 + $0x80] sm:$0xff] %v5942_v20  ;;  %v5945_v60 = vadd.f32 %v6573_v19, %v10571_v5 }
 0x565   : > { %6021 = vst [vmem:[%s10576_s10 + $0x88] sm:$0xff] %v5945_v60  ;;  %v6574_v24 = vpop.f32.mrb[132].mxu1 }
 0x566   : > { %v6575_v51 = vpop.f32.mrb[133].mxu1 }
 0x567   : > { %v6576_v15 = vadd.f32 %v6575_v51, %v6574_v24  ;;  %v6577_v41 = vpop.f32.mrb[134].mxu1 }
 0x568   : > { %v6578_v40 = vpop.f32.mrb[135].mxu1 }
 0x569   : > { %v5950_v9 = vadd.f32 %v6576_v15, %v10571_v5  ;;  %v6579_v53 = vadd.f32 %v6578_v40, %v6577_v41 }
 0x56b   : > { %6022 = vst [vmem:[%s10576_s10 + $0x90] sm:$0xff] %v5950_v9  ;;  %v5953_v56 = vadd.f32 %v6579_v53, %v10571_v5 }
 0x56d   : > { %6023 = vst [vmem:[%s10576_s10 + $0x98] sm:$0xff] %v5953_v56  ;;  %v6580_v39 = vpop.f32.mrb[136].mxu1 }
 0x56e   : > { %v6581_v6 = vpop.f32.mrb[137].mxu1 }
 0x56f   : > { %v6582_v2 = vadd.f32 %v6581_v6, %v6580_v39  ;;  %v6583_v33 = vpop.f32.mrb[138].mxu1 }
 0x570   : > { %v6584_v32 = vpop.f32.mrb[139].mxu1 }
 0x571   : > { %v5958_v37 = vadd.f32 %v6582_v2, %v10571_v5  ;;  %v6585_v31 = vadd.f32 %v6584_v32, %v6583_v33 }
 0x573   : > { %6024 = vst [vmem:[%s10576_s10 + $0xa0] sm:$0xff] %v5958_v37  ;;  %v5961_v28 = vadd.f32 %v6585_v31, %v10571_v5 }
 0x575   : > { %6025 = vst [vmem:[%s10576_s10 + $0xa8] sm:$0xff] %v5961_v28  ;;  %v6586_v50 = vpop.f32.mrb[140].mxu1 }
 0x576   : > { %v6587_v27 = vpop.f32.mrb[141].mxu1 }
 0x577   : > { %v6588_v13 = vadd.f32 %v6587_v27, %v6586_v50  ;;  %v6589_v61 = vpop.f32.mrb[142].mxu1 }
 0x578   : > { %v6590_v44 = vpop.f32.mrb[143].mxu1 }
 0x579   : > { %v5966_v18 = vadd.f32 %v6588_v13, %v10571_v5  ;;  %v6591_v38 = vadd.f32 %v6590_v44, %v6589_v61 }
 0x57b   : > { %6026 = vst [vmem:[%s10576_s10 + $0xb0] sm:$0xff] %v5966_v18  ;;  %v5969_v42 = vadd.f32 %v6591_v38, %v10571_v5 }
 0x57d   : > { %6027 = vst [vmem:[%s10576_s10 + $0xb8] sm:$0xff] %v5969_v42  ;;  %v6592_v57 = vpop.f32.mrb[144].mxu1 }
 0x57e   : > { %v6593_v59 = vpop.f32.mrb[145].mxu1 }
 0x57f   : > { %v6594_v43 = vadd.f32 %v6593_v59, %v6592_v57  ;;  %v6595_v52 = vpop.f32.mrb[146].mxu1 }
 0x580   : > { %v6596_v34 = vpop.f32.mrb[147].mxu1 }
 0x581   : > { %v5974_v30 = vadd.f32 %v6594_v43, %v10571_v5  ;;  %v6597_v12 = vadd.f32 %v6596_v34, %v6595_v52 }
 0x583   : > { %6028 = vst [vmem:[%s10576_s10 + $0xc0] sm:$0xff] %v5974_v30  ;;  %v5977_v22 = vadd.f32 %v6597_v12, %v10571_v5 }
 0x585   : > { %6029 = vst [vmem:[%s10576_s10 + $0xc8] sm:$0xff] %v5977_v22  ;;  %v6598_v48 = vpop.f32.mrb[148].mxu1 }
 0x586   : > { %v6599_v21 = vpop.f32.mrb[149].mxu1 }
 0x587   : > { %v6600_v58 = vadd.f32 %v6599_v21, %v6598_v48  ;;  %v6601_v14 = vpop.f32.mrb[150].mxu1 }
 0x588   : > { %v6602_v49 = vpop.f32.mrb[151].mxu1 }
 0x589   : > { %v5982_v10 = vadd.f32 %v6600_v58, %v10571_v5  ;;  %v6603_v63 = vadd.f32 %v6602_v49, %v6601_v14 }
 0x58b   : > { %6030 = vst [vmem:[%s10576_s10 + $0xd0] sm:$0xff] %v5982_v10  ;;  %v5985_v35 = vadd.f32 %v6603_v63, %v10571_v5 }
 0x58d   : > { %6031 = vst [vmem:[%s10576_s10 + $0xd8] sm:$0xff] %v5985_v35  ;;  %v6604_v11 = vpop.f32.mrb[152].mxu1 }
 0x58e   : > { %v6605_v62 = vpop.f32.mrb[153].mxu1 }
 0x58f   : > { %v6606_v45 = vadd.f32 %v6605_v62, %v6604_v11  ;;  %v6607_v46 = vpop.f32.mrb[154].mxu1 }
 0x590   : > { %v6608_v1 = vpop.f32.mrb[155].mxu1 }
 0x591   : > { %v5990_v23 = vadd.f32 %v6606_v45, %v10571_v5  ;;  %v6609_v25 = vadd.f32 %v6608_v1, %v6607_v46 }
 0x593   : > { %6032 = vst [vmem:[%s10576_s10 + $0xe0] sm:$0xff] %v5990_v23  ;;  %v5993_v26 = vadd.f32 %v6609_v25, %v10571_v5 }
 0x595   : > { %6033 = vst [vmem:[%s10576_s10 + $0xe8] sm:$0xff] %v5993_v26  ;;  %v6610_v54 = vpop.f32.mrb[156].mxu1 }
 0x596   : > { %v6611_v3 = vpop.f32.mrb[157].mxu1 }
 0x597   : > { %v6612_v4 = vadd.f32 %v6611_v3, %v6610_v54  ;;  %v6613_v55 = vpop.f32.mrb[158].mxu1 }
 0x598   : > { %v6614_v29 = vpop.f32.mrb[159].mxu1 }
 0x599   : > { %v5998_v0 = vadd.f32 %v6612_v4, %v10571_v5  ;;  %v6615_v8 = vadd.f32 %v6614_v29, %v6613_v55 }
 0x59b   : > { %6034 = vst [vmem:[%s10576_s10 + $0xf0] sm:$0xff] %v5998_v0  ;;  %v6001_v47 = vadd.f32 %v6615_v8, %v10571_v5 }
 0x59d   : > { %6035 = vst [vmem:[%s10576_s10 + $0xf8] sm:$0xff] %v6001_v47 }
 0x59e PF: > { %s17_s24 = sadd.s32 1, %s8023_s24  }
 0x59f   : > { %p14_p4 = scmp.ge.s32.totalorder %s17_s24, 4  }
 0x5a1   :  { %16 = sbr.rel (!%p14_p4) target bundleno = 1 (0x1), region = 78 }

</bundles_post_ra>
